<compile_context>
chip_gen: v7x
topology: tpu7x:2x2x1
jax: 0.10.0
libtpu: 0.0.40
codegen_flags: <defaults>
</compile_context>

<pallas_src>
import functools
import math

import jax
import jax.numpy as jnp
from jax.experimental import pallas as pl
from jax.experimental.pallas import tpu as pltpu

# ----------------------------- small DistilBERT config -----------------------------
HIDDEN = 64          # distilbert.config.dim
N_HEADS = 4
HEAD_DIM = HIDDEN // N_HEADS
FFN_DIM = 128        # hidden_dim
N_LAYERS = 2
VOCAB = 384          # extended vocab size = mlm head output dim
MAX_POS = 32
LN_EPS = 1e-12
NEG_INF = float(jnp.finfo(jnp.float32).min)


# ------------------------------- in-kernel helpers ----------------------------------

def _layer_norm(x, g, b, eps=LN_EPS):
    """LayerNorm over last axis (biased variance, eps inside rsqrt) — f32 math."""
    mu = jnp.mean(x, axis=-1, keepdims=True)
    var = jnp.mean(jnp.square(x - mu), axis=-1, keepdims=True)
    return (x - mu) * jax.lax.rsqrt(var + eps) * g + b


def _gelu(x):
    # exact (erf) GELU, matching HF DistilBert's "gelu" activation
    return 0.5 * x * (1.0 + jax.lax.erf(x * (1.0 / math.sqrt(2.0))))


def _mm(x, w):
    """MXU matmul with bf16 operands and f32 accumulation."""
    return jnp.dot(x.astype(jnp.bfloat16), w.astype(jnp.bfloat16),
                   preferred_element_type=jnp.float32)


# ------------------------------ fused forward kernel --------------------------------

def _fused_forward_kernel(
        # inputs
        x_emb_ref, mask2d_ref, labels_ref,
        emb_ln_g_ref, emb_ln_b_ref,
        wqkv_ref, bqkv_ref, wo_ref, bo_ref, ln1_g_ref, ln1_b_ref,
        w1_ref, b1_ref, w2_ref, b2_ref, ln2_g_ref, ln2_b_ref,
        mlm_w_ref,
        # outputs
        hidden_ref, logits_ref, loss_ref,
        *, n_layers, n_heads, head_dim):
    T, H = x_emb_ref.shape
    scale = 1.0 / math.sqrt(head_dim)

    # --- embedding LayerNorm (dropout = identity in eval mode) ---
    x = _layer_norm(x_emb_ref[...].astype(jnp.float32),
                    emb_ln_g_ref[...], emb_ln_b_ref[...])

    mask2d = mask2d_ref[...]     # [T, T] f32: 1 = may attend, 0 = masked / other batch

    for l in range(n_layers):               # static unroll over layers (weights in VMEM)
        wqkv = wqkv_ref[l]                  # [H, 3H] bf16 (fused Q|K|V)
        bqkv = bqkv_ref[l]                  # [1, 3H] f32
        wo = wo_ref[l]                      # [H, H]  bf16
        bo = bo_ref[l]                      # [1, H]  f32
        w1 = w1_ref[l]                      # [H, F]  bf16
        b1 = b1_ref[l]                      # [1, F]
        w2 = w2_ref[l]                      # [F, H]  bf16
        b2 = b2_ref[l]                      # [1, H]

        # --- multi-head self-attention: one fused QKV matmul, all heads in one pass ---
        qkv = _mm(x, wqkv) + bqkv           # [T, 3H] f32
        attn = jnp.zeros((T, H), jnp.float32)
        for h in range(n_heads):            # static unroll; tiny head_dim slices
            lo = h * head_dim
            qh = qkv[:, lo:lo + head_dim] * scale          # [T, dh]
            kh = qkv[:, H + lo:H + lo + head_dim]          # [T, dh]
            vh = qkv[:, 2 * H + lo:2 * H + lo + head_dim]  # [T, dh]
            s = jax.lax.dot_general(                       # q @ k^T on full token grid
                qh.astype(jnp.bfloat16), kh.astype(jnp.bfloat16),
                (((1,), (1,)), ((), ())),
                preferred_element_type=jnp.float32)        # [T, T]
            s = jnp.where(mask2d == 0.0, NEG_INF, s)
            s = s - jnp.max(s, axis=-1, keepdims=True)
            p = jnp.exp(s)
            p = p * pl.reciprocal(jnp.sum(p, axis=-1, keepdims=True), approx=True)
            ctx = _mm(p, vh)                               # [T, dh]
            # concat_h(ctx_h) @ Wo  ==  sum_h ctx_h @ Wo[h*dh:(h+1)*dh, :]
            attn = attn + _mm(ctx, wo[lo:lo + head_dim, :])
        attn = attn + bo
        x = _layer_norm(attn + x, ln1_g_ref[l], ln1_b_ref[l])

        # --- FFN ---
        hf = _gelu(_mm(x, w1) + b1)
        hf = _mm(hf, w2) + b2
        x = _layer_norm(hf + x, ln2_g_ref[l], ln2_b_ref[l])

    hidden_ref[...] = x

    # --- MLM head (no bias) fused with cross-entropy (ignore_index = -100) ---
    logits = _mm(x, mlm_w_ref[...])                        # [T, V] f32, lane-dense V=384
    logits_ref[...] = logits

    # labels kept as a (T,1) int32 VMEM column: at T=32 the padded DMA is negligible
    # and it keeps the one-hot compare trivially vectorized.
    labels = labels_ref[...]                               # [T, 1] int32
    m = jnp.max(logits, axis=-1, keepdims=True)
    lse = m + jnp.log(jnp.sum(jnp.exp(logits - m), axis=-1, keepdims=True))
    col = jax.lax.broadcasted_iota(jnp.int32, logits.shape, 1)
    picked = jnp.sum(jnp.where(col == labels, logits, 0.0), axis=-1, keepdims=True)
    valid = labels != -100
    per_tok = jnp.where(valid, lse - picked, 0.0)          # [T, 1]
    loss_sum = jnp.sum(per_tok, axis=0, keepdims=True)     # [1, 1]
    cnt = jnp.sum(valid.astype(jnp.float32), axis=0, keepdims=True)
    # NaN if no label != -100, matching torch CrossEntropyLoss behavior.
    loss_ref[...] = loss_sum / cnt


# --------------------------------- model forward ------------------------------------

def forward(params, input_ids, attention_mask, labels):
    B, S = input_ids.shape
    T = B * S

    # TODO(synk): embedding-table gather stays in plain JAX glue (no clean static
    # BlockSpec gather for token-id dependent rows).
    x_emb = (params["word_emb"][input_ids]
             + params["pos_emb"][jnp.arange(S)][None, :, :]).reshape(T, HIDDEN)

    # Full [T, T] keep-mask on the flattened token grid: a query may attend to a key
    # only if it is in the same batch element AND attention_mask[key] == 1.  This lets
    # the kernel run attention for all batches/heads without per-batch grid steps.
    batch_idx = jnp.arange(T, dtype=jnp.int32) // S
    same_batch = batch_idx[:, None] == batch_idx[None, :]
    key_keep = attention_mask.reshape(T) > 0
    mask2d = (same_batch & key_keep[None, :]).astype(jnp.float32)

    labels_col = labels.reshape(T, 1).astype(jnp.int32)

    kernel = functools.partial(_fused_forward_kernel,
                               n_layers=N_LAYERS, n_heads=N_HEADS, head_dim=HEAD_DIM)

    operands = (
        x_emb, mask2d, labels_col,
        params["emb_ln_g"], params["emb_ln_b"],
        params["wqkv"], params["bqkv"], params["wo"], params["bo"],
        params["ln1_g"], params["ln1_b"],
        params["w1"], params["b1"], params["w2"], params["b2"],
        params["ln2_g"], params["ln2_b"],
        params["mlm_w"],
    )

    def vmem():
        return pl.BlockSpec(memory_space=pltpu.MemorySpace.VMEM)

    hidden2d, logits2d, loss11 = pl.pallas_call(
        kernel,
        out_shape=(
            jax.ShapeDtypeStruct((T, HIDDEN), jnp.float32),
            jax.ShapeDtypeStruct((T, VOCAB), jnp.float32),
            jax.ShapeDtypeStruct((1, 1), jnp.float32),
        ),
        in_specs=[vmem() for _ in operands],
        out_specs=(vmem(), vmem(), vmem()),
    )(*operands)

    loss = loss11[0, 0]
    return loss, logits2d.reshape(B, S, VOCAB), hidden2d.reshape(B, S, HIDDEN)


# ----------------------------------- parameters -------------------------------------

def init_params(key):
    """torch-style per-layer parameters (linear weights stored as [in, out])."""
    def nrm(k, shape, scale=0.02):
        return (scale * jax.random.normal(k, shape)).astype(jnp.float32)

    keys = iter(jax.random.split(key, 8 + 8 * N_LAYERS))
    params = {
        "word_emb": nrm(next(keys), (VOCAB, HIDDEN)),
        "pos_emb": nrm(next(keys), (MAX_POS, HIDDEN)),
        "emb_ln_g": jnp.ones((HIDDEN,), jnp.float32),
        "emb_ln_b": jnp.zeros((HIDDEN,), jnp.float32),
        "mlm_w": nrm(next(keys), (HIDDEN, VOCAB)),   # [in, out] = mlm_head.weight.T
        "layers": [],
    }
    for _ in range(N_LAYERS):
        params["layers"].append({
            "wq": nrm(next(keys), (HIDDEN, HIDDEN)), "bq": jnp.zeros((HIDDEN,), jnp.float32),
            "wk": nrm(next(keys), (HIDDEN, HIDDEN)), "bk": jnp.zeros((HIDDEN,), jnp.float32),
            "wv": nrm(next(keys), (HIDDEN, HIDDEN)), "bv": jnp.zeros((HIDDEN,), jnp.float32),
            "wo": nrm(next(keys), (HIDDEN, HIDDEN)), "bo": jnp.zeros((HIDDEN,), jnp.float32),
            "sa_ln_g": jnp.ones((HIDDEN,), jnp.float32),
            "sa_ln_b": jnp.zeros((HIDDEN,), jnp.float32),
            "w1": nrm(next(keys), (HIDDEN, FFN_DIM)), "b1": jnp.zeros((FFN_DIM,), jnp.float32),
            "w2": nrm(next(keys), (FFN_DIM, HIDDEN)), "b2": jnp.zeros((HIDDEN,), jnp.float32),
            "out_ln_g": jnp.ones((HIDDEN,), jnp.float32),
            "out_ln_b": jnp.zeros((HIDDEN,), jnp.float32),
        })
    return params


def pack_params(p):
    """Host-side packing: fuse QKV, stack layers on a leading axis, bf16 matmul weights."""
    L = p["layers"]

    def stack_w(name):
        return jnp.stack([layer[name] for layer in L]).astype(jnp.bfloat16)

    def stack_r(name, n):  # row vectors (biases / LN params), kept f32
        return jnp.stack([layer[name].reshape(1, n) for layer in L]).astype(jnp.float32)

    return {
        "word_emb": p["word_emb"],
        "pos_emb": p["pos_emb"],
        "emb_ln_g": p["emb_ln_g"].reshape(1, HIDDEN),
        "emb_ln_b": p["emb_ln_b"].reshape(1, HIDDEN),
        "mlm_w": p["mlm_w"].astype(jnp.bfloat16),
        "wqkv": jnp.stack([jnp.concatenate([l["wq"], l["wk"], l["wv"]], axis=1)
                           for l in L]).astype(jnp.bfloat16),        # [L, H, 3H]
        "bqkv": jnp.stack([jnp.concatenate([l["bq"], l["bk"], l["bv"]]).reshape(1, 3 * HIDDEN)
                           for l in L]).astype(jnp.float32),         # [L, 1, 3H]
        "wo": stack_w("wo"), "bo": stack_r("bo", HIDDEN),
        "ln1_g": stack_r("sa_ln_g", HIDDEN), "ln1_b": stack_r("sa_ln_b", HIDDEN),
        "w1": stack_w("w1"), "b1": stack_r("b1", FFN_DIM),
        "w2": stack_w("w2"), "b2": stack_r("b2", HIDDEN),
        "ln2_g": stack_r("out_ln_g", HIDDEN), "ln2_b": stack_r("out_ln_b", HIDDEN),
    }


# -------------------------------------- main ----------------------------------------

if __name__ == "__main__":
    B, S = 2, 16
    root = jax.random.PRNGKey(0)
    kp, kid, klab_sel, klab_val = jax.random.split(root, 4)

    params = pack_params(init_params(kp))
    input_ids = jax.random.randint(kid, (B, S), 0, VOCAB, dtype=jnp.int32)
    attention_mask = jnp.ones((B, S), jnp.float32).at[1, -4:].set(0.0)
    labels = jnp.where(jax.random.bernoulli(klab_sel, 0.25, (B, S)),
                       jax.random.randint(klab_val, (B, S), 0, VOCAB, dtype=jnp.int32),
                       jnp.int32(-100))

    loss, logits, hidden = jax.jit(forward)(params, input_ids, attention_mask, labels)
    jax.block_until_ready((loss, logits, hidden))

    assert logits.shape == (B, S, VOCAB)
    assert hidden.shape == (B, S, HIDDEN)
    assert loss.shape == ()
    assert bool(jnp.isfinite(loss))
    print("KERNEL_OK")
</pallas_src>

<mosaic_0001>
module attributes {stable_mosaic.version = 11 : i64} {
  func.func @_fused_forward_kernel(%arg0: memref<32x64xf32, #tpu.memory_space<vmem>>, %arg1: memref<32x32xf32, #tpu.memory_space<vmem>>, %arg2: memref<32x1xi32, #tpu.memory_space<vmem>>, %arg3: memref<1x64xf32, #tpu.memory_space<vmem>>, %arg4: memref<1x64xf32, #tpu.memory_space<vmem>>, %arg5: memref<2x64x192xbf16, #tpu.memory_space<vmem>>, %arg6: memref<2x1x192xf32, #tpu.memory_space<vmem>>, %arg7: memref<2x64x64xbf16, #tpu.memory_space<vmem>>, %arg8: memref<2x1x64xf32, #tpu.memory_space<vmem>>, %arg9: memref<2x1x64xf32, #tpu.memory_space<vmem>>, %arg10: memref<2x1x64xf32, #tpu.memory_space<vmem>>, %arg11: memref<2x64x128xbf16, #tpu.memory_space<vmem>>, %arg12: memref<2x1x128xf32, #tpu.memory_space<vmem>>, %arg13: memref<2x128x64xbf16, #tpu.memory_space<vmem>>, %arg14: memref<2x1x64xf32, #tpu.memory_space<vmem>>, %arg15: memref<2x1x64xf32, #tpu.memory_space<vmem>>, %arg16: memref<2x1x64xf32, #tpu.memory_space<vmem>>, %arg17: memref<64x384xbf16, #tpu.memory_space<vmem>>, %arg18: memref<32x64xf32, #tpu.memory_space<vmem>>, %arg19: memref<32x384xf32, #tpu.memory_space<vmem>>, %arg20: memref<1x1xf32, #tpu.memory_space<vmem>>) attributes {dimension_semantics = [], scalar_prefetch = 0 : i64, scratch_operands = 0 : i64, tpu.core_type = #tpu.core_type<tc>} {
    %c0 = arith.constant 0 : index
    %c0_0 = arith.constant 0 : index
    %0 = vector.load %arg0[%c0, %c0_0] : memref<32x64xf32, #tpu.memory_space<vmem>>, vector<32x64xf32>
    %c0_1 = arith.constant 0 : index
    %c0_2 = arith.constant 0 : index
    %1 = vector.load %arg3[%c0_1, %c0_2] : memref<1x64xf32, #tpu.memory_space<vmem>>, vector<1x64xf32>
    %c0_3 = arith.constant 0 : index
    %c0_4 = arith.constant 0 : index
    %2 = vector.load %arg4[%c0_3, %c0_4] : memref<1x64xf32, #tpu.memory_space<vmem>>, vector<1x64xf32>
    %cst = arith.constant dense<0.000000e+00> : vector<32xf32>
    %3 = vector.multi_reduction <add>, %0, %cst [1] : vector<32x64xf32> to vector<32xf32>
    %4 = vector.shape_cast %3 : vector<32xf32> to vector<32x1xf32>
    %cst_5 = arith.constant 6.400000e+01 : f32
    %5 = vector.broadcast %cst_5 : f32 to vector<32x1xf32>
    %6 = arith.divf %4, %5 : vector<32x1xf32>
    %7 = vector.broadcast %6 : vector<32x1xf32> to vector<32x64xf32>
    %8 = arith.subf %0, %7 : vector<32x64xf32>
    %9 = arith.mulf %8, %8 : vector<32x64xf32>
    %cst_6 = arith.constant dense<0.000000e+00> : vector<32xf32>
    %10 = vector.multi_reduction <add>, %9, %cst_6 [1] : vector<32x64xf32> to vector<32xf32>
    %11 = vector.shape_cast %10 : vector<32xf32> to vector<32x1xf32>
    %cst_7 = arith.constant 6.400000e+01 : f32
    %12 = vector.broadcast %cst_7 : f32 to vector<32x1xf32>
    %13 = arith.divf %11, %12 : vector<32x1xf32>
    %14 = vector.broadcast %6 : vector<32x1xf32> to vector<32x64xf32>
    %15 = arith.subf %0, %14 : vector<32x64xf32>
    %cst_8 = arith.constant 9.99999996E-13 : f32
    %16 = vector.broadcast %cst_8 : f32 to vector<32x1xf32>
    %17 = arith.addf %13, %16 : vector<32x1xf32>
    %18 = math.rsqrt %17 : vector<32x1xf32>
    %19 = vector.broadcast %18 : vector<32x1xf32> to vector<32x64xf32>
    %20 = arith.mulf %15, %19 : vector<32x64xf32>
    %21 = vector.broadcast %1 : vector<1x64xf32> to vector<32x64xf32>
    %22 = arith.mulf %20, %21 : vector<32x64xf32>
    %23 = vector.broadcast %2 : vector<1x64xf32> to vector<32x64xf32>
    %24 = arith.addf %22, %23 : vector<32x64xf32>
    %c0_9 = arith.constant 0 : index
    %c0_10 = arith.constant 0 : index
    %25 = vector.load %arg1[%c0_9, %c0_10] : memref<32x32xf32, #tpu.memory_space<vmem>>, vector<32x32xf32>
    %c0_11 = arith.constant 0 : index
    %c0_12 = arith.constant 0 : index
    %c0_13 = arith.constant 0 : index
    %26 = vector.load %arg5[%c0_11, %c0_12, %c0_13] : memref<2x64x192xbf16, #tpu.memory_space<vmem>>, vector<1x64x192xbf16>
    %27 = vector.shape_cast %26 : vector<1x64x192xbf16> to vector<64x192xbf16>
    %c0_14 = arith.constant 0 : index
    %c0_15 = arith.constant 0 : index
    %c0_16 = arith.constant 0 : index
    %28 = vector.load %arg6[%c0_14, %c0_15, %c0_16] : memref<2x1x192xf32, #tpu.memory_space<vmem>>, vector<1x1x192xf32>
    %29 = vector.shape_cast %28 : vector<1x1x192xf32> to vector<1x192xf32>
    %c0_17 = arith.constant 0 : index
    %c0_18 = arith.constant 0 : index
    %c0_19 = arith.constant 0 : index
    %30 = vector.load %arg7[%c0_17, %c0_18, %c0_19] : memref<2x64x64xbf16, #tpu.memory_space<vmem>>, vector<1x64x64xbf16>
    %31 = vector.shape_cast %30 : vector<1x64x64xbf16> to vector<64x64xbf16>
    %c0_20 = arith.constant 0 : index
    %c0_21 = arith.constant 0 : index
    %c0_22 = arith.constant 0 : index
    %32 = vector.load %arg8[%c0_20, %c0_21, %c0_22] : memref<2x1x64xf32, #tpu.memory_space<vmem>>, vector<1x1x64xf32>
    %33 = vector.shape_cast %32 : vector<1x1x64xf32> to vector<1x64xf32>
    %c0_23 = arith.constant 0 : index
    %c0_24 = arith.constant 0 : index
    %c0_25 = arith.constant 0 : index
    %34 = vector.load %arg11[%c0_23, %c0_24, %c0_25] : memref<2x64x128xbf16, #tpu.memory_space<vmem>>, vector<1x64x128xbf16>
    %35 = vector.shape_cast %34 : vector<1x64x128xbf16> to vector<64x128xbf16>
    %c0_26 = arith.constant 0 : index
    %c0_27 = arith.constant 0 : index
    %c0_28 = arith.constant 0 : index
    %36 = vector.load %arg12[%c0_26, %c0_27, %c0_28] : memref<2x1x128xf32, #tpu.memory_space<vmem>>, vector<1x1x128xf32>
    %37 = vector.shape_cast %36 : vector<1x1x128xf32> to vector<1x128xf32>
    %c0_29 = arith.constant 0 : index
    %c0_30 = arith.constant 0 : index
    %c0_31 = arith.constant 0 : index
    %38 = vector.load %arg13[%c0_29, %c0_30, %c0_31] : memref<2x128x64xbf16, #tpu.memory_space<vmem>>, vector<1x128x64xbf16>
    %39 = vector.shape_cast %38 : vector<1x128x64xbf16> to vector<128x64xbf16>
    %c0_32 = arith.constant 0 : index
    %c0_33 = arith.constant 0 : index
    %c0_34 = arith.constant 0 : index
    %40 = vector.load %arg14[%c0_32, %c0_33, %c0_34] : memref<2x1x64xf32, #tpu.memory_space<vmem>>, vector<1x1x64xf32>
    %41 = vector.shape_cast %40 : vector<1x1x64xf32> to vector<1x64xf32>
    %42 = arith.truncf %24 : vector<32x64xf32> to vector<32x64xbf16>
    %cst_35 = arith.constant dense<0.000000e+00> : vector<32x192xf32>
    %43 = tpu.matmul %42, %27, %cst_35 {dimension_numbers = #tpu.dot_dimension_numbers<[1], [0], [0], [1], [0, 0, 1, 1], [], []>} : vector<32x64xbf16>, vector<64x192xbf16>, vector<32x192xf32> -> vector<32x192xf32>
    %44 = vector.broadcast %29 : vector<1x192xf32> to vector<32x192xf32>
    %45 = arith.addf %43, %44 : vector<32x192xf32>
    %cst_36 = arith.constant 0.000000e+00 : f32
    %46 = vector.broadcast %cst_36 : f32 to vector<32x64xf32>
    %47 = vector.extract_strided_slice %45 {offsets = [0, 0], sizes = [32, 16], strides = [1, 1]} : vector<32x192xf32> to vector<32x16xf32>
    %cst_37 = arith.constant 2.500000e-01 : f32
    %48 = vector.broadcast %cst_37 : f32 to vector<32x16xf32>
    %49 = arith.mulf %47, %48 : vector<32x16xf32>
    %50 = vector.extract_strided_slice %45 {offsets = [0, 64], sizes = [32, 16], strides = [1, 1]} : vector<32x192xf32> to vector<32x16xf32>
    %51 = vector.extract_strided_slice %45 {offsets = [0, 128], sizes = [32, 16], strides = [1, 1]} : vector<32x192xf32> to vector<32x16xf32>
    %52 = arith.truncf %49 : vector<32x16xf32> to vector<32x16xbf16>
    %53 = arith.truncf %50 : vector<32x16xf32> to vector<32x16xbf16>
    %cst_38 = arith.constant dense<0.000000e+00> : vector<32x32xf32>
    %54 = tpu.matmul %52, %53, %cst_38 {dimension_numbers = #tpu.dot_dimension_numbers<[1], [1], [0], [0], [0, 0, 1, 0], [], []>} : vector<32x16xbf16>, vector<32x16xbf16>, vector<32x32xf32> -> vector<32x32xf32>
    %cst_39 = arith.constant 0.000000e+00 : f32
    %55 = vector.broadcast %cst_39 : f32 to vector<32x32xf32>
    %56 = arith.cmpf oeq, %25, %55 : vector<32x32xf32>
    %cst_40 = arith.constant -3.40282347E+38 : f32
    %57 = vector.broadcast %cst_40 : f32 to vector<32x32xf32>
    %58 = arith.select %56, %57, %54 : vector<32x32xi1>, vector<32x32xf32>
    %cst_41 = arith.constant dense<0xFF800000> : vector<32xf32>
    %59 = vector.multi_reduction <maximumf>, %58, %cst_41 [1] : vector<32x32xf32> to vector<32xf32>
    %60 = vector.shape_cast %59 : vector<32xf32> to vector<32x1xf32>
    %61 = vector.broadcast %60 : vector<32x1xf32> to vector<32x32xf32>
    %62 = arith.subf %58, %61 : vector<32x32xf32>
    %63 = math.exp %62 : vector<32x32xf32>
    %cst_42 = arith.constant dense<0.000000e+00> : vector<32xf32>
    %64 = vector.multi_reduction <add>, %63, %cst_42 [1] : vector<32x32xf32> to vector<32xf32>
    %65 = vector.shape_cast %64 : vector<32xf32> to vector<32x1xf32>
    %66 = tpu.reciprocal %65 {approx = true} : vector<32x1xf32> -> vector<32x1xf32>
    %67 = vector.broadcast %66 : vector<32x1xf32> to vector<32x32xf32>
    %68 = arith.mulf %63, %67 : vector<32x32xf32>
    %69 = arith.truncf %68 : vector<32x32xf32> to vector<32x32xbf16>
    %70 = arith.truncf %51 : vector<32x16xf32> to vector<32x16xbf16>
    %cst_43 = arith.constant dense<0.000000e+00> : vector<32x16xf32>
    %71 = tpu.matmul %69, %70, %cst_43 {dimension_numbers = #tpu.dot_dimension_numbers<[1], [0], [0], [1], [0, 0, 1, 1], [], []>} : vector<32x32xbf16>, vector<32x16xbf16>, vector<32x16xf32> -> vector<32x16xf32>
    %72 = vector.extract_strided_slice %31 {offsets = [0, 0], sizes = [16, 64], strides = [1, 1]} : vector<64x64xbf16> to vector<16x64xbf16>
    %73 = arith.truncf %71 : vector<32x16xf32> to vector<32x16xbf16>
    %cst_44 = arith.constant dense<0.000000e+00> : vector<32x64xf32>
    %74 = tpu.matmul %73, %72, %cst_44 {dimension_numbers = #tpu.dot_dimension_numbers<[1], [0], [0], [1], [0, 0, 1, 1], [], []>} : vector<32x16xbf16>, vector<16x64xbf16>, vector<32x64xf32> -> vector<32x64xf32>
    %75 = arith.addf %46, %74 : vector<32x64xf32>
    %76 = vector.extract_strided_slice %45 {offsets = [0, 16], sizes = [32, 16], strides = [1, 1]} : vector<32x192xf32> to vector<32x16xf32>
    %cst_45 = arith.constant 2.500000e-01 : f32
    %77 = vector.broadcast %cst_45 : f32 to vector<32x16xf32>
    %78 = arith.mulf %76, %77 : vector<32x16xf32>
    %79 = vector.extract_strided_slice %45 {offsets = [0, 80], sizes = [32, 16], strides = [1, 1]} : vector<32x192xf32> to vector<32x16xf32>
    %80 = vector.extract_strided_slice %45 {offsets = [0, 144], sizes = [32, 16], strides = [1, 1]} : vector<32x192xf32> to vector<32x16xf32>
    %81 = arith.truncf %78 : vector<32x16xf32> to vector<32x16xbf16>
    %82 = arith.truncf %79 : vector<32x16xf32> to vector<32x16xbf16>
    %cst_46 = arith.constant dense<0.000000e+00> : vector<32x32xf32>
    %83 = tpu.matmul %81, %82, %cst_46 {dimension_numbers = #tpu.dot_dimension_numbers<[1], [1], [0], [0], [0, 0, 1, 0], [], []>} : vector<32x16xbf16>, vector<32x16xbf16>, vector<32x32xf32> -> vector<32x32xf32>
    %cst_47 = arith.constant 0.000000e+00 : f32
    %84 = vector.broadcast %cst_47 : f32 to vector<32x32xf32>
    %85 = arith.cmpf oeq, %25, %84 : vector<32x32xf32>
    %cst_48 = arith.constant -3.40282347E+38 : f32
    %86 = vector.broadcast %cst_48 : f32 to vector<32x32xf32>
    %87 = arith.select %85, %86, %83 : vector<32x32xi1>, vector<32x32xf32>
    %cst_49 = arith.constant dense<0xFF800000> : vector<32xf32>
    %88 = vector.multi_reduction <maximumf>, %87, %cst_49 [1] : vector<32x32xf32> to vector<32xf32>
    %89 = vector.shape_cast %88 : vector<32xf32> to vector<32x1xf32>
    %90 = vector.broadcast %89 : vector<32x1xf32> to vector<32x32xf32>
    %91 = arith.subf %87, %90 : vector<32x32xf32>
    %92 = math.exp %91 : vector<32x32xf32>
    %cst_50 = arith.constant dense<0.000000e+00> : vector<32xf32>
    %93 = vector.multi_reduction <add>, %92, %cst_50 [1] : vector<32x32xf32> to vector<32xf32>
    %94 = vector.shape_cast %93 : vector<32xf32> to vector<32x1xf32>
    %95 = tpu.reciprocal %94 {approx = true} : vector<32x1xf32> -> vector<32x1xf32>
    %96 = vector.broadcast %95 : vector<32x1xf32> to vector<32x32xf32>
    %97 = arith.mulf %92, %96 : vector<32x32xf32>
    %98 = arith.truncf %97 : vector<32x32xf32> to vector<32x32xbf16>
    %99 = arith.truncf %80 : vector<32x16xf32> to vector<32x16xbf16>
    %cst_51 = arith.constant dense<0.000000e+00> : vector<32x16xf32>
    %100 = tpu.matmul %98, %99, %cst_51 {dimension_numbers = #tpu.dot_dimension_numbers<[1], [0], [0], [1], [0, 0, 1, 1], [], []>} : vector<32x32xbf16>, vector<32x16xbf16>, vector<32x16xf32> -> vector<32x16xf32>
    %101 = vector.extract_strided_slice %31 {offsets = [16, 0], sizes = [16, 64], strides = [1, 1]} : vector<64x64xbf16> to vector<16x64xbf16>
    %102 = arith.truncf %100 : vector<32x16xf32> to vector<32x16xbf16>
    %cst_52 = arith.constant dense<0.000000e+00> : vector<32x64xf32>
    %103 = tpu.matmul %102, %101, %cst_52 {dimension_numbers = #tpu.dot_dimension_numbers<[1], [0], [0], [1], [0, 0, 1, 1], [], []>} : vector<32x16xbf16>, vector<16x64xbf16>, vector<32x64xf32> -> vector<32x64xf32>
    %104 = arith.addf %75, %103 : vector<32x64xf32>
    %105 = vector.extract_strided_slice %45 {offsets = [0, 32], sizes = [32, 16], strides = [1, 1]} : vector<32x192xf32> to vector<32x16xf32>
    %cst_53 = arith.constant 2.500000e-01 : f32
    %106 = vector.broadcast %cst_53 : f32 to vector<32x16xf32>
    %107 = arith.mulf %105, %106 : vector<32x16xf32>
    %108 = vector.extract_strided_slice %45 {offsets = [0, 96], sizes = [32, 16], strides = [1, 1]} : vector<32x192xf32> to vector<32x16xf32>
    %109 = vector.extract_strided_slice %45 {offsets = [0, 160], sizes = [32, 16], strides = [1, 1]} : vector<32x192xf32> to vector<32x16xf32>
    %110 = arith.truncf %107 : vector<32x16xf32> to vector<32x16xbf16>
    %111 = arith.truncf %108 : vector<32x16xf32> to vector<32x16xbf16>
    %cst_54 = arith.constant dense<0.000000e+00> : vector<32x32xf32>
    %112 = tpu.matmul %110, %111, %cst_54 {dimension_numbers = #tpu.dot_dimension_numbers<[1], [1], [0], [0], [0, 0, 1, 0], [], []>} : vector<32x16xbf16>, vector<32x16xbf16>, vector<32x32xf32> -> vector<32x32xf32>
    %cst_55 = arith.constant 0.000000e+00 : f32
    %113 = vector.broadcast %cst_55 : f32 to vector<32x32xf32>
    %114 = arith.cmpf oeq, %25, %113 : vector<32x32xf32>
    %cst_56 = arith.constant -3.40282347E+38 : f32
    %115 = vector.broadcast %cst_56 : f32 to vector<32x32xf32>
    %116 = arith.select %114, %115, %112 : vector<32x32xi1>, vector<32x32xf32>
    %cst_57 = arith.constant dense<0xFF800000> : vector<32xf32>
    %117 = vector.multi_reduction <maximumf>, %116, %cst_57 [1] : vector<32x32xf32> to vector<32xf32>
    %118 = vector.shape_cast %117 : vector<32xf32> to vector<32x1xf32>
    %119 = vector.broadcast %118 : vector<32x1xf32> to vector<32x32xf32>
    %120 = arith.subf %116, %119 : vector<32x32xf32>
    %121 = math.exp %120 : vector<32x32xf32>
    %cst_58 = arith.constant dense<0.000000e+00> : vector<32xf32>
    %122 = vector.multi_reduction <add>, %121, %cst_58 [1] : vector<32x32xf32> to vector<32xf32>
    %123 = vector.shape_cast %122 : vector<32xf32> to vector<32x1xf32>
    %124 = tpu.reciprocal %123 {approx = true} : vector<32x1xf32> -> vector<32x1xf32>
    %125 = vector.broadcast %124 : vector<32x1xf32> to vector<32x32xf32>
    %126 = arith.mulf %121, %125 : vector<32x32xf32>
    %127 = arith.truncf %126 : vector<32x32xf32> to vector<32x32xbf16>
    %128 = arith.truncf %109 : vector<32x16xf32> to vector<32x16xbf16>
    %cst_59 = arith.constant dense<0.000000e+00> : vector<32x16xf32>
    %129 = tpu.matmul %127, %128, %cst_59 {dimension_numbers = #tpu.dot_dimension_numbers<[1], [0], [0], [1], [0, 0, 1, 1], [], []>} : vector<32x32xbf16>, vector<32x16xbf16>, vector<32x16xf32> -> vector<32x16xf32>
    %130 = vector.extract_strided_slice %31 {offsets = [32, 0], sizes = [16, 64], strides = [1, 1]} : vector<64x64xbf16> to vector<16x64xbf16>
    %131 = arith.truncf %129 : vector<32x16xf32> to vector<32x16xbf16>
    %cst_60 = arith.constant dense<0.000000e+00> : vector<32x64xf32>
    %132 = tpu.matmul %131, %130, %cst_60 {dimension_numbers = #tpu.dot_dimension_numbers<[1], [0], [0], [1], [0, 0, 1, 1], [], []>} : vector<32x16xbf16>, vector<16x64xbf16>, vector<32x64xf32> -> vector<32x64xf32>
    %133 = arith.addf %104, %132 : vector<32x64xf32>
    %134 = vector.extract_strided_slice %45 {offsets = [0, 48], sizes = [32, 16], strides = [1, 1]} : vector<32x192xf32> to vector<32x16xf32>
    %cst_61 = arith.constant 2.500000e-01 : f32
    %135 = vector.broadcast %cst_61 : f32 to vector<32x16xf32>
    %136 = arith.mulf %134, %135 : vector<32x16xf32>
    %137 = vector.extract_strided_slice %45 {offsets = [0, 112], sizes = [32, 16], strides = [1, 1]} : vector<32x192xf32> to vector<32x16xf32>
    %138 = vector.extract_strided_slice %45 {offsets = [0, 176], sizes = [32, 16], strides = [1, 1]} : vector<32x192xf32> to vector<32x16xf32>
    %139 = arith.truncf %136 : vector<32x16xf32> to vector<32x16xbf16>
    %140 = arith.truncf %137 : vector<32x16xf32> to vector<32x16xbf16>
    %cst_62 = arith.constant dense<0.000000e+00> : vector<32x32xf32>
    %141 = tpu.matmul %139, %140, %cst_62 {dimension_numbers = #tpu.dot_dimension_numbers<[1], [1], [0], [0], [0, 0, 1, 0], [], []>} : vector<32x16xbf16>, vector<32x16xbf16>, vector<32x32xf32> -> vector<32x32xf32>
    %cst_63 = arith.constant 0.000000e+00 : f32
    %142 = vector.broadcast %cst_63 : f32 to vector<32x32xf32>
    %143 = arith.cmpf oeq, %25, %142 : vector<32x32xf32>
    %cst_64 = arith.constant -3.40282347E+38 : f32
    %144 = vector.broadcast %cst_64 : f32 to vector<32x32xf32>
    %145 = arith.select %143, %144, %141 : vector<32x32xi1>, vector<32x32xf32>
    %cst_65 = arith.constant dense<0xFF800000> : vector<32xf32>
    %146 = vector.multi_reduction <maximumf>, %145, %cst_65 [1] : vector<32x32xf32> to vector<32xf32>
    %147 = vector.shape_cast %146 : vector<32xf32> to vector<32x1xf32>
    %148 = vector.broadcast %147 : vector<32x1xf32> to vector<32x32xf32>
    %149 = arith.subf %145, %148 : vector<32x32xf32>
    %150 = math.exp %149 : vector<32x32xf32>
    %cst_66 = arith.constant dense<0.000000e+00> : vector<32xf32>
    %151 = vector.multi_reduction <add>, %150, %cst_66 [1] : vector<32x32xf32> to vector<32xf32>
    %152 = vector.shape_cast %151 : vector<32xf32> to vector<32x1xf32>
    %153 = tpu.reciprocal %152 {approx = true} : vector<32x1xf32> -> vector<32x1xf32>
    %154 = vector.broadcast %153 : vector<32x1xf32> to vector<32x32xf32>
    %155 = arith.mulf %150, %154 : vector<32x32xf32>
    %156 = arith.truncf %155 : vector<32x32xf32> to vector<32x32xbf16>
    %157 = arith.truncf %138 : vector<32x16xf32> to vector<32x16xbf16>
    %cst_67 = arith.constant dense<0.000000e+00> : vector<32x16xf32>
    %158 = tpu.matmul %156, %157, %cst_67 {dimension_numbers = #tpu.dot_dimension_numbers<[1], [0], [0], [1], [0, 0, 1, 1], [], []>} : vector<32x32xbf16>, vector<32x16xbf16>, vector<32x16xf32> -> vector<32x16xf32>
    %159 = vector.extract_strided_slice %31 {offsets = [48, 0], sizes = [16, 64], strides = [1, 1]} : vector<64x64xbf16> to vector<16x64xbf16>
    %160 = arith.truncf %158 : vector<32x16xf32> to vector<32x16xbf16>
    %cst_68 = arith.constant dense<0.000000e+00> : vector<32x64xf32>
    %161 = tpu.matmul %160, %159, %cst_68 {dimension_numbers = #tpu.dot_dimension_numbers<[1], [0], [0], [1], [0, 0, 1, 1], [], []>} : vector<32x16xbf16>, vector<16x64xbf16>, vector<32x64xf32> -> vector<32x64xf32>
    %162 = arith.addf %133, %161 : vector<32x64xf32>
    %163 = vector.broadcast %33 : vector<1x64xf32> to vector<32x64xf32>
    %164 = arith.addf %162, %163 : vector<32x64xf32>
    %165 = arith.addf %164, %24 : vector<32x64xf32>
    %c0_69 = arith.constant 0 : index
    %c0_70 = arith.constant 0 : index
    %c0_71 = arith.constant 0 : index
    %166 = vector.load %arg9[%c0_69, %c0_70, %c0_71] : memref<2x1x64xf32, #tpu.memory_space<vmem>>, vector<1x1x64xf32>
    %167 = vector.shape_cast %166 : vector<1x1x64xf32> to vector<1x64xf32>
    %c0_72 = arith.constant 0 : index
    %c0_73 = arith.constant 0 : index
    %c0_74 = arith.constant 0 : index
    %168 = vector.load %arg10[%c0_72, %c0_73, %c0_74] : memref<2x1x64xf32, #tpu.memory_space<vmem>>, vector<1x1x64xf32>
    %169 = vector.shape_cast %168 : vector<1x1x64xf32> to vector<1x64xf32>
    %cst_75 = arith.constant dense<0.000000e+00> : vector<32xf32>
    %170 = vector.multi_reduction <add>, %165, %cst_75 [1] : vector<32x64xf32> to vector<32xf32>
    %171 = vector.shape_cast %170 : vector<32xf32> to vector<32x1xf32>
    %cst_76 = arith.constant 6.400000e+01 : f32
    %172 = vector.broadcast %cst_76 : f32 to vector<32x1xf32>
    %173 = arith.divf %171, %172 : vector<32x1xf32>
    %174 = vector.broadcast %173 : vector<32x1xf32> to vector<32x64xf32>
    %175 = arith.subf %165, %174 : vector<32x64xf32>
    %176 = arith.mulf %175, %175 : vector<32x64xf32>
    %cst_77 = arith.constant dense<0.000000e+00> : vector<32xf32>
    %177 = vector.multi_reduction <add>, %176, %cst_77 [1] : vector<32x64xf32> to vector<32xf32>
    %178 = vector.shape_cast %177 : vector<32xf32> to vector<32x1xf32>
    %cst_78 = arith.constant 6.400000e+01 : f32
    %179 = vector.broadcast %cst_78 : f32 to vector<32x1xf32>
    %180 = arith.divf %178, %179 : vector<32x1xf32>
    %181 = vector.broadcast %173 : vector<32x1xf32> to vector<32x64xf32>
    %182 = arith.subf %165, %181 : vector<32x64xf32>
    %cst_79 = arith.constant 9.99999996E-13 : f32
    %183 = vector.broadcast %cst_79 : f32 to vector<32x1xf32>
    %184 = arith.addf %180, %183 : vector<32x1xf32>
    %185 = math.rsqrt %184 : vector<32x1xf32>
    %186 = vector.broadcast %185 : vector<32x1xf32> to vector<32x64xf32>
    %187 = arith.mulf %182, %186 : vector<32x64xf32>
    %188 = vector.broadcast %167 : vector<1x64xf32> to vector<32x64xf32>
    %189 = arith.mulf %187, %188 : vector<32x64xf32>
    %190 = vector.broadcast %169 : vector<1x64xf32> to vector<32x64xf32>
    %191 = arith.addf %189, %190 : vector<32x64xf32>
    %192 = arith.truncf %191 : vector<32x64xf32> to vector<32x64xbf16>
    %cst_80 = arith.constant dense<0.000000e+00> : vector<32x128xf32>
    %193 = tpu.matmul %192, %35, %cst_80 {dimension_numbers = #tpu.dot_dimension_numbers<[1], [0], [0], [1], [0, 0, 1, 1], [], []>} : vector<32x64xbf16>, vector<64x128xbf16>, vector<32x128xf32> -> vector<32x128xf32>
    %194 = vector.broadcast %37 : vector<1x128xf32> to vector<32x128xf32>
    %195 = arith.addf %193, %194 : vector<32x128xf32>
    %cst_81 = arith.constant 5.000000e-01 : f32
    %196 = vector.broadcast %cst_81 : f32 to vector<32x128xf32>
    %197 = arith.mulf %196, %195 : vector<32x128xf32>
    %cst_82 = arith.constant 0.707106769 : f32
    %198 = vector.broadcast %cst_82 : f32 to vector<32x128xf32>
    %199 = arith.mulf %195, %198 : vector<32x128xf32>
    %200 = math.erf %199 : vector<32x128xf32>
    %cst_83 = arith.constant 1.000000e+00 : f32
    %201 = vector.broadcast %cst_83 : f32 to vector<32x128xf32>
    %202 = arith.addf %201, %200 : vector<32x128xf32>
    %203 = arith.mulf %197, %202 : vector<32x128xf32>
    %204 = arith.truncf %203 : vector<32x128xf32> to vector<32x128xbf16>
    %cst_84 = arith.constant dense<0.000000e+00> : vector<32x64xf32>
    %205 = tpu.matmul %204, %39, %cst_84 {dimension_numbers = #tpu.dot_dimension_numbers<[1], [0], [0], [1], [0, 0, 1, 1], [], []>} : vector<32x128xbf16>, vector<128x64xbf16>, vector<32x64xf32> -> vector<32x64xf32>
    %206 = vector.broadcast %41 : vector<1x64xf32> to vector<32x64xf32>
    %207 = arith.addf %205, %206 : vector<32x64xf32>
    %208 = arith.addf %207, %191 : vector<32x64xf32>
    %c0_85 = arith.constant 0 : index
    %c0_86 = arith.constant 0 : index
    %c0_87 = arith.constant 0 : index
    %209 = vector.load %arg15[%c0_85, %c0_86, %c0_87] : memref<2x1x64xf32, #tpu.memory_space<vmem>>, vector<1x1x64xf32>
    %210 = vector.shape_cast %209 : vector<1x1x64xf32> to vector<1x64xf32>
    %c0_88 = arith.constant 0 : index
    %c0_89 = arith.constant 0 : index
    %c0_90 = arith.constant 0 : index
    %211 = vector.load %arg16[%c0_88, %c0_89, %c0_90] : memref<2x1x64xf32, #tpu.memory_space<vmem>>, vector<1x1x64xf32>
    %212 = vector.shape_cast %211 : vector<1x1x64xf32> to vector<1x64xf32>
    %cst_91 = arith.constant dense<0.000000e+00> : vector<32xf32>
    %213 = vector.multi_reduction <add>, %208, %cst_91 [1] : vector<32x64xf32> to vector<32xf32>
    %214 = vector.shape_cast %213 : vector<32xf32> to vector<32x1xf32>
    %cst_92 = arith.constant 6.400000e+01 : f32
    %215 = vector.broadcast %cst_92 : f32 to vector<32x1xf32>
    %216 = arith.divf %214, %215 : vector<32x1xf32>
    %217 = vector.broadcast %216 : vector<32x1xf32> to vector<32x64xf32>
    %218 = arith.subf %208, %217 : vector<32x64xf32>
    %219 = arith.mulf %218, %218 : vector<32x64xf32>
    %cst_93 = arith.constant dense<0.000000e+00> : vector<32xf32>
    %220 = vector.multi_reduction <add>, %219, %cst_93 [1] : vector<32x64xf32> to vector<32xf32>
    %221 = vector.shape_cast %220 : vector<32xf32> to vector<32x1xf32>
    %cst_94 = arith.constant 6.400000e+01 : f32
    %222 = vector.broadcast %cst_94 : f32 to vector<32x1xf32>
    %223 = arith.divf %221, %222 : vector<32x1xf32>
    %224 = vector.broadcast %216 : vector<32x1xf32> to vector<32x64xf32>
    %225 = arith.subf %208, %224 : vector<32x64xf32>
    %cst_95 = arith.constant 9.99999996E-13 : f32
    %226 = vector.broadcast %cst_95 : f32 to vector<32x1xf32>
    %227 = arith.addf %223, %226 : vector<32x1xf32>
    %228 = math.rsqrt %227 : vector<32x1xf32>
    %229 = vector.broadcast %228 : vector<32x1xf32> to vector<32x64xf32>
    %230 = arith.mulf %225, %229 : vector<32x64xf32>
    %231 = vector.broadcast %210 : vector<1x64xf32> to vector<32x64xf32>
    %232 = arith.mulf %230, %231 : vector<32x64xf32>
    %233 = vector.broadcast %212 : vector<1x64xf32> to vector<32x64xf32>
    %234 = arith.addf %232, %233 : vector<32x64xf32>
    %c1 = arith.constant 1 : index
    %c0_96 = arith.constant 0 : index
    %c0_97 = arith.constant 0 : index
    %235 = vector.load %arg5[%c1, %c0_96, %c0_97] : memref<2x64x192xbf16, #tpu.memory_space<vmem>>, vector<1x64x192xbf16>
    %236 = vector.shape_cast %235 : vector<1x64x192xbf16> to vector<64x192xbf16>
    %c1_98 = arith.constant 1 : index
    %c0_99 = arith.constant 0 : index
    %c0_100 = arith.constant 0 : index
    %237 = vector.load %arg6[%c1_98, %c0_99, %c0_100] : memref<2x1x192xf32, #tpu.memory_space<vmem>>, vector<1x1x192xf32>
    %238 = vector.shape_cast %237 : vector<1x1x192xf32> to vector<1x192xf32>
    %c1_101 = arith.constant 1 : index
    %c0_102 = arith.constant 0 : index
    %c0_103 = arith.constant 0 : index
    %239 = vector.load %arg7[%c1_101, %c0_102, %c0_103] : memref<2x64x64xbf16, #tpu.memory_space<vmem>>, vector<1x64x64xbf16>
    %240 = vector.shape_cast %239 : vector<1x64x64xbf16> to vector<64x64xbf16>
    %c1_104 = arith.constant 1 : index
    %c0_105 = arith.constant 0 : index
    %c0_106 = arith.constant 0 : index
    %241 = vector.load %arg8[%c1_104, %c0_105, %c0_106] : memref<2x1x64xf32, #tpu.memory_space<vmem>>, vector<1x1x64xf32>
    %242 = vector.shape_cast %241 : vector<1x1x64xf32> to vector<1x64xf32>
    %c1_107 = arith.constant 1 : index
    %c0_108 = arith.constant 0 : index
    %c0_109 = arith.constant 0 : index
    %243 = vector.load %arg11[%c1_107, %c0_108, %c0_109] : memref<2x64x128xbf16, #tpu.memory_space<vmem>>, vector<1x64x128xbf16>
    %244 = vector.shape_cast %243 : vector<1x64x128xbf16> to vector<64x128xbf16>
    %c1_110 = arith.constant 1 : index
    %c0_111 = arith.constant 0 : index
    %c0_112 = arith.constant 0 : index
    %245 = vector.load %arg12[%c1_110, %c0_111, %c0_112] : memref<2x1x128xf32, #tpu.memory_space<vmem>>, vector<1x1x128xf32>
    %246 = vector.shape_cast %245 : vector<1x1x128xf32> to vector<1x128xf32>
    %c1_113 = arith.constant 1 : index
    %c0_114 = arith.constant 0 : index
    %c0_115 = arith.constant 0 : index
    %247 = vector.load %arg13[%c1_113, %c0_114, %c0_115] : memref<2x128x64xbf16, #tpu.memory_space<vmem>>, vector<1x128x64xbf16>
    %248 = vector.shape_cast %247 : vector<1x128x64xbf16> to vector<128x64xbf16>
    %c1_116 = arith.constant 1 : index
    %c0_117 = arith.constant 0 : index
    %c0_118 = arith.constant 0 : index
    %249 = vector.load %arg14[%c1_116, %c0_117, %c0_118] : memref<2x1x64xf32, #tpu.memory_space<vmem>>, vector<1x1x64xf32>
    %250 = vector.shape_cast %249 : vector<1x1x64xf32> to vector<1x64xf32>
    %251 = arith.truncf %234 : vector<32x64xf32> to vector<32x64xbf16>
    %cst_119 = arith.constant dense<0.000000e+00> : vector<32x192xf32>
    %252 = tpu.matmul %251, %236, %cst_119 {dimension_numbers = #tpu.dot_dimension_numbers<[1], [0], [0], [1], [0, 0, 1, 1], [], []>} : vector<32x64xbf16>, vector<64x192xbf16>, vector<32x192xf32> -> vector<32x192xf32>
    %253 = vector.broadcast %238 : vector<1x192xf32> to vector<32x192xf32>
    %254 = arith.addf %252, %253 : vector<32x192xf32>
    %cst_120 = arith.constant 0.000000e+00 : f32
    %255 = vector.broadcast %cst_120 : f32 to vector<32x64xf32>
    %256 = vector.extract_strided_slice %254 {offsets = [0, 0], sizes = [32, 16], strides = [1, 1]} : vector<32x192xf32> to vector<32x16xf32>
    %cst_121 = arith.constant 2.500000e-01 : f32
    %257 = vector.broadcast %cst_121 : f32 to vector<32x16xf32>
    %258 = arith.mulf %256, %257 : vector<32x16xf32>
    %259 = vector.extract_strided_slice %254 {offsets = [0, 64], sizes = [32, 16], strides = [1, 1]} : vector<32x192xf32> to vector<32x16xf32>
    %260 = vector.extract_strided_slice %254 {offsets = [0, 128], sizes = [32, 16], strides = [1, 1]} : vector<32x192xf32> to vector<32x16xf32>
    %261 = arith.truncf %258 : vector<32x16xf32> to vector<32x16xbf16>
    %262 = arith.truncf %259 : vector<32x16xf32> to vector<32x16xbf16>
    %cst_122 = arith.constant dense<0.000000e+00> : vector<32x32xf32>
    %263 = tpu.matmul %261, %262, %cst_122 {dimension_numbers = #tpu.dot_dimension_numbers<[1], [1], [0], [0], [0, 0, 1, 0], [], []>} : vector<32x16xbf16>, vector<32x16xbf16>, vector<32x32xf32> -> vector<32x32xf32>
    %cst_123 = arith.constant 0.000000e+00 : f32
    %264 = vector.broadcast %cst_123 : f32 to vector<32x32xf32>
    %265 = arith.cmpf oeq, %25, %264 : vector<32x32xf32>
    %cst_124 = arith.constant -3.40282347E+38 : f32
    %266 = vector.broadcast %cst_124 : f32 to vector<32x32xf32>
    %267 = arith.select %265, %266, %263 : vector<32x32xi1>, vector<32x32xf32>
    %cst_125 = arith.constant dense<0xFF800000> : vector<32xf32>
    %268 = vector.multi_reduction <maximumf>, %267, %cst_125 [1] : vector<32x32xf32> to vector<32xf32>
    %269 = vector.shape_cast %268 : vector<32xf32> to vector<32x1xf32>
    %270 = vector.broadcast %269 : vector<32x1xf32> to vector<32x32xf32>
    %271 = arith.subf %267, %270 : vector<32x32xf32>
    %272 = math.exp %271 : vector<32x32xf32>
    %cst_126 = arith.constant dense<0.000000e+00> : vector<32xf32>
    %273 = vector.multi_reduction <add>, %272, %cst_126 [1] : vector<32x32xf32> to vector<32xf32>
    %274 = vector.shape_cast %273 : vector<32xf32> to vector<32x1xf32>
    %275 = tpu.reciprocal %274 {approx = true} : vector<32x1xf32> -> vector<32x1xf32>
    %276 = vector.broadcast %275 : vector<32x1xf32> to vector<32x32xf32>
    %277 = arith.mulf %272, %276 : vector<32x32xf32>
    %278 = arith.truncf %277 : vector<32x32xf32> to vector<32x32xbf16>
    %279 = arith.truncf %260 : vector<32x16xf32> to vector<32x16xbf16>
    %cst_127 = arith.constant dense<0.000000e+00> : vector<32x16xf32>
    %280 = tpu.matmul %278, %279, %cst_127 {dimension_numbers = #tpu.dot_dimension_numbers<[1], [0], [0], [1], [0, 0, 1, 1], [], []>} : vector<32x32xbf16>, vector<32x16xbf16>, vector<32x16xf32> -> vector<32x16xf32>
    %281 = vector.extract_strided_slice %240 {offsets = [0, 0], sizes = [16, 64], strides = [1, 1]} : vector<64x64xbf16> to vector<16x64xbf16>
    %282 = arith.truncf %280 : vector<32x16xf32> to vector<32x16xbf16>
    %cst_128 = arith.constant dense<0.000000e+00> : vector<32x64xf32>
    %283 = tpu.matmul %282, %281, %cst_128 {dimension_numbers = #tpu.dot_dimension_numbers<[1], [0], [0], [1], [0, 0, 1, 1], [], []>} : vector<32x16xbf16>, vector<16x64xbf16>, vector<32x64xf32> -> vector<32x64xf32>
    %284 = arith.addf %255, %283 : vector<32x64xf32>
    %285 = vector.extract_strided_slice %254 {offsets = [0, 16], sizes = [32, 16], strides = [1, 1]} : vector<32x192xf32> to vector<32x16xf32>
    %cst_129 = arith.constant 2.500000e-01 : f32
    %286 = vector.broadcast %cst_129 : f32 to vector<32x16xf32>
    %287 = arith.mulf %285, %286 : vector<32x16xf32>
    %288 = vector.extract_strided_slice %254 {offsets = [0, 80], sizes = [32, 16], strides = [1, 1]} : vector<32x192xf32> to vector<32x16xf32>
    %289 = vector.extract_strided_slice %254 {offsets = [0, 144], sizes = [32, 16], strides = [1, 1]} : vector<32x192xf32> to vector<32x16xf32>
    %290 = arith.truncf %287 : vector<32x16xf32> to vector<32x16xbf16>
    %291 = arith.truncf %288 : vector<32x16xf32> to vector<32x16xbf16>
    %cst_130 = arith.constant dense<0.000000e+00> : vector<32x32xf32>
    %292 = tpu.matmul %290, %291, %cst_130 {dimension_numbers = #tpu.dot_dimension_numbers<[1], [1], [0], [0], [0, 0, 1, 0], [], []>} : vector<32x16xbf16>, vector<32x16xbf16>, vector<32x32xf32> -> vector<32x32xf32>
    %cst_131 = arith.constant 0.000000e+00 : f32
    %293 = vector.broadcast %cst_131 : f32 to vector<32x32xf32>
    %294 = arith.cmpf oeq, %25, %293 : vector<32x32xf32>
    %cst_132 = arith.constant -3.40282347E+38 : f32
    %295 = vector.broadcast %cst_132 : f32 to vector<32x32xf32>
    %296 = arith.select %294, %295, %292 : vector<32x32xi1>, vector<32x32xf32>
    %cst_133 = arith.constant dense<0xFF800000> : vector<32xf32>
    %297 = vector.multi_reduction <maximumf>, %296, %cst_133 [1] : vector<32x32xf32> to vector<32xf32>
    %298 = vector.shape_cast %297 : vector<32xf32> to vector<32x1xf32>
    %299 = vector.broadcast %298 : vector<32x1xf32> to vector<32x32xf32>
    %300 = arith.subf %296, %299 : vector<32x32xf32>
    %301 = math.exp %300 : vector<32x32xf32>
    %cst_134 = arith.constant dense<0.000000e+00> : vector<32xf32>
    %302 = vector.multi_reduction <add>, %301, %cst_134 [1] : vector<32x32xf32> to vector<32xf32>
    %303 = vector.shape_cast %302 : vector<32xf32> to vector<32x1xf32>
    %304 = tpu.reciprocal %303 {approx = true} : vector<32x1xf32> -> vector<32x1xf32>
    %305 = vector.broadcast %304 : vector<32x1xf32> to vector<32x32xf32>
    %306 = arith.mulf %301, %305 : vector<32x32xf32>
    %307 = arith.truncf %306 : vector<32x32xf32> to vector<32x32xbf16>
    %308 = arith.truncf %289 : vector<32x16xf32> to vector<32x16xbf16>
    %cst_135 = arith.constant dense<0.000000e+00> : vector<32x16xf32>
    %309 = tpu.matmul %307, %308, %cst_135 {dimension_numbers = #tpu.dot_dimension_numbers<[1], [0], [0], [1], [0, 0, 1, 1], [], []>} : vector<32x32xbf16>, vector<32x16xbf16>, vector<32x16xf32> -> vector<32x16xf32>
    %310 = vector.extract_strided_slice %240 {offsets = [16, 0], sizes = [16, 64], strides = [1, 1]} : vector<64x64xbf16> to vector<16x64xbf16>
    %311 = arith.truncf %309 : vector<32x16xf32> to vector<32x16xbf16>
    %cst_136 = arith.constant dense<0.000000e+00> : vector<32x64xf32>
    %312 = tpu.matmul %311, %310, %cst_136 {dimension_numbers = #tpu.dot_dimension_numbers<[1], [0], [0], [1], [0, 0, 1, 1], [], []>} : vector<32x16xbf16>, vector<16x64xbf16>, vector<32x64xf32> -> vector<32x64xf32>
    %313 = arith.addf %284, %312 : vector<32x64xf32>
    %314 = vector.extract_strided_slice %254 {offsets = [0, 32], sizes = [32, 16], strides = [1, 1]} : vector<32x192xf32> to vector<32x16xf32>
    %cst_137 = arith.constant 2.500000e-01 : f32
    %315 = vector.broadcast %cst_137 : f32 to vector<32x16xf32>
    %316 = arith.mulf %314, %315 : vector<32x16xf32>
    %317 = vector.extract_strided_slice %254 {offsets = [0, 96], sizes = [32, 16], strides = [1, 1]} : vector<32x192xf32> to vector<32x16xf32>
    %318 = vector.extract_strided_slice %254 {offsets = [0, 160], sizes = [32, 16], strides = [1, 1]} : vector<32x192xf32> to vector<32x16xf32>
    %319 = arith.truncf %316 : vector<32x16xf32> to vector<32x16xbf16>
    %320 = arith.truncf %317 : vector<32x16xf32> to vector<32x16xbf16>
    %cst_138 = arith.constant dense<0.000000e+00> : vector<32x32xf32>
    %321 = tpu.matmul %319, %320, %cst_138 {dimension_numbers = #tpu.dot_dimension_numbers<[1], [1], [0], [0], [0, 0, 1, 0], [], []>} : vector<32x16xbf16>, vector<32x16xbf16>, vector<32x32xf32> -> vector<32x32xf32>
    %cst_139 = arith.constant 0.000000e+00 : f32
    %322 = vector.broadcast %cst_139 : f32 to vector<32x32xf32>
    %323 = arith.cmpf oeq, %25, %322 : vector<32x32xf32>
    %cst_140 = arith.constant -3.40282347E+38 : f32
    %324 = vector.broadcast %cst_140 : f32 to vector<32x32xf32>
    %325 = arith.select %323, %324, %321 : vector<32x32xi1>, vector<32x32xf32>
    %cst_141 = arith.constant dense<0xFF800000> : vector<32xf32>
    %326 = vector.multi_reduction <maximumf>, %325, %cst_141 [1] : vector<32x32xf32> to vector<32xf32>
    %327 = vector.shape_cast %326 : vector<32xf32> to vector<32x1xf32>
    %328 = vector.broadcast %327 : vector<32x1xf32> to vector<32x32xf32>
    %329 = arith.subf %325, %328 : vector<32x32xf32>
    %330 = math.exp %329 : vector<32x32xf32>
    %cst_142 = arith.constant dense<0.000000e+00> : vector<32xf32>
    %331 = vector.multi_reduction <add>, %330, %cst_142 [1] : vector<32x32xf32> to vector<32xf32>
    %332 = vector.shape_cast %331 : vector<32xf32> to vector<32x1xf32>
    %333 = tpu.reciprocal %332 {approx = true} : vector<32x1xf32> -> vector<32x1xf32>
    %334 = vector.broadcast %333 : vector<32x1xf32> to vector<32x32xf32>
    %335 = arith.mulf %330, %334 : vector<32x32xf32>
    %336 = arith.truncf %335 : vector<32x32xf32> to vector<32x32xbf16>
    %337 = arith.truncf %318 : vector<32x16xf32> to vector<32x16xbf16>
    %cst_143 = arith.constant dense<0.000000e+00> : vector<32x16xf32>
    %338 = tpu.matmul %336, %337, %cst_143 {dimension_numbers = #tpu.dot_dimension_numbers<[1], [0], [0], [1], [0, 0, 1, 1], [], []>} : vector<32x32xbf16>, vector<32x16xbf16>, vector<32x16xf32> -> vector<32x16xf32>
    %339 = vector.extract_strided_slice %240 {offsets = [32, 0], sizes = [16, 64], strides = [1, 1]} : vector<64x64xbf16> to vector<16x64xbf16>
    %340 = arith.truncf %338 : vector<32x16xf32> to vector<32x16xbf16>
    %cst_144 = arith.constant dense<0.000000e+00> : vector<32x64xf32>
    %341 = tpu.matmul %340, %339, %cst_144 {dimension_numbers = #tpu.dot_dimension_numbers<[1], [0], [0], [1], [0, 0, 1, 1], [], []>} : vector<32x16xbf16>, vector<16x64xbf16>, vector<32x64xf32> -> vector<32x64xf32>
    %342 = arith.addf %313, %341 : vector<32x64xf32>
    %343 = vector.extract_strided_slice %254 {offsets = [0, 48], sizes = [32, 16], strides = [1, 1]} : vector<32x192xf32> to vector<32x16xf32>
    %cst_145 = arith.constant 2.500000e-01 : f32
    %344 = vector.broadcast %cst_145 : f32 to vector<32x16xf32>
    %345 = arith.mulf %343, %344 : vector<32x16xf32>
    %346 = vector.extract_strided_slice %254 {offsets = [0, 112], sizes = [32, 16], strides = [1, 1]} : vector<32x192xf32> to vector<32x16xf32>
    %347 = vector.extract_strided_slice %254 {offsets = [0, 176], sizes = [32, 16], strides = [1, 1]} : vector<32x192xf32> to vector<32x16xf32>
    %348 = arith.truncf %345 : vector<32x16xf32> to vector<32x16xbf16>
    %349 = arith.truncf %346 : vector<32x16xf32> to vector<32x16xbf16>
    %cst_146 = arith.constant dense<0.000000e+00> : vector<32x32xf32>
    %350 = tpu.matmul %348, %349, %cst_146 {dimension_numbers = #tpu.dot_dimension_numbers<[1], [1], [0], [0], [0, 0, 1, 0], [], []>} : vector<32x16xbf16>, vector<32x16xbf16>, vector<32x32xf32> -> vector<32x32xf32>
    %cst_147 = arith.constant 0.000000e+00 : f32
    %351 = vector.broadcast %cst_147 : f32 to vector<32x32xf32>
    %352 = arith.cmpf oeq, %25, %351 : vector<32x32xf32>
    %cst_148 = arith.constant -3.40282347E+38 : f32
    %353 = vector.broadcast %cst_148 : f32 to vector<32x32xf32>
    %354 = arith.select %352, %353, %350 : vector<32x32xi1>, vector<32x32xf32>
    %cst_149 = arith.constant dense<0xFF800000> : vector<32xf32>
    %355 = vector.multi_reduction <maximumf>, %354, %cst_149 [1] : vector<32x32xf32> to vector<32xf32>
    %356 = vector.shape_cast %355 : vector<32xf32> to vector<32x1xf32>
    %357 = vector.broadcast %356 : vector<32x1xf32> to vector<32x32xf32>
    %358 = arith.subf %354, %357 : vector<32x32xf32>
    %359 = math.exp %358 : vector<32x32xf32>
    %cst_150 = arith.constant dense<0.000000e+00> : vector<32xf32>
    %360 = vector.multi_reduction <add>, %359, %cst_150 [1] : vector<32x32xf32> to vector<32xf32>
    %361 = vector.shape_cast %360 : vector<32xf32> to vector<32x1xf32>
    %362 = tpu.reciprocal %361 {approx = true} : vector<32x1xf32> -> vector<32x1xf32>
    %363 = vector.broadcast %362 : vector<32x1xf32> to vector<32x32xf32>
    %364 = arith.mulf %359, %363 : vector<32x32xf32>
    %365 = arith.truncf %364 : vector<32x32xf32> to vector<32x32xbf16>
    %366 = arith.truncf %347 : vector<32x16xf32> to vector<32x16xbf16>
    %cst_151 = arith.constant dense<0.000000e+00> : vector<32x16xf32>
    %367 = tpu.matmul %365, %366, %cst_151 {dimension_numbers = #tpu.dot_dimension_numbers<[1], [0], [0], [1], [0, 0, 1, 1], [], []>} : vector<32x32xbf16>, vector<32x16xbf16>, vector<32x16xf32> -> vector<32x16xf32>
    %368 = vector.extract_strided_slice %240 {offsets = [48, 0], sizes = [16, 64], strides = [1, 1]} : vector<64x64xbf16> to vector<16x64xbf16>
    %369 = arith.truncf %367 : vector<32x16xf32> to vector<32x16xbf16>
    %cst_152 = arith.constant dense<0.000000e+00> : vector<32x64xf32>
    %370 = tpu.matmul %369, %368, %cst_152 {dimension_numbers = #tpu.dot_dimension_numbers<[1], [0], [0], [1], [0, 0, 1, 1], [], []>} : vector<32x16xbf16>, vector<16x64xbf16>, vector<32x64xf32> -> vector<32x64xf32>
    %371 = arith.addf %342, %370 : vector<32x64xf32>
    %372 = vector.broadcast %242 : vector<1x64xf32> to vector<32x64xf32>
    %373 = arith.addf %371, %372 : vector<32x64xf32>
    %374 = arith.addf %373, %234 : vector<32x64xf32>
    %c1_153 = arith.constant 1 : index
    %c0_154 = arith.constant 0 : index
    %c0_155 = arith.constant 0 : index
    %375 = vector.load %arg9[%c1_153, %c0_154, %c0_155] : memref<2x1x64xf32, #tpu.memory_space<vmem>>, vector<1x1x64xf32>
    %376 = vector.shape_cast %375 : vector<1x1x64xf32> to vector<1x64xf32>
    %c1_156 = arith.constant 1 : index
    %c0_157 = arith.constant 0 : index
    %c0_158 = arith.constant 0 : index
    %377 = vector.load %arg10[%c1_156, %c0_157, %c0_158] : memref<2x1x64xf32, #tpu.memory_space<vmem>>, vector<1x1x64xf32>
    %378 = vector.shape_cast %377 : vector<1x1x64xf32> to vector<1x64xf32>
    %cst_159 = arith.constant dense<0.000000e+00> : vector<32xf32>
    %379 = vector.multi_reduction <add>, %374, %cst_159 [1] : vector<32x64xf32> to vector<32xf32>
    %380 = vector.shape_cast %379 : vector<32xf32> to vector<32x1xf32>
    %cst_160 = arith.constant 6.400000e+01 : f32
    %381 = vector.broadcast %cst_160 : f32 to vector<32x1xf32>
    %382 = arith.divf %380, %381 : vector<32x1xf32>
    %383 = vector.broadcast %382 : vector<32x1xf32> to vector<32x64xf32>
    %384 = arith.subf %374, %383 : vector<32x64xf32>
    %385 = arith.mulf %384, %384 : vector<32x64xf32>
    %cst_161 = arith.constant dense<0.000000e+00> : vector<32xf32>
    %386 = vector.multi_reduction <add>, %385, %cst_161 [1] : vector<32x64xf32> to vector<32xf32>
    %387 = vector.shape_cast %386 : vector<32xf32> to vector<32x1xf32>
    %cst_162 = arith.constant 6.400000e+01 : f32
    %388 = vector.broadcast %cst_162 : f32 to vector<32x1xf32>
    %389 = arith.divf %387, %388 : vector<32x1xf32>
    %390 = vector.broadcast %382 : vector<32x1xf32> to vector<32x64xf32>
    %391 = arith.subf %374, %390 : vector<32x64xf32>
    %cst_163 = arith.constant 9.99999996E-13 : f32
    %392 = vector.broadcast %cst_163 : f32 to vector<32x1xf32>
    %393 = arith.addf %389, %392 : vector<32x1xf32>
    %394 = math.rsqrt %393 : vector<32x1xf32>
    %395 = vector.broadcast %394 : vector<32x1xf32> to vector<32x64xf32>
    %396 = arith.mulf %391, %395 : vector<32x64xf32>
    %397 = vector.broadcast %376 : vector<1x64xf32> to vector<32x64xf32>
    %398 = arith.mulf %396, %397 : vector<32x64xf32>
    %399 = vector.broadcast %378 : vector<1x64xf32> to vector<32x64xf32>
    %400 = arith.addf %398, %399 : vector<32x64xf32>
    %401 = arith.truncf %400 : vector<32x64xf32> to vector<32x64xbf16>
    %cst_164 = arith.constant dense<0.000000e+00> : vector<32x128xf32>
    %402 = tpu.matmul %401, %244, %cst_164 {dimension_numbers = #tpu.dot_dimension_numbers<[1], [0], [0], [1], [0, 0, 1, 1], [], []>} : vector<32x64xbf16>, vector<64x128xbf16>, vector<32x128xf32> -> vector<32x128xf32>
    %403 = vector.broadcast %246 : vector<1x128xf32> to vector<32x128xf32>
    %404 = arith.addf %402, %403 : vector<32x128xf32>
    %cst_165 = arith.constant 5.000000e-01 : f32
    %405 = vector.broadcast %cst_165 : f32 to vector<32x128xf32>
    %406 = arith.mulf %405, %404 : vector<32x128xf32>
    %cst_166 = arith.constant 0.707106769 : f32
    %407 = vector.broadcast %cst_166 : f32 to vector<32x128xf32>
    %408 = arith.mulf %404, %407 : vector<32x128xf32>
    %409 = math.erf %408 : vector<32x128xf32>
    %cst_167 = arith.constant 1.000000e+00 : f32
    %410 = vector.broadcast %cst_167 : f32 to vector<32x128xf32>
    %411 = arith.addf %410, %409 : vector<32x128xf32>
    %412 = arith.mulf %406, %411 : vector<32x128xf32>
    %413 = arith.truncf %412 : vector<32x128xf32> to vector<32x128xbf16>
    %cst_168 = arith.constant dense<0.000000e+00> : vector<32x64xf32>
    %414 = tpu.matmul %413, %248, %cst_168 {dimension_numbers = #tpu.dot_dimension_numbers<[1], [0], [0], [1], [0, 0, 1, 1], [], []>} : vector<32x128xbf16>, vector<128x64xbf16>, vector<32x64xf32> -> vector<32x64xf32>
    %415 = vector.broadcast %250 : vector<1x64xf32> to vector<32x64xf32>
    %416 = arith.addf %414, %415 : vector<32x64xf32>
    %417 = arith.addf %416, %400 : vector<32x64xf32>
    %c1_169 = arith.constant 1 : index
    %c0_170 = arith.constant 0 : index
    %c0_171 = arith.constant 0 : index
    %418 = vector.load %arg15[%c1_169, %c0_170, %c0_171] : memref<2x1x64xf32, #tpu.memory_space<vmem>>, vector<1x1x64xf32>
    %419 = vector.shape_cast %418 : vector<1x1x64xf32> to vector<1x64xf32>
    %c1_172 = arith.constant 1 : index
    %c0_173 = arith.constant 0 : index
    %c0_174 = arith.constant 0 : index
    %420 = vector.load %arg16[%c1_172, %c0_173, %c0_174] : memref<2x1x64xf32, #tpu.memory_space<vmem>>, vector<1x1x64xf32>
    %421 = vector.shape_cast %420 : vector<1x1x64xf32> to vector<1x64xf32>
    %cst_175 = arith.constant dense<0.000000e+00> : vector<32xf32>
    %422 = vector.multi_reduction <add>, %417, %cst_175 [1] : vector<32x64xf32> to vector<32xf32>
    %423 = vector.shape_cast %422 : vector<32xf32> to vector<32x1xf32>
    %cst_176 = arith.constant 6.400000e+01 : f32
    %424 = vector.broadcast %cst_176 : f32 to vector<32x1xf32>
    %425 = arith.divf %423, %424 : vector<32x1xf32>
    %426 = vector.broadcast %425 : vector<32x1xf32> to vector<32x64xf32>
    %427 = arith.subf %417, %426 : vector<32x64xf32>
    %428 = arith.mulf %427, %427 : vector<32x64xf32>
    %cst_177 = arith.constant dense<0.000000e+00> : vector<32xf32>
    %429 = vector.multi_reduction <add>, %428, %cst_177 [1] : vector<32x64xf32> to vector<32xf32>
    %430 = vector.shape_cast %429 : vector<32xf32> to vector<32x1xf32>
    %cst_178 = arith.constant 6.400000e+01 : f32
    %431 = vector.broadcast %cst_178 : f32 to vector<32x1xf32>
    %432 = arith.divf %430, %431 : vector<32x1xf32>
    %433 = vector.broadcast %425 : vector<32x1xf32> to vector<32x64xf32>
    %434 = arith.subf %417, %433 : vector<32x64xf32>
    %cst_179 = arith.constant 9.99999996E-13 : f32
    %435 = vector.broadcast %cst_179 : f32 to vector<32x1xf32>
    %436 = arith.addf %432, %435 : vector<32x1xf32>
    %437 = math.rsqrt %436 : vector<32x1xf32>
    %438 = vector.broadcast %437 : vector<32x1xf32> to vector<32x64xf32>
    %439 = arith.mulf %434, %438 : vector<32x64xf32>
    %440 = vector.broadcast %419 : vector<1x64xf32> to vector<32x64xf32>
    %441 = arith.mulf %439, %440 : vector<32x64xf32>
    %442 = vector.broadcast %421 : vector<1x64xf32> to vector<32x64xf32>
    %443 = arith.addf %441, %442 : vector<32x64xf32>
    %c0_180 = arith.constant 0 : index
    %c0_181 = arith.constant 0 : index
    %444 = vector.load %arg18[%c0_180, %c0_181] : memref<32x64xf32, #tpu.memory_space<vmem>>, vector<32x64xf32>
    tpu.vector_store %arg18[%c0_180, %c0_181], %443 {strides = array<i32>} : memref<32x64xf32, #tpu.memory_space<vmem>>, vector<32x64xf32>,
    %c0_182 = arith.constant 0 : index
    %c0_183 = arith.constant 0 : index
    %445 = vector.load %arg17[%c0_182, %c0_183] : memref<64x384xbf16, #tpu.memory_space<vmem>>, vector<64x384xbf16>
    %446 = arith.truncf %443 : vector<32x64xf32> to vector<32x64xbf16>
    %cst_184 = arith.constant dense<0.000000e+00> : vector<32x384xf32>
    %447 = tpu.matmul %446, %445, %cst_184 {dimension_numbers = #tpu.dot_dimension_numbers<[1], [0], [0], [1], [0, 0, 1, 1], [], []>} : vector<32x64xbf16>, vector<64x384xbf16>, vector<32x384xf32> -> vector<32x384xf32>
    %c0_185 = arith.constant 0 : index
    %c0_186 = arith.constant 0 : index
    %448 = vector.load %arg19[%c0_185, %c0_186] : memref<32x384xf32, #tpu.memory_space<vmem>>, vector<32x384xf32>
    tpu.vector_store %arg19[%c0_185, %c0_186], %447 {strides = array<i32>} : memref<32x384xf32, #tpu.memory_space<vmem>>, vector<32x384xf32>,
    %c0_187 = arith.constant 0 : index
    %c0_188 = arith.constant 0 : index
    %449 = vector.load %arg2[%c0_187, %c0_188] : memref<32x1xi32, #tpu.memory_space<vmem>>, vector<32x1xi32>
    %cst_189 = arith.constant dense<0xFF800000> : vector<32xf32>
    %450 = vector.multi_reduction <maximumf>, %447, %cst_189 [1] : vector<32x384xf32> to vector<32xf32>
    %451 = vector.shape_cast %450 : vector<32xf32> to vector<32x1xf32>
    %452 = vector.broadcast %451 : vector<32x1xf32> to vector<32x384xf32>
    %453 = arith.subf %447, %452 : vector<32x384xf32>
    %454 = math.exp %453 : vector<32x384xf32>
    %cst_190 = arith.constant dense<0.000000e+00> : vector<32xf32>
    %455 = vector.multi_reduction <add>, %454, %cst_190 [1] : vector<32x384xf32> to vector<32xf32>
    %456 = vector.shape_cast %455 : vector<32xf32> to vector<32x1xf32>
    %457 = math.log %456 : vector<32x1xf32>
    %458 = arith.addf %451, %457 : vector<32x1xf32>
    %459 = tpu.iota {dimensions = array<i32: 1>} : vector<32x384xi32>
    %460 = vector.broadcast %449 : vector<32x1xi32> to vector<32x384xi32>
    %461 = arith.cmpi eq, %459, %460 : vector<32x384xi32>
    %cst_191 = arith.constant 0.000000e+00 : f32
    %462 = vector.broadcast %cst_191 : f32 to vector<32x384xf32>
    %463 = arith.select %461, %447, %462 : vector<32x384xi1>, vector<32x384xf32>
    %cst_192 = arith.constant dense<0.000000e+00> : vector<32xf32>
    %464 = vector.multi_reduction <add>, %463, %cst_192 [1] : vector<32x384xf32> to vector<32xf32>
    %465 = vector.shape_cast %464 : vector<32xf32> to vector<32x1xf32>
    %c-100_i32 = arith.constant -100 : i32
    %466 = vector.broadcast %c-100_i32 : i32 to vector<32x1xi32>
    %467 = arith.cmpi ne, %449, %466 : vector<32x1xi32>
    %468 = arith.subf %458, %465 : vector<32x1xf32>
    %cst_193 = arith.constant 0.000000e+00 : f32
    %469 = vector.broadcast %cst_193 : f32 to vector<32x1xf32>
    %470 = arith.select %467, %468, %469 : vector<32x1xi1>, vector<32x1xf32>
    %cst_194 = arith.constant dense<0.000000e+00> : vector<1xf32>
    %471 = vector.multi_reduction <add>, %470, %cst_194 [0] : vector<32x1xf32> to vector<1xf32>
    %472 = vector.shape_cast %471 : vector<1xf32> to vector<1x1xf32>
    %473 = arith.extui %467 : vector<32x1xi1> to vector<32x1xi32>
    %474 = arith.sitofp %473 : vector<32x1xi32> to vector<32x1xf32>
    %cst_195 = arith.constant dense<0.000000e+00> : vector<1xf32>
    %475 = vector.multi_reduction <add>, %474, %cst_195 [0] : vector<32x1xf32> to vector<1xf32>
    %476 = vector.shape_cast %475 : vector<1xf32> to vector<1x1xf32>
    %477 = arith.divf %472, %476 : vector<1x1xf32>
    %c0_196 = arith.constant 0 : index
    %c0_197 = arith.constant 0 : index
    %478 = vector.load %arg20[%c0_196, %c0_197] : memref<1x1xf32, #tpu.memory_space<vmem>>, vector<1x1xf32>
    tpu.vector_store %arg20[%c0_196, %c0_197], %477 {strides = array<i32>} : memref<1x1xf32, #tpu.memory_space<vmem>>, vector<1x1xf32>,
    return
  }
}

</mosaic_0001>

<bundles_post_ra>
// kernel: forward.1
= control target key start
LH: loop header
LB: loop body
LE: loop exit
PB: predicated region body
PF: predicated region fallthrough
CT: control target
= control target key end

     0   :  { %s5776_s0 = inlined_call_operand.vmem [shape: f32[32,64], index: 0, kind: input, shape index: {}]   ;;  %s5777_s1 = inlined_call_operand.vmem [shape: f32[32,32], index: 1, kind: input, shape index: {}]   ;;  %s5778_s2 = inlined_call_operand.vmem [shape: s32[32,1], index: 2, kind: input, shape index: {}]   ;;  %s5779_s3 = inlined_call_operand.vmem [shape: f32[1,64], index: 3, kind: input, shape index: {}]   ;;  %s5780_s4 = inlined_call_operand.vmem [shape: f32[1,64], index: 4, kind: input, shape index: {}]   ;;  %s5781_s5 = inlined_call_operand.vmem [shape: bf16[2,64,192], index: 5, kind: input, shape index: {}]   ;;  %s5782_s6 = inlined_call_operand.vmem [shape: f32[2,1,192], index: 6, kind: input, shape index: {}]   ;;  %s5783_s7 = inlined_call_operand.vmem [shape: bf16[2,64,64], index: 7, kind: input, shape index: {}]   ;;  %s5784_s8 = inlined_call_operand.vmem [shape: f32[2,1,64], index: 8, kind: input, shape index: {}]   ;;  %s5785_s9 = inlined_call_operand.vmem [shape: f32[2,1,64], index: 9, kind: input, shape index: {}]   ;;  %s5786_s10 = inlined_call_operand.vmem [shape: f32[2,1,64], index: 10, kind: input, shape index: {}]   ;;  %s5787_s11 = inlined_call_operand.vmem [shape: bf16[2,64,128], index: 11, kind: input, shape index: {}]   ;;  %s5788_s12 = inlined_call_operand.vmem [shape: f32[2,1,128], index: 12, kind: input, shape index: {}]   ;;  %s5789_s13 = inlined_call_operand.vmem [shape: bf16[2,128,64], index: 13, kind: input, shape index: {}]   ;;  %s5790_s14 = inlined_call_operand.vmem [shape: f32[2,1,64], index: 14, kind: input, shape index: {}]   ;;  %s5791_s15 = inlined_call_operand.vmem [shape: f32[2,1,64], index: 15, kind: input, shape index: {}]   ;;  %s5792_s16 = inlined_call_operand.vmem [shape: f32[2,1,64], index: 16, kind: input, shape index: {}]   ;;  %s5793_s17 = inlined_call_operand.vmem [shape: bf16[64,384], index: 17, kind: input, shape index: {}]   ;;  %s5794_s18 = inlined_call_operand.hbm [shape: f32[32,64], index: 18, kind: output, shape index: {0}]   ;;  %s5795_s19 = inlined_call_operand.hbm [shape: f32[32,384], index: 19, kind: output, shape index: {1}]   ;;  %s5796_s20 = inlined_call_operand.hbm [shape: f32[1,1], index: 20, kind: output, shape index: {2}]  }
   0x1   :  { %5804 = sst [smem:[#allocation9_spill]] %s5776_s0 }
   0x2   :  { %5805 = sst [smem:[#allocation10_spill]] %s5777_s1 }
   0x3   :  { %5806 = sst [smem:[#allocation11_spill]] %s5778_s2 }
   0x4   :  { %5807 = sst [smem:[#allocation12_spill]] %s5779_s3 }
   0x5   :  { %5808 = sst [smem:[#allocation13_spill]] %s5780_s4 }
   0x6   :  { %26 = vsyncpa [#allocation3], 0  ;;  %s5809_s23 = sld [smem:[#allocation9_spill]]  ;;  %vm71_vm0 = vcmask 523264  }
   0xc   :  { %v65_v0 = vld [vmem:[%s5809_s23] sm:$0xff]  ;;  %v67_v1 = vld [vmem:[%s5809_s23 + $0x10] sm:$0xff]  ;;  %v66_v2 = vld [vmem:[%s5809_s23 + $0x8] sm:$0xff] }
   0xd   :  { %v72_v3 = vsel %vm71_vm0, %v65_v0, 0.0  ;;  %v78_v4 = vsel %vm71_vm0, %v67_v1, 0.0  ;;  %v68_v5 = vld [vmem:[%s5809_s23 + $0x18] sm:$0xff]  ;;  %v75_v6 = vsel %vm71_vm0, %v66_v2, 0.0 }
   0xe   :  { %73 = vadd.xlane.f32.xlu0 %v72_v3  ;;  %79 = vadd.xlane.f32.xlu1 %v78_v4  ;;  %v81_v7 = vsel %vm71_vm0, %v68_v5, 0.0 }
  0x12   :  { %76 = vadd.xlane.f32.xlu0 %v75_v6  ;;  %82 = vadd.xlane.f32.xlu1 %v81_v7 }
  0x13   :  { %27 = vsyncpa [#allocation5], 0  ;;  %v4273_v28 = vld [vmem:[%s5781_s5 + $0x4] ss:$8 sps:$4 sm:$0xff]   ;;  %v4275_v29 = vld [vmem:[%s5781_s5] ss:$8 sps:$4 sm:$0xff]  }
  0x14   :  { %252 = vmatprep.subr.bf16.mxu0 %v4273_v28  ;;  %v4276_v30 = vld [vmem:[%s5781_s5 + $0x14] ss:$8 sps:$4 sm:$0xff]   ;;  %v4278_v31 = vld [vmem:[%s5781_s5 + $0x10] ss:$8 sps:$4 sm:$0xff]   ;;  %v4279_v32 = vld [vmem:[%s5781_s5 + $0x24] ss:$8 sps:$4 sm:$0xff]  }
  0x15   :  { %253 = vmatpush1.bf16.msra.mxu0 %v4275_v29  ;;  %v4633_v33 = vmov 0   ;;  %v4281_v34 = vld [vmem:[%s5781_s5 + $0x20] ss:$8 sps:$4 sm:$0xff]   ;;  %v4282_v35 = vld [vmem:[%s5781_s5 + $0x34] ss:$8 sps:$4 sm:$0xff]   ;;  %s5810_s30 = sld [smem:[#allocation12_spill]] }
  0x16   :  { %254 = vmatprep.subr.bf16.mxu0 %v4276_v30  ;;  %284 = vmatprep.mubr.bf16.mxu0 %v4633_v33  ;;  %v4284_v36 = vld [vmem:[%s5781_s5 + $0x30] ss:$8 sps:$4 sm:$0xff]   ;;  %s5811_s1 = sld [smem:[#allocation13_spill]]  ;;  %vm319_vm1 = vcmask 130048   ;;  %s4634_s24 = smov 64   ;;  %vm389_vm3 = vcmask 261120  }
  0x17   :  { %4272 = vset.pattern.permute.xlu1 %v4633_v33  ;;  %4271 = vset.pattern.permute.xlu0 %v4633_v33  ;;  %s4635_s2 = smov 112   ;;  %s4636_s25 = smov 48  }
  0x18   :  { %s5812_s27 = sld [smem:[#allocation10_spill]]  ;;  %s5802_s22 = smov 16  }
  0x19   :  { %255 = vmatpush1.bf16.msra.mxu0 %v4278_v31  ;;  %s5800_s23 = smov 80   ;;  %s4640_s3 = smov 32  }
  0x1a   :  { %256 = vmatprep.subr.bf16.mxu0 %v4279_v32 }
  0x1b   :  { %v3649_v51 = vld [vmem:[%s5810_s30] ss:$0 sm:$0xff] }
  0x1c   :  { %v3650_v56 = vld [vmem:[%s5811_s1] ss:$0 sm:$0xff]  ;;  %s4637_s1 = smov 96  }
  0x1d   :  { %257 = vmatpush1.bf16.msra.mxu0 %v4281_v34 }
  0x1e   :  { %258 = vmatprep.subr.bf16.mxu0 %v4282_v35 }
  0x21   :  { %259 = vmatpush1.bf16.msra.mxu0 %v4284_v36 }
  0x9b   :  { %v74_v8 = vpop.xlane.xlu0 %73  ;;  %v80_v9 = vpop.xlane.xlu1 %79 }
  0x9c   :  { %v85_v10 = vmul.f32 0.015625, %v74_v8  ;;  %v87_v11 = vmul.f32 0.015625, %v80_v9  ;;  %v157_v8 = vld [vmem:[%s5782_s6] sm:$0x3] }
  0x9e   :  { %v89_v12 = vsub.f32 %v65_v0, %v85_v10  ;;  %v4770_v13 = vsub.f32 %v67_v1, %v87_v11 }
  0x9f   :  { %v77_v14 = vpop.xlane.xlu0 %76  ;;  %v83_v15 = vpop.xlane.xlu1 %82 }
  0xa0   :  { %v86_v16 = vmul.f32 0.015625, %v77_v14  ;;  %v88_v17 = vmul.f32 0.015625, %v83_v15  ;;  %v93_v18 = vmul.f32 %v89_v12, %v89_v12  ;;  %v95_v19 = vmul.f32 %v4770_v13, %v4770_v13 }
  0xa2   :  { %v90_v20 = vsub.f32 %v66_v2, %v86_v16  ;;  %v92_v21 = vsub.f32 %v68_v5, %v88_v17  ;;  %v97_v22 = vsel %vm71_vm0, %v93_v18, 0.0  ;;  %v103_v23 = vsel %vm71_vm0, %v95_v19, 0.0 }
  0xa3   :  { %98 = vadd.xlane.f32.xlu0 %v97_v22  ;;  %v196_v5 = vlaneseq }
  0xa4   :  { %v94_v24 = vmul.f32 %v90_v20, %v90_v20  ;;  %v96_v25 = vmul.f32 %v92_v21, %v92_v21 }
  0xa5   :  { %v4828_v6 = vshrl.u32 %v196_v5, 7 }
  0xa6   :  { %v100_v26 = vsel %vm71_vm0, %v94_v24, 0.0  ;;  %v106_v27 = vsel %vm71_vm0, %v96_v25, 0.0 }
  0xa7   :  { %104 = vadd.xlane.f32.xlu0 %v103_v23  ;;  %101 = vadd.xlane.f32.xlu1 %v100_v26  ;;  %v198_v7 = vsub.s32 0, %v4828_v6  ;;  %v202_v9 = vsub.s32 1, %v4828_v6 }
  0xa9   :  { %v199_v10 = vrot.slane %v157_v8, %v198_v7 }
  0xab   :  { %107 = vadd.xlane.f32.xlu1 %v106_v27 }
 0x130   :  { %v99_v37 = vpop.xlane.xlu0 %98 }
 0x131   :  { %v109_v38 = vmul.f32 0.015625, %v99_v37 }
 0x133   :  { %v113_v39 = vadd.f32 1e-12, %v109_v38 }
 0x134   :  { %v102_v40 = vpop.xlane.xlu1 %101  ;;  %v105_v41 = vpop.xlane.xlu0 %104 }
 0x135   :  { %4345 = vrsqrt.f32 %v113_v39  ;;  %v110_v42 = vmul.f32 0.015625, %v102_v40  ;;  %v111_v43 = vmul.f32 0.015625, %v105_v41 }
 0x137   :  { %v114_v44 = vadd.f32 1e-12, %v110_v42  ;;  %v115_v45 = vadd.f32 1e-12, %v111_v43 }
 0x138   :  { %v108_v46 = vpop.xlane.xlu1 %107 }
 0x139   :  { %4347 = vrsqrt.f32 %v114_v44  ;;  %v112_v47 = vmul.f32 0.015625, %v108_v46 }
 0x13a   :  { %4349 = vrsqrt.f32 %v115_v45 }
 0x13b   :  { %v116_v48 = vadd.f32 1e-12, %v112_v47 }
 0x13d   :  { %4351 = vrsqrt.f32 %v116_v48 }
 0x13f   :  { %v4346_v49 = vpop.eup %4345 }
 0x140   :  { %v121_v50 = vmul.f32 %v4346_v49, %v89_v12  ;;  %v203_v12 = vrot.slane %v157_v8, %v202_v9  ;;  %v4884_v49 = vld [vmem:[%s5812_s27] sm:$0xff] }
 0x141   :  { %vm381_vm2 = vcmp.eq.f32.partialorder %v4884_v49, 0.0 }
 0x142   :  { %v131_v54 = vmul.f32 %v3649_v51, %v121_v50  ;;  %v4889_v50 = vld [vmem:[%s5812_s27 + $0x10] sm:$0xff] }
 0x143   :  { %v4348_v52 = vpop.eup %4347  ;;  %vm383_vm4 = vcmp.eq.f32.partialorder %v4889_v50, 0.0 }
 0x144   :  { %v122_v53 = vmul.f32 %v4348_v52, %v90_v20  ;;  %v4350_v55 = vpop.eup %4349  ;;  %v4811_v59 = vadd.f32 %v3650_v56, %v131_v54 }
 0x145   :  { %v123_v61 = vmul.f32 %v4350_v55, %v4770_v13  ;;  %v4904_v55 = vld [vmem:[%s5812_s27 + $0x18] sm:$0xff] }
 0x146   :  { %v132_v57 = vmul.f32 %v3649_v51, %v122_v53  ;;  %vm384_vm6 = vcmp.eq.f32.partialorder %v4904_v55, 0.0 }
 0x147   :  { %v4352_v58 = vpop.eup %4351  ;;  %v133_v1 = vmul.f32 %v3649_v51, %v123_v61 }
 0x148   :  { %v4813_v60 = vadd.f32 %v3650_v56, %v132_v57  ;;  %v124_v62 = vmul.f32 %v4352_v58, %v92_v21 }
 0x149   :  { %v4822_v3 = vadd.f32 %v3650_v56, %v133_v1 }
 0x14a   :  { %v193_v63 = vpack.c.bf16 %v4813_v60, %v4811_v59  ;;  %v134_v0 = vmul.f32 %v3649_v51, %v124_v62  ;;  %v4894_v51 = vld [vmem:[%s5812_s27 + $0x8] sm:$0xff]  ;;  %s5815_s27 = sld [smem:[#allocation11_spill]] }
 0x14b   :  { %vm382_vm5 = vcmp.eq.f32.partialorder %v4894_v51, 0.0 }
 0x14c   :  { %3659 = vmatmul.mubr.msk.bf16.vlgmr.msra.gmra.mrb[0].mxu0 %vm71_vm0, %v193_v63  ;;  %v4820_v2 = vadd.f32 %v3650_v56, %v134_v0 }
 0x14d   :  { %294 = vmatprep.mubr.bf16.mxu0 %v4633_v33 }
 0x14e   :  { %v194_v4 = vpack.c.bf16 %v4820_v2, %v4822_v3 }
 0x154   :  { %3660 = vmatmul.mubr.msk.bf16.gmra.mrb[4].mxu0 %vm71_vm0, %v194_v4 }
 0x21f   :  { %v286_v11 = vpop.f32.mrb[0].mxu0 }
 0x220   :  { %v287_v13 = vadd.f32 %v286_v11, %v199_v10  ;;  %v288_v14 = vpop.f32.mrb[1].mxu0 }
 0x221   :  { %v290_v15 = vpop.f32.mrb[2].mxu0  ;;  %v289_v18 = vadd.f32 %v288_v14, %v203_v12 }
 0x222   :  { %v291_v16 = vadd.f32 %v290_v15, %v199_v10  ;;  %v292_v17 = vpop.f32.mrb[3].mxu0  ;;  %v305_v20 = vmul.f32 0.25, %v287_v13 }
 0x223   :  { %v293_v19 = vadd.f32 %v292_v17, %v203_v12 }
 0x224   :  { %v306_v21 = vmul.f32 0.25, %v291_v16  ;;  %v4839_v22 = vpack.c.bf16 %v291_v16, %v287_v13 }
 0x225   :  { %v4841_v23 = vpack.c.bf16 %v293_v19, %v289_v18 }
 0x226   :  { %v4843_v24 = vpack.c.bf16 %v306_v21, %v305_v20  ;;  %315 = vrot.lane.b32.xlu0 %v4839_v22, %s4634_s24 }
 0x227   :  { %v296_v25 = vpop.f32.mrb[4].mxu0 }
 0x228   :  { %v297_v26 = vadd.f32 %v296_v25, %v199_v10  ;;  %v298_v27 = vpop.f32.mrb[5].mxu0  ;;  %3967 = vmatprep.mubr.msk.bf16.mxu1 %vm319_vm1, %v4843_v24 }
 0x229   :  { %v300_v28 = vpop.f32.mrb[6].mxu0  ;;  %v299_v31 = vadd.f32 %v298_v27, %v203_v12 }
 0x22a   :  { %v301_v29 = vadd.f32 %v300_v28, %v199_v10  ;;  %497 = vrot.lane.b32.xlu0 %v4843_v24, %s4635_s2  ;;  %v302_v30 = vpop.f32.mrb[7].mxu0  ;;  %v307_v34 = vmul.f32 0.25, %v297_v26 }
 0x22b   :  { %v303_v32 = vadd.f32 %v302_v30, %v203_v12 }
 0x22c   :  { %v308_v35 = vmul.f32 0.25, %v301_v29  ;;  %v4851_v36 = vpack.c.bf16 %v301_v29, %v297_v26 }
 0x22d   :  { %v4853_v37 = vpack.c.bf16 %v303_v32, %v299_v31 }
 0x22e   :  { %v4855_v38 = vpack.c.bf16 %v308_v35, %v307_v34  ;;  %317 = vrot.lane.b32.xlu1 %v4851_v36, %s4634_s24 }
 0x232   :  { %501 = vrot.lane.b32.xlu1 %v4839_v22, %s4636_s25 }
 0x236   :  { %503 = vrot.lane.b32.xlu1 %v4851_v36, %s4636_s25 }
 0x23a   :  { %499 = vrot.lane.b32.xlu1 %v4855_v38, %s4635_s2 }
 0x298   :  { %v316_v39 = vpop.permute.xlu0 %315 }
 0x299   :  { %4239 = vmatprep.subr.msk.bf16.mxu1 %vm319_vm1, %v316_v39  ;;  %v327_v40 = vsel %vm319_vm1, %v316_v39, 0 }
 0x29a   :  { %3964 = vmatpush3.bf16.xpose.msra.mxu1 %v327_v40 }
 0x29c   :  { %v498_v41 = vpop.permute.xlu0 %497 }
 0x29d   :  { %3983 = vmatprep.mubr.msk.bf16.mxu0 %vm319_vm1, %v498_v41 }
 0x2a0   :  { %v318_v42 = vpop.permute.xlu1 %317 }
 0x2a1   :  { %4240 = vmatprep.subr.msk.bf16.mxu1 %vm319_vm1, %v318_v42  ;;  %v330_v43 = vsel %vm319_vm1, %v318_v42, 0 }
 0x2a2   :  { %3966 = vmatpush3.bf16.xpose.msra.mxu1 %v330_v43 }
 0x2a3   :  { %3971 = vmatprep.subr.bf16.mxu1 %v4841_v23 }
 0x2a4   :  { %v502_v44 = vpop.permute.xlu1 %501 }
 0x2a5   :  { %4241 = vmatprep.subr.msk.bf16.mxu0 %vm319_vm1, %v502_v44  ;;  %v512_v45 = vsel %vm319_vm1, %v502_v44, 0 }
 0x2a6   :  { %3980 = vmatpush3.bf16.xpose.msra.mxu0 %v512_v45 }
 0x2a8   :  { %v504_v46 = vpop.permute.xlu1 %503 }
 0x2a9   :  { %3968 = vmatmul.mubr.msk.bf16.vlgmr.msra.gmra.mrb[0].mxu1 %vm319_vm1, %v4855_v38  ;;  %4242 = vmatprep.subr.msk.bf16.mxu0 %vm319_vm1, %v504_v46  ;;  %v515_v47 = vsel %vm319_vm1, %v504_v46, 0 }
 0x2aa   :  { %3972 = vmatpush3.bf16.msra.mxu1 %v4841_v23 }
 0x2ab   :  { %3973 = vmatprep.subr.bf16.mxu1 %v4853_v37 }
 0x2ac   :  { %v500_v48 = vpop.permute.xlu1 %499 }
 0x2ae   :  { %3974 = vmatpush3.bf16.msra.mxu1 %v4853_v37  ;;  %3982 = vmatpush3.bf16.xpose.msra.mxu0 %v515_v47 }
 0x2b5   :  { %3984 = vmatmul.mubr.msk.bf16.vlgmr.msra.gmra.mrb[8].mxu0 %vm319_vm1, %v500_v48 }
 0x37c   :  { %v3969_v52 = vpop.f32.mrb[0].mxu1 }
 0x37d   :  { %v366_v53 = vpop.f32.mrb[1].mxu1  ;;  %v387_v61 = vsel %vm383_vm4, -3.4028235e+38, %v3969_v52 }
 0x37e   :  { %v385_v54 = vsel %vm381_vm2, -3.4028235e+38, %v366_v53  ;;  %v3970_v56 = vpop.f32.mrb[2].mxu1  ;;  %v396_v0 = vsel %vm389_vm3, %v387_v61, -inf }
 0x37f   :  { %v369_v57 = vpop.f32.mrb[3].mxu1  ;;  %v390_v58 = vsel %vm389_vm3, %v385_v54, -inf  ;;  %v388_v1 = vsel %vm384_vm6, -3.4028235e+38, %v3970_v56 }
 0x380   :  { %v386_v62 = vsel %vm382_vm5, -3.4028235e+38, %v369_v57  ;;  %391 = vmax.xlane.f32.xlu0 %v390_v58  ;;  %v399_v4 = vsel %vm389_vm3, %v388_v1, -inf }
 0x381   :  { %v393_v63 = vsel %vm389_vm3, %v386_v62, -inf }
 0x382   :  { %394 = vmax.xlane.f32.xlu1 %v393_v63 }
 0x384   :  { %397 = vmax.xlane.f32.xlu0 %v396_v0 }
 0x388   :  { %400 = vmax.xlane.f32.xlu0 %v399_v4  ;;  %v3985_v8 = vpop.f32.mrb[8].mxu0 }
 0x389   :  { %v551_v10 = vpop.f32.mrb[9].mxu0  ;;  %v568_v15 = vsel %vm383_vm4, -3.4028235e+38, %v3985_v8 }
 0x38a   :  { %v566_v11 = vsel %vm381_vm2, -3.4028235e+38, %v551_v10  ;;  %v3986_v12 = vpop.f32.mrb[10].mxu0  ;;  %v576_v19 = vsel %vm389_vm3, %v568_v15, -inf }
 0x38b   :  { %v554_v13 = vpop.f32.mrb[11].mxu0  ;;  %v570_v14 = vsel %vm389_vm3, %v566_v11, -inf  ;;  %v569_v18 = vsel %vm384_vm6, -3.4028235e+38, %v3986_v12 }
 0x38c   :  { %v4924_v16 = vsel %vm382_vm5, -3.4028235e+38, %v554_v13  ;;  %571 = vmax.xlane.f32.xlu0 %v570_v14  ;;  %v579_v20 = vsel %vm389_vm3, %v569_v18, -inf }
 0x38d   :  { %v573_v17 = vsel %vm389_vm3, %v4924_v16, -inf }
 0x38e   :  { %574 = vmax.xlane.f32.xlu1 %v573_v17 }
 0x390   :  { %577 = vmax.xlane.f32.xlu0 %v576_v19 }
 0x392   :  { %580 = vmax.xlane.f32.xlu1 %v579_v20 }
 0x40d   :  { %v392_v21 = vpop.xlane.xlu0 %391 }
 0x40e   :  { %v402_v34 = vsub.f32 %v385_v54, %v392_v21 }
 0x40f   :  { %v395_v30 = vpop.xlane.xlu1 %394 }
 0x410   :  { %v403_v40 = vsub.f32 %v386_v62, %v395_v30  ;;  %v406_v42 = vmul.f32 1.442695, %v402_v34 }
 0x411   :  { %v398_v25 = vpop.xlane.xlu0 %397 }
 0x412   :  { %v404_v26 = vsub.f32 %v387_v61, %v398_v25  ;;  %v408_v52 = vmul.f32 1.442695, %v403_v40 }
 0x414   :  { %v410_v27 = vmul.f32 1.442695, %v404_v26 }
 0x415   :  { %v401_v28 = vpop.xlane.xlu0 %400 }
 0x416   :  { %4353 = vpow2.f32 %v410_v27  ;;  %v405_v29 = vsub.f32 %v388_v1, %v401_v28 }
 0x418   :  { %v412_v31 = vmul.f32 1.442695, %v405_v29 }
 0x419   :  { %v572_v32 = vpop.xlane.xlu0 %571 }
 0x41a   :  { %4355 = vpow2.f32 %v412_v31  ;;  %v582_v45 = vsub.f32 %v566_v11, %v572_v32 }
 0x41b   :  { %v575_v35 = vpop.xlane.xlu1 %574 }
 0x41c   :  { %v586_v56 = vmul.f32 1.442695, %v582_v45  ;;  %v583_v12 = vsub.f32 %v4924_v16, %v575_v35 }
 0x41d   :  { %v578_v39 = vpop.xlane.xlu0 %577 }
 0x41e   :  { %v584_v41 = vsub.f32 %v568_v15, %v578_v39  ;;  %v588_v13 = vmul.f32 1.442695, %v583_v12 }
 0x41f   :  { %v581_v43 = vpop.xlane.xlu1 %580 }
 0x420   :  { %v4932_v44 = vpop.eup %4353  ;;  %v590_v46 = vmul.f32 1.442695, %v584_v41  ;;  %v585_v47 = vsub.f32 %v569_v18, %v581_v43 }
 0x421   :  { %v420_v48 = vsel %vm389_vm3, %v4932_v44, 0.0 }
 0x422   :  { %4357 = vpow2.f32 %v590_v46  ;;  %v592_v53 = vmul.f32 1.442695, %v585_v47  ;;  %421 = vadd.xlane.f32.xlu0 %v420_v48 }
 0x423   :  { %4359 = vpow2.f32 %v406_v42 }
 0x424   :  { %v4356_v54 = vpop.eup %4355  ;;  %4361 = vpow2.f32 %v592_v53 }
 0x425   :  { %v423_v57 = vsel %vm389_vm3, %v4356_v54, 0.0  ;;  %4363 = vpow2.f32 %v408_v52 }
 0x426   :  { %424 = vadd.xlane.f32.xlu1 %v423_v57  ;;  %4365 = vpow2.f32 %v586_v56 }
 0x427   :  { %4367 = vpow2.f32 %v588_v13 }
 0x42c   :  { %v4937_v58 = vpop.eup %4357 }
 0x42d   :  { %v4360_v61 = vpop.eup %4359  ;;  %v600_v62 = vsel %vm389_vm3, %v4937_v58, 0.0 }
 0x42e   :  { %v4941_v63 = vpop.eup %4361  ;;  %601 = vadd.xlane.f32.xlu0 %v600_v62  ;;  %v414_v4 = vsel %vm389_vm3, %v4360_v61, 0.0 }
 0x42f   :  { %v603_v0 = vsel %vm389_vm3, %v4941_v63, 0.0  ;;  %v4364_v1 = vpop.eup %4363 }
 0x430   :  { %604 = vadd.xlane.f32.xlu1 %v603_v0  ;;  %v4946_v8 = vpop.eup %4365  ;;  %v417_v10 = vsel %vm389_vm3, %v4364_v1, 0.0 }
 0x431   :  { %v594_v11 = vsel %vm389_vm3, %v4946_v8, 0.0  ;;  %v4368_v14 = vpop.eup %4367 }
 0x432   :  { %415 = vadd.xlane.f32.xlu0 %v414_v4  ;;  %v597_v15 = vsel %vm389_vm3, %v4368_v14, 0.0 }
 0x434   :  { %418 = vadd.xlane.f32.xlu1 %v417_v10  ;;  %v4286_v10 = vld [vmem:[%s5783_s7] sm:$0xff]  }
 0x436   :  { %595 = vadd.xlane.f32.xlu0 %v594_v11 }
 0x445   :  { %620 = vrot.lane.b32.xlu1 %v4853_v37, %s4635_s2 }
 0x44c   :  { %618 = vrot.lane.b32.xlu0 %v4841_v23, %s4635_s2 }
 0x450   :  { %803 = vrot.lane.b32.xlu0 %v4843_v24, %s4637_s1 }
 0x454   :  { %1054 = vrot.lane.b32.xlu0 %v4839_v22, %s5802_s22 }
 0x458   :  { %1050 = vrot.lane.b32.xlu0 %v4843_v24, %s5800_s23 }
 0x469   :  { %598 = vadd.xlane.f32.xlu1 %v597_v15 }
 0x47a   :  { %807 = vrot.lane.b32.xlu1 %v4839_v22, %s4640_s3 }
 0x47e   :  { %809 = vrot.lane.b32.xlu1 %v4851_v36, %s4640_s3 }
 0x482   :  { %805 = vrot.lane.b32.xlu1 %v4855_v38, %s4637_s1 }
 0x486   :  { %1056 = vrot.lane.b32.xlu1 %v4851_v36, %s5802_s22 }
 0x48a   :  { %1052 = vrot.lane.b32.xlu1 %v4855_v38, %s5800_s23 }
 0x4af   :  { %v422_v24 = vpop.xlane.xlu0 %421 }
 0x4b3   :  { %v425_v16 = vpop.xlane.xlu1 %424 }
 0x4b4   :  { %4369 = vrcp.f32 %v425_v16 }
 0x4bb   :  { %v602_v17 = vpop.xlane.xlu0 %601 }
 0x4bd   :  { %v605_v18 = vpop.xlane.xlu1 %604 }
 0x4be   :  { %v4370_v25 = vpop.eup %4369 }
 0x4bf   :  { %v416_v19 = vpop.xlane.xlu0 %415  ;;  %v433_v28 = vmul.f32 %v4370_v25, %v4356_v54 }
 0x4c0   :  { %4371 = vrcp.f32 %v416_v19 }
 0x4c1   :  { %4373 = vrcp.f32 %v422_v24  ;;  %v419_v22 = vpop.xlane.xlu1 %418 }
 0x4c2   :  { %4375 = vrcp.f32 %v419_v22 }
 0x4c3   :  { %v596_v20 = vpop.xlane.xlu0 %595  ;;  %4377 = vrcp.f32 %v605_v18 }
 0x4c4   :  { %4379 = vrcp.f32 %v596_v20 }
 0x4c5   :  { %v621_v34 = vpop.permute.xlu1 %620  ;;  %4381 = vrcp.f32 %v602_v17 }
 0x4c7   :  { %v619_v21 = vpop.permute.xlu0 %618 }
 0x4c8   :  { %3987 = vmatprep.subr.bf16.mxu1 %v619_v21 }
 0x4ca   :  { %v4372_v26 = vpop.eup %4371 }
 0x4cb   :  { %v4374_v27 = vpop.eup %4373  ;;  %v430_v29 = vmul.f32 %v4372_v26, %v4360_v61  ;;  %v804_v53 = vpop.permute.xlu0 %803 }
 0x4cc   :  { %v4376_v36 = vpop.eup %4375  ;;  %v432_v30 = vmul.f32 %v4374_v27, %v4932_v44 }
 0x4cd   :  { %v431_v38 = vmul.f32 %v4376_v36, %v4364_v1  ;;  %v4378_v40 = vpop.eup %4377 }
 0x4ce   :  { %v435_v32 = vpack.c.bf16 %v433_v28, %v432_v30  ;;  %v4380_v41 = vpop.eup %4379  ;;  %v613_v44 = vmul.f32 %v4378_v40, %v4941_v63 }
 0x4cf   :  { %v434_v31 = vpack.c.bf16 %v431_v38, %v430_v29  ;;  %v4382_v42 = vpop.eup %4381  ;;  %v610_v45 = vmul.f32 %v4380_v41, %v4946_v8  ;;  %v1055_v61 = vpop.permute.xlu0 %1054  ;;  %v4285_v8 = vld [vmem:[%s5783_s7 + $0x8] sm:$0xff]  }
 0x4d0   :  { %v612_v47 = vmul.f32 %v4382_v42, %v4937_v58  ;;  %v1065_v63 = vsel %vm319_vm1, %v1055_v61, 0  ;;  %3995 = vmatprep.subr.bf16.mxu0 %v4285_v8 }
 0x4d1   :  { %3975 = vmatprep.mubr.msk.bf16.mxu1 %vm389_vm3, %v434_v31  ;;  %3996 = vmatpush3.bf16.msra.mxu0 %v4285_v8 }
 0x4d2   :  { %3976 = vmatmul.mubr.msk.bf16.vlgmr.msra.gmra.mrb[4].mxu1 %vm389_vm3, %v435_v32  ;;  %v615_v52 = vpack.c.bf16 %v613_v44, %v612_v47  ;;  %4001 = vmatprep.subr.bf16.mxu0 %v4286_v10 }
 0x4d3   :  { %3988 = vmatpush3.bf16.msra.mxu1 %v619_v21  ;;  %v1051_v62 = vpop.permute.xlu0 %1050 }
 0x4d4   :  { %3989 = vmatprep.subr.bf16.mxu1 %v621_v34 }
 0x4d7   :  { %3990 = vmatpush3.bf16.msra.mxu1 %v621_v34 }
 0x4f6   :  { %v599_v35 = vpop.xlane.xlu1 %598 }
 0x4f7   :  { %4383 = vrcp.f32 %v599_v35 }
 0x4fa   :  { %v808_v39 = vpop.permute.xlu1 %807 }
 0x4fb   :  { %4243 = vmatprep.subr.msk.bf16.mxu1 %vm319_vm1, %v808_v39  ;;  %v818_v54 = vsel %vm319_vm1, %v808_v39, 0 }
 0x4fe   :  { %v810_v56 = vpop.permute.xlu1 %809 }
 0x4ff   :  { %v821_v57 = vsel %vm319_vm1, %v810_v56, 0 }
 0x501   :  { %v4384_v43 = vpop.eup %4383 }
 0x502   :  { %v611_v46 = vmul.f32 %v4384_v43, %v4368_v14  ;;  %v806_v58 = vpop.permute.xlu1 %805 }
 0x504   :  { %v614_v48 = vpack.c.bf16 %v611_v46, %v610_v45 }
 0x506   :  { %3991 = vmatprep.mubr.msk.bf16.mxu1 %vm389_vm3, %v614_v48  ;;  %v1057_v0 = vpop.permute.xlu1 %1056 }
 0x507   :  { %3992 = vmatmul.mubr.msk.bf16.vlgmr.msra.gmra.mrb[8].mxu1 %vm389_vm3, %v615_v52  ;;  %v1068_v1 = vsel %vm319_vm1, %v1057_v0, 0 }
 0x508   :  { %4008 = vmatpush3.bf16.xpose.msra.mxu1 %v818_v54  ;;  %4011 = vmatprep.mubr.msk.bf16.mxu1 %vm319_vm1, %v804_v53 }
 0x509   :  { %4244 = vmatprep.subr.msk.bf16.mxu1 %vm319_vm1, %v810_v56 }
 0x50a   :  { %v1053_v4 = vpop.permute.xlu1 %1052 }
 0x510   :  { %4010 = vmatpush3.bf16.xpose.msra.mxu1 %v821_v57 }
 0x511   :  { %4245 = vmatprep.subr.msk.bf16.mxu1 %vm319_vm1, %v1055_v61 }
 0x517   :  { %4012 = vmatmul.mubr.msk.bf16.vlgmr.msra.gmra.mrb[12].mxu1 %vm319_vm1, %v806_v58 }
 0x518   :  { %4030 = vmatpush3.bf16.xpose.msra.mxu1 %v1065_v63  ;;  %4033 = vmatprep.mubr.msk.bf16.mxu1 %vm319_vm1, %v1051_v62 }
 0x519   :  { %4246 = vmatprep.subr.msk.bf16.mxu1 %vm319_vm1, %v1057_v0 }
 0x520   :  { %4032 = vmatpush3.bf16.xpose.msra.mxu1 %v1068_v1 }
 0x527   :  { %4034 = vmatmul.mubr.msk.bf16.vlgmr.msra.gmra.mrb[16].mxu1 %vm319_vm1, %v1053_v4 }
 0x5a5   :  { %v3977_v11 = vpop.f32.mrb[4].mxu1 }
 0x5a6   :  { %v478_v12 = vpop.f32.mrb[5].mxu1 }
 0x5a7   :  { %v3978_v13 = vpop.f32.mrb[6].mxu1 }
 0x5a8   :  { %v494_v14 = vpack.c.bf16 %v3978_v13, %v3977_v11  ;;  %v481_v15 = vpop.f32.mrb[7].mxu1 }
 0x5a9   :  { %v493_v24 = vpack.c.bf16 %v481_v15, %v478_v12 }
 0x5da   :  { %v3993_v16 = vpop.f32.mrb[8].mxu1 }
 0x5db   :  { %v664_v17 = vpop.f32.mrb[9].mxu1 }
 0x5dc   :  { %v3994_v18 = vpop.f32.mrb[10].mxu1 }
 0x5dd   :  { %v680_v19 = vpack.c.bf16 %v3994_v18, %v3993_v16  ;;  %v667_v22 = vpop.f32.mrb[11].mxu1 }
 0x5de   :  { %v679_v20 = vpack.c.bf16 %v667_v22, %v664_v17 }
 0x5e0   :  { %3997 = vmatprep.mubr.msk.bf16.mxu0 %vm319_vm1, %v679_v20 }
 0x5e1   :  { %3998 = vmatmul.mubr.msk.bf16.vlgmr.msra.gmra.mrb[12].mxu0 %vm319_vm1, %v680_v19 }
 0x5e2   :  { %4003 = vmatprep.mubr.msk.bf16.mxu0 %vm319_vm1, %v493_v24  ;;  %4002 = vmatpush3.bf16.msra.mxu0 %v4286_v10 }
 0x5ea   :  { %v4013_v21 = vpop.f32.mrb[12].mxu1 }
 0x5eb   :  { %v857_v25 = vpop.f32.mrb[13].mxu1  ;;  %v874_v29 = vsel %vm383_vm4, -3.4028235e+38, %v4013_v21 }
 0x5ec   :  { %v872_v26 = vsel %vm381_vm2, -3.4028235e+38, %v857_v25  ;;  %v4014_v27 = vpop.f32.mrb[14].mxu1  ;;  %v882_v31 = vsel %vm389_vm3, %v874_v29, -inf }
 0x5ed   :  { %v860_v36 = vpop.f32.mrb[15].mxu1  ;;  %4004 = vmatmul.mubr.msk.bf16.vlgmr.msra.gmra.mrb[12].mxu0 %vm319_vm1, %v494_v14  ;;  %v876_v28 = vsel %vm389_vm3, %v872_v26, -inf  ;;  %v875_v32 = vsel %vm384_vm6, -3.4028235e+38, %v4014_v27 }
 0x5ee   :  { %v873_v38 = vsel %vm382_vm5, -3.4028235e+38, %v860_v36  ;;  %877 = vmax.xlane.f32.xlu0 %v876_v28  ;;  %v885_v34 = vsel %vm389_vm3, %v875_v32, -inf }
 0x5ef   :  { %v879_v30 = vsel %vm389_vm3, %v873_v38, -inf }
 0x5f0   :  { %880 = vmax.xlane.f32.xlu1 %v879_v30 }
 0x5f2   :  { %883 = vmax.xlane.f32.xlu0 %v882_v31 }
 0x5f6   :  { %886 = vmax.xlane.f32.xlu0 %v885_v34 }
 0x5fa   :  { %v4035_v35 = vpop.f32.mrb[16].mxu1 }
 0x5fb   :  { %v1104_v39 = vpop.f32.mrb[17].mxu1  ;;  %v1121_v12 = vsel %vm383_vm4, -3.4028235e+38, %v4035_v35 }
 0x5fc   :  { %v4036_v40 = vpop.f32.mrb[18].mxu1  ;;  %v1119_v13 = vsel %vm381_vm2, -3.4028235e+38, %v1104_v39  ;;  %v1129_v14 = vsel %vm389_vm3, %v1121_v12, -inf }
 0x5fd   :  { %v1107_v41 = vpop.f32.mrb[19].mxu1  ;;  %v1123_v15 = vsel %vm389_vm3, %v1119_v13, -inf  ;;  %v1122_v24 = vsel %vm384_vm6, -3.4028235e+38, %v4036_v40 }
 0x5fe   :  { %v1120_v10 = vsel %vm382_vm5, -3.4028235e+38, %v1107_v41  ;;  %v1132_v16 = vsel %vm389_vm3, %v1122_v24, -inf }
 0x5ff   :  { %v1126_v11 = vsel %vm389_vm3, %v1120_v10, -inf }
 0x67b   :  { %v878_v42 = vpop.xlane.xlu0 %877 }
 0x67c   :  { %v888_v43 = vsub.f32 %v872_v26, %v878_v42 }
 0x67d   :  { %v881_v44 = vpop.xlane.xlu1 %880 }
 0x67e   :  { %v892_v47 = vmul.f32 1.442695, %v888_v43  ;;  %v889_v48 = vsub.f32 %v873_v38, %v881_v44 }
 0x67f   :  { %v884_v45 = vpop.xlane.xlu0 %883 }
 0x680   :  { %v890_v46 = vsub.f32 %v874_v29, %v884_v45  ;;  %v894_v56 = vmul.f32 1.442695, %v889_v48 }
 0x682   :  { %v896_v52 = vmul.f32 1.442695, %v890_v46 }
 0x683   :  { %v887_v53 = vpop.xlane.xlu0 %886 }
 0x684   :  { %4385 = vpow2.f32 %v896_v52  ;;  %v891_v54 = vsub.f32 %v875_v32, %v887_v53 }
 0x685   :  { %4387 = vpow2.f32 %v892_v47 }
 0x686   :  { %v898_v57 = vmul.f32 1.442695, %v891_v54 }
 0x688   :  { %4389 = vpow2.f32 %v898_v57 }
 0x689   :  { %4391 = vpow2.f32 %v894_v56 }
 0x68e   :  { %v4386_v61 = vpop.eup %4385 }
 0x68f   :  { %v906_v58 = vsel %vm389_vm3, %v4386_v61, 0.0  ;;  %v4388_v62 = vpop.eup %4387 }
 0x690   :  { %907 = vadd.xlane.f32.xlu0 %v906_v58  ;;  %v900_v0 = vsel %vm389_vm3, %v4388_v62, 0.0 }
 0x692   :  { %v4390_v63 = vpop.eup %4389 }
 0x693   :  { %v909_v1 = vsel %vm389_vm3, %v4390_v63, 0.0  ;;  %v4392_v4 = vpop.eup %4391 }
 0x694   :  { %901 = vadd.xlane.f32.xlu0 %v900_v0  ;;  %910 = vadd.xlane.f32.xlu1 %v909_v1  ;;  %v903_v8 = vsel %vm389_vm3, %v4392_v4, 0.0 }
 0x698   :  { %904 = vadd.xlane.f32.xlu1 %v903_v8 }
 0x6a9   :  { %924 = vrot.lane.b32.xlu1 %v4853_v37, %s4637_s1 }
 0x6aa   :  { %922 = vrot.lane.b32.xlu0 %v4841_v23, %s4637_s1 }
 0x6c9   :  { %1127 = vmax.xlane.f32.xlu0 %v1126_v11 }
 0x6cd   :  { %1130 = vmax.xlane.f32.xlu0 %v1129_v14  ;;  %1124 = vmax.xlane.f32.xlu1 %v1123_v15 }
 0x6d1   :  { %1133 = vmax.xlane.f32.xlu1 %v1132_v16 }
 0x71d   :  { %v908_v17 = vpop.xlane.xlu0 %907 }
 0x721   :  { %v911_v18 = vpop.xlane.xlu1 %910  ;;  %v902_v19 = vpop.xlane.xlu0 %901 }
 0x722   :  { %4393 = vrcp.f32 %v911_v18 }
 0x723   :  { %4395 = vrcp.f32 %v902_v19 }
 0x724   :  { %4397 = vrcp.f32 %v908_v17 }
 0x725   :  { %v905_v22 = vpop.xlane.xlu1 %904  ;;  %v923_v20 = vpop.permute.xlu0 %922 }
 0x726   :  { %4399 = vrcp.f32 %v905_v22  ;;  %4015 = vmatprep.subr.bf16.mxu0 %v923_v20 }
 0x727   :  { %4016 = vmatpush3.bf16.msra.mxu0 %v923_v20 }
 0x729   :  { %v925_v21 = vpop.permute.xlu1 %924 }
 0x72a   :  { %4017 = vmatprep.subr.bf16.mxu0 %v925_v21 }
 0x72b   :  { %4018 = vmatpush3.bf16.msra.mxu0 %v925_v21 }
 0x72c   :  { %v4394_v25 = vpop.eup %4393 }
 0x72d   :  { %v4396_v26 = vpop.eup %4395  ;;  %v919_v28 = vmul.f32 %v4394_v25, %v4390_v63  ;;  %v4287_v63 = vld [vmem:[%s5783_s7 + $0x10] sm:$0xff]   ;;  %v4288_v25 = vld [vmem:[%s5783_s7 + $0x18] sm:$0xff]  }
 0x72e   :  { %v4398_v27 = vpop.eup %4397  ;;  %v916_v29 = vmul.f32 %v4396_v26, %v4388_v62  ;;  %4023 = vmatprep.subr.bf16.mxu0 %v4287_v63 }
 0x72f   :  { %v918_v30 = vmul.f32 %v4398_v27, %v4386_v61 }
 0x730   :  { %v4400_v36 = vpop.eup %4399 }
 0x731   :  { %v917_v38 = vmul.f32 %v4400_v36, %v4392_v4  ;;  %v921_v32 = vpack.c.bf16 %v919_v28, %v918_v30 }
 0x733   :  { %v920_v31 = vpack.c.bf16 %v917_v38, %v916_v29 }
 0x735   :  { %4019 = vmatprep.mubr.msk.bf16.mxu0 %vm389_vm3, %v920_v31 }
 0x736   :  { %4020 = vmatmul.mubr.msk.bf16.vlgmr.msra.gmra.mrb[16].mxu0 %vm389_vm3, %v921_v32  ;;  %v3689_v32 = vld [vmem:[%s5784_s8] ss:$0 sm:$0xff] }
 0x737   :  { %4024 = vmatpush3.bf16.msra.mxu0 %v4287_v63 }
 0x756   :  { %v1128_v34 = vpop.xlane.xlu0 %1127 }
 0x757   :  { %v1136_v42 = vsub.f32 %v1120_v10, %v1128_v34 }
 0x759   :  { %v1141_v47 = vmul.f32 1.442695, %v1136_v42 }
 0x75a   :  { %v1125_v35 = vpop.xlane.xlu1 %1124  ;;  %v1131_v39 = vpop.xlane.xlu0 %1130 }
 0x75b   :  { %v1135_v40 = vsub.f32 %v1119_v13, %v1125_v35  ;;  %v1137_v41 = vsub.f32 %v1121_v12, %v1131_v39 }
 0x75d   :  { %v1143_v43 = vmul.f32 1.442695, %v1137_v41  ;;  %v1139_v44 = vmul.f32 1.442695, %v1135_v40 }
 0x75e   :  { %v1134_v45 = vpop.xlane.xlu1 %1133 }
 0x75f   :  { %v1138_v46 = vsub.f32 %v1122_v24, %v1134_v45  ;;  %4401 = vpow2.f32 %v1143_v43 }
 0x760   :  { %4403 = vpow2.f32 %v1139_v44 }
 0x761   :  { %v1145_v48 = vmul.f32 1.442695, %v1138_v46 }
 0x763   :  { %4405 = vpow2.f32 %v1145_v48 }
 0x764   :  { %4407 = vpow2.f32 %v1141_v47 }
 0x769   :  { %v4402_v52 = vpop.eup %4401 }
 0x76a   :  { %v1153_v53 = vsel %vm389_vm3, %v4402_v52, 0.0  ;;  %v4404_v54 = vpop.eup %4403 }
 0x76b   :  { %1154 = vadd.xlane.f32.xlu0 %v1153_v53  ;;  %v1147_v58 = vsel %vm389_vm3, %v4404_v54, 0.0 }
 0x76d   :  { %v4406_v56 = vpop.eup %4405 }
 0x76e   :  { %v1156_v57 = vsel %vm389_vm3, %v4406_v56, 0.0  ;;  %v4408_v61 = vpop.eup %4407 }
 0x76f   :  { %1157 = vadd.xlane.f32.xlu1 %v1156_v57  ;;  %1148 = vadd.xlane.f32.xlu0 %v1147_v58  ;;  %v1150_v62 = vsel %vm389_vm3, %v4408_v61, 0.0 }
 0x773   :  { %1151 = vadd.xlane.f32.xlu1 %v1150_v62 }
 0x784   :  { %1171 = vrot.lane.b32.xlu1 %v4853_v37, %s5800_s23 }
 0x785   :  { %1169 = vrot.lane.b32.xlu0 %v4841_v23, %s5800_s23 }
 0x7f8   :  { %v1155_v0 = vpop.xlane.xlu0 %1154 }
 0x7fc   :  { %v1158_v1 = vpop.xlane.xlu1 %1157  ;;  %v1149_v4 = vpop.xlane.xlu0 %1148 }
 0x7fd   :  { %4409 = vrcp.f32 %v1149_v4 }
 0x800   :  { %v1152_v8 = vpop.xlane.xlu1 %1151  ;;  %v1170_v10 = vpop.permute.xlu0 %1169 }
 0x801   :  { %4411 = vrcp.f32 %v1152_v8  ;;  %4037 = vmatprep.subr.bf16.mxu0 %v1170_v10 }
 0x802   :  { %4413 = vrcp.f32 %v1158_v1 }
 0x803   :  { %4415 = vrcp.f32 %v1155_v0 }
 0x804   :  { %v1172_v20 = vpop.permute.xlu1 %1171 }
 0x807   :  { %v4410_v11 = vpop.eup %4409 }
 0x808   :  { %v1163_v16 = vmul.f32 %v4410_v11, %v4404_v54 }
 0x809   :  { %v4021_v12 = vpop.f32.mrb[16].mxu0 }
 0x80a   :  { %v968_v13 = vpop.f32.mrb[17].mxu0 }
 0x80b   :  { %v4412_v14 = vpop.eup %4411  ;;  %v4022_v15 = vpop.f32.mrb[18].mxu0 }
 0x80c   :  { %v984_v24 = vpack.c.bf16 %v4022_v15, %v4021_v12  ;;  %v971_v37 = vpop.f32.mrb[19].mxu0  ;;  %v1164_v17 = vmul.f32 %v4412_v14, %v4408_v61  ;;  %v4414_v19 = vpop.eup %4413 }
 0x80d   :  { %v983_v23 = vpack.c.bf16 %v971_v37, %v968_v13  ;;  %v4416_v22 = vpop.eup %4415  ;;  %v1166_v21 = vmul.f32 %v4414_v19, %v4406_v56  ;;  %v4289_v37 = vld [vmem:[%s5787_s11] sm:$0xff]   ;;  %v4294_v19 = vld [vmem:[%s5789_s13 + $0x8] sm:$0xff]  }
 0x80e   :  { %v1167_v18 = vpack.c.bf16 %v1164_v17, %v1163_v16  ;;  %v1165_v26 = vmul.f32 %v4416_v22, %v4402_v52  ;;  %4051 = vmatprep.subr.bf16.mxu1 %v4289_v37  ;;  %v4290_v16 = vld [vmem:[%s5787_s11 + $0x8] sm:$0xff]   ;;  %v4291_v17 = vld [vmem:[%s5787_s11 + $0x10] sm:$0xff]  }
 0x80f   :  { %4025 = vmatprep.mubr.msk.bf16.mxu0 %vm319_vm1, %v983_v23  ;;  %4052 = vmatpush3.bf16.msra.mxu1 %v4289_v37  ;;  %v4292_v23 = vld [vmem:[%s5787_s11 + $0x18] sm:$0xff]  }
 0x810   :  { %4026 = vmatmul.mubr.msk.bf16.vlgmr.msra.gmra.mrb[12].mxu0 %vm319_vm1, %v984_v24  ;;  %v1168_v27 = vpack.c.bf16 %v1166_v21, %v1165_v26  ;;  %4053 = vmatprep.subr.bf16.mxu1 %v4290_v16 }
 0x811   :  { %4038 = vmatpush3.bf16.msra.mxu0 %v1170_v10  ;;  %4041 = vmatprep.mubr.msk.bf16.mxu0 %vm389_vm3, %v1167_v18  ;;  %v4293_v18 = vld [vmem:[%s5789_s13] sm:$0xff]  }
 0x812   :  { %4039 = vmatprep.subr.bf16.mxu0 %v1172_v20 }
 0x813   :  { %4054 = vmatpush3.bf16.msra.mxu1 %v4290_v16 }
 0x814   :  { %4055 = vmatprep.subr.bf16.mxu1 %v4291_v17 }
 0x815   :  { %4040 = vmatpush3.bf16.msra.mxu0 %v1172_v20 }
 0x816   :  { %4045 = vmatprep.subr.bf16.mxu0 %v4288_v25 }
 0x817   :  { %4056 = vmatpush3.bf16.msra.mxu1 %v4291_v17 }
 0x818   :  { %4042 = vmatmul.mubr.msk.bf16.vlgmr.msra.gmra.mrb[20].mxu0 %vm389_vm3, %v1168_v27  ;;  %4057 = vmatprep.subr.bf16.mxu1 %v4292_v23 }
 0x819   :  { %4046 = vmatpush3.bf16.msra.mxu0 %v4288_v25 }
 0x81a   :  { %4063 = vmatprep.subr.bf16.mxu0 %v4293_v18 }
 0x81b   :  { %4058 = vmatpush3.bf16.msra.mxu1 %v4292_v23 }
 0x8eb   :  { %v4043_v36 = vpop.f32.mrb[20].mxu0 }
 0x8ec   :  { %v1215_v28 = vpop.f32.mrb[21].mxu0 }
 0x8ed   :  { %v4044_v29 = vpop.f32.mrb[22].mxu0 }
 0x8ee   :  { %v1231_v38 = vpack.c.bf16 %v4044_v29, %v4043_v36  ;;  %v1218_v30 = vpop.f32.mrb[23].mxu0 }
 0x8ef   :  { %v1230_v31 = vpack.c.bf16 %v1218_v30, %v1215_v28 }
 0x8f1   :  { %4047 = vmatprep.mubr.msk.bf16.mxu0 %vm319_vm1, %v1230_v31 }
 0x8f2   :  { %4048 = vmatmul.mubr.msk.bf16.vlgmr.msra.gmra.mrb[12].mxu0 %vm319_vm1, %v1231_v38 }
 0x8f3   :  { %4064 = vmatpush3.bf16.msra.mxu0 %v4293_v18 }
 0x8f4   :  { %4065 = vmatprep.subr.bf16.mxu0 %v4294_v19 }
 0x8f7   :  { %4066 = vmatpush3.bf16.msra.mxu0 %v4294_v19 }
 0x9c5   :  { %v4049_v34 = vpop.f32.mrb[12].mxu0 }
 0x9c6   :  { %v1278_v35 = vpop.f32.mrb[13].mxu0  ;;  %v1305_v43 = vadd.f32 %v4049_v34, %v3689_v32  ;;  %v3690_v34 = vld [vmem:[%s5785_s9] ss:$0 sm:$0xff] }
 0x9c7   :  { %v1303_v39 = vadd.f32 %v3689_v32, %v1278_v35  ;;  %v4050_v40 = vpop.f32.mrb[14].mxu0 }
 0x9c8   :  { %v1306_v41 = vadd.f32 %v4050_v40, %v3689_v32  ;;  %v1281_v42 = vpop.f32.mrb[15].mxu0  ;;  %v1309_v53 = vadd.f32 %v1305_v43, %v4822_v3 }
 0x9c9   :  { %v1304_v44 = vadd.f32 %v3689_v32, %v1281_v42  ;;  %v1307_v45 = vadd.f32 %v1303_v39, %v4811_v59  ;;  %v3691_v42 = vld [vmem:[%s5786_s10] ss:$0 sm:$0xff] }
 0x9ca   :  { %v1310_v48 = vadd.f32 %v1306_v41, %v4820_v2  ;;  %v1319_v56 = vsel %vm71_vm0, %v1309_v53, 0.0 }
 0x9cb   :  { %v1313_v46 = vsel %vm71_vm0, %v1307_v45, 0.0  ;;  %v1308_v47 = vadd.f32 %v1304_v44, %v4813_v60 }
 0x9cc   :  { %1314 = vadd.xlane.f32.xlu1 %v1313_v46  ;;  %v1322_v54 = vsel %vm71_vm0, %v1310_v48, 0.0 }
 0x9cd   :  { %v1316_v52 = vsel %vm71_vm0, %v1308_v47, 0.0 }
 0x9ce   :  { %1317 = vadd.xlane.f32.xlu0 %v1316_v52 }
 0x9d0   :  { %1323 = vadd.xlane.f32.xlu1 %v1322_v54 }
 0x9d2   :  { %1320 = vadd.xlane.f32.xlu0 %v1319_v56 }
 0xa59   :  { %v1315_v57 = vpop.xlane.xlu1 %1314 }
 0xa5a   :  { %v1325_v59 = vmul.f32 0.015625, %v1315_v57 }
 0xa5b   :  { %v1318_v61 = vpop.xlane.xlu0 %1317 }
 0xa5c   :  { %v1329_v58 = vsub.f32 %v1307_v45, %v1325_v59  ;;  %v1326_v62 = vmul.f32 0.015625, %v1318_v61 }
 0xa5d   :  { %v1324_v60 = vpop.xlane.xlu1 %1323 }
 0xa5e   :  { %v1330_v63 = vsub.f32 %v1308_v47, %v1326_v62  ;;  %v1328_v2 = vmul.f32 0.015625, %v1324_v60  ;;  %v1333_v0 = vmul.f32 %v1329_v58, %v1329_v58  ;;  %v4296_v62 = vld [vmem:[%s5789_s13 + $0x18] sm:$0xff]   ;;  %v4297_v60 = vld [vmem:[%s5789_s13 + $0x20] sm:$0xff]  }
 0xa5f   :  { %v1321_v1 = vpop.xlane.xlu0 %1320 }
 0xa60   :  { %v1332_v4 = vsub.f32 %v1310_v48, %v1328_v2  ;;  %v1327_v8 = vmul.f32 0.015625, %v1321_v1  ;;  %v1337_v3 = vsel %vm71_vm0, %v1333_v0, 0.0  ;;  %v1334_v10 = vmul.f32 %v1330_v63, %v1330_v63  ;;  %v4299_v2 = vld [vmem:[%s5789_s13 + $0x30] sm:$0xff]   ;;  %v4300_v0 = vld [vmem:[%s5789_s13 + $0x38] sm:$0xff]   ;;  %v3692_v1 = vld [vmem:[%s5788_s12] ss:$0 sm:$0xff] }
 0xa61   :  { %1338 = vadd.xlane.f32.xlu0 %v1337_v3 }
 0xa62   :  { %v1331_v11 = vsub.f32 %v1309_v53, %v1327_v8  ;;  %v1340_v12 = vsel %vm71_vm0, %v1334_v10, 0.0  ;;  %v1336_v13 = vmul.f32 %v1332_v4, %v1332_v4 }
 0xa63   :  { %1341 = vadd.xlane.f32.xlu1 %v1340_v12 }
 0xa64   :  { %v1335_v14 = vmul.f32 %v1331_v11, %v1331_v11  ;;  %v1346_v15 = vsel %vm71_vm0, %v1336_v13, 0.0 }
 0xa66   :  { %v1343_v24 = vsel %vm71_vm0, %v1335_v14, 0.0 }
 0xa67   :  { %1347 = vadd.xlane.f32.xlu1 %v1346_v15  ;;  %1344 = vadd.xlane.f32.xlu0 %v1343_v24 }
 0xaee   :  { %v1339_v22 = vpop.xlane.xlu0 %1338 }
 0xaef   :  { %v1349_v20 = vmul.f32 0.015625, %v1339_v22 }
 0xaf0   :  { %v1342_v21 = vpop.xlane.xlu1 %1341 }
 0xaf1   :  { %v1353_v25 = vadd.f32 1e-12, %v1349_v20  ;;  %v1350_v26 = vmul.f32 0.015625, %v1342_v21 }
 0xaf3   :  { %4417 = vrsqrt.f32 %v1353_v25  ;;  %v1354_v27 = vadd.f32 1e-12, %v1350_v26 }
 0xaf4   :  { %v1348_v36 = vpop.xlane.xlu1 %1347  ;;  %v1345_v28 = vpop.xlane.xlu0 %1344 }
 0xaf5   :  { %4419 = vrsqrt.f32 %v1354_v27  ;;  %v1352_v29 = vmul.f32 0.015625, %v1348_v36  ;;  %v1351_v38 = vmul.f32 0.015625, %v1345_v28 }
 0xaf7   :  { %v1356_v30 = vadd.f32 1e-12, %v1352_v29  ;;  %v1355_v31 = vadd.f32 1e-12, %v1351_v38 }
 0xaf9   :  { %4421 = vrsqrt.f32 %v1356_v30 }
 0xafa   :  { %4423 = vrsqrt.f32 %v1355_v31 }
 0xafd   :  { %v4418_v32 = vpop.eup %4417 }
 0xafe   :  { %v1361_v35 = vmul.f32 %v4418_v32, %v1329_v58  ;;  %v4295_v58 = vld [vmem:[%s5789_s13 + $0x10] sm:$0xff]  }
 0xaff   :  { %v4420_v39 = vpop.eup %4419  ;;  %4067 = vmatprep.subr.bf16.mxu0 %v4295_v58 }
 0xb00   :  { %v1362_v40 = vmul.f32 %v4420_v39, %v1330_v63  ;;  %v1371_v41 = vmul.f32 %v3690_v34, %v1361_v35  ;;  %4068 = vmatpush3.bf16.msra.mxu0 %v4295_v58  ;;  %v4298_v63 = vld [vmem:[%s5789_s13 + $0x28] sm:$0xff]   ;;  %v3699_v35 = vld [vmem:[%s5790_s14] ss:$0 sm:$0xff] }
 0xb01   :  { %4069 = vmatprep.subr.bf16.mxu0 %v4296_v62 }
 0xb02   :  { %v1372_v43 = vmul.f32 %v3690_v34, %v1362_v40  ;;  %v5096_v47 = vadd.f32 %v3691_v42, %v1371_v41 }
 0xb03   :  { %v4422_v44 = vpop.eup %4421 }
 0xb04   :  { %v4424_v45 = vpop.eup %4423  ;;  %v1364_v46 = vmul.f32 %v4422_v44, %v1332_v4  ;;  %v5098_v48 = vadd.f32 %v3691_v42, %v1372_v43  ;;  %4070 = vmatpush3.bf16.msra.mxu0 %v4296_v62 }
 0xb05   :  { %v1363_v52 = vmul.f32 %v4424_v45, %v1331_v11  ;;  %4071 = vmatprep.subr.bf16.mxu0 %v4297_v60 }
 0xb06   :  { %v1385_v53 = vpack.c.bf16 %v5098_v48, %v5096_v47  ;;  %v1374_v54 = vmul.f32 %v3690_v34, %v1364_v46 }
 0xb07   :  { %v1373_v56 = vmul.f32 %v3690_v34, %v1363_v52 }
 0xb08   :  { %4059 = vmatprep.mubr.msk.bf16.mxu1 %vm71_vm0, %v1385_v53  ;;  %v5103_v57 = vadd.f32 %v3691_v42, %v1374_v54  ;;  %4072 = vmatpush3.bf16.msra.mxu0 %v4297_v60 }
 0xb09   :  { %v5105_v59 = vadd.f32 %v3691_v42, %v1373_v56  ;;  %4073 = vmatprep.subr.bf16.mxu0 %v4298_v63 }
 0xb0b   :  { %v1386_v61 = vpack.c.bf16 %v5103_v57, %v5105_v59 }
 0xb0c   :  { %4074 = vmatpush3.bf16.msra.mxu0 %v4298_v63 }
 0xb0d   :  { %4060 = vmatmul.mubr.msk.bf16.vlgmr.msra.gmra.mrb[20].mxu1 %vm71_vm0, %v1386_v61  ;;  %4075 = vmatprep.subr.bf16.mxu0 %v4299_v2 }
 0xb0e   :  { %1818 = vmatprep.mubr.bf16.mxu1 %v4633_v33 }
 0xb10   :  { %4076 = vmatpush3.bf16.msra.mxu0 %v4299_v2 }
 0xb11   :  { %4077 = vmatprep.subr.bf16.mxu0 %v4300_v0 }
 0xb14   :  { %4078 = vmatpush3.bf16.msra.mxu0 %v4300_v0 }
 0xbe0   :  { %v4061_v4 = vpop.f32.mrb[20].mxu1 }
 0xbe1   :  { %v1466_v8 = vadd.f32 %v4061_v4, %v3692_v1  ;;  %v1457_v3 = vpop.f32.mrb[21].mxu1 }
 0xbe2   :  { %v1458_v10 = vadd.f32 %v3692_v1, %v1457_v3  ;;  %v4062_v11 = vpop.f32.mrb[22].mxu1 }
 0xbe3   :  { %v1478_v12 = vmul.f32 0.70710677, %v1466_v8  ;;  %v1469_v13 = vadd.f32 %v4062_v11, %v3692_v1  ;;  %v1460_v14 = vpop.f32.mrb[23].mxu1  ;;  %v1474_v21 = vmul.f32 0.5, %v1466_v8 }
 0xbe4   :  { %v1476_v15 = vmul.f32 0.70710677, %v1458_v10  ;;  %v1461_v24 = vadd.f32 %v3692_v1, %v1460_v14  ;;  %v1472_v27 = vmul.f32 0.5, %v1458_v10 }
 0xbe5   :  { %4425 = verf.f32 %v1478_v12  ;;  %v1479_v37 = vmul.f32 0.70710677, %v1469_v13  ;;  %v1475_v25 = vmul.f32 0.5, %v1469_v13 }
 0xbe6   :  { %4427 = verf.f32 %v1476_v15  ;;  %v1477_v16 = vmul.f32 0.70710677, %v1461_v24  ;;  %v1473_v36 = vmul.f32 0.5, %v1461_v24 }
 0xbe7   :  { %4429 = verf.f32 %v1479_v37 }
 0xbe8   :  { %4431 = verf.f32 %v1477_v16 }
 0xbef   :  { %v4426_v17 = vpop.eup %4425 }
 0xbf0   :  { %v4428_v23 = vpop.eup %4427  ;;  %v1486_v18 = vadd.f32 1.0, %v4426_v17  ;;  %v4303_v17 = vld [vmem:[%s5781_s5 + $0x44] ss:$8 sps:$4 sm:$0xff]  }
 0xbf1   :  { %v4430_v19 = vpop.eup %4429  ;;  %v1484_v22 = vadd.f32 1.0, %v4428_v23  ;;  %v4301_v23 = vld [vmem:[%s5781_s5 + $0x40] ss:$8 sps:$4 sm:$0xff]   ;;  %1786 = vmatprep.subr.bf16.mxu1 %v4303_v17 }
 0xbf2   :  { %v4432_v20 = vpop.eup %4431  ;;  %v1487_v26 = vadd.f32 1.0, %v4430_v19  ;;  %v1490_v29 = vmul.f32 %v1486_v18, %v1474_v21  ;;  %1787 = vmatpush1.bf16.msra.mxu1 %v4301_v23  ;;  %v4306_v18 = vld [vmem:[%s5781_s5 + $0x54] ss:$8 sps:$4 sm:$0xff]   ;;  %v4304_v19 = vld [vmem:[%s5781_s5 + $0x50] ss:$8 sps:$4 sm:$0xff]  }
 0xbf3   :  { %v1485_v28 = vadd.f32 1.0, %v4432_v20  ;;  %v1488_v30 = vmul.f32 %v1484_v22, %v1472_v27  ;;  %1788 = vmatprep.subr.bf16.mxu1 %v4306_v18  ;;  %v4309_v22 = vld [vmem:[%s5781_s5 + $0x64] ss:$8 sps:$4 sm:$0xff]   ;;  %v4307_v20 = vld [vmem:[%s5781_s5 + $0x60] ss:$8 sps:$4 sm:$0xff]  }
 0xbf4   :  { %v1491_v38 = vmul.f32 %v1487_v26, %v1475_v25  ;;  %v4312_v21 = vld [vmem:[%s5781_s5 + $0x74] ss:$8 sps:$4 sm:$0xff]   ;;  %v4310_v25 = vld [vmem:[%s5781_s5 + $0x70] ss:$8 sps:$4 sm:$0xff]  }
 0xbf5   :  { %v1489_v31 = vmul.f32 %v1485_v28, %v1473_v36 }
 0xbf6   :  { %v1493_v32 = vpack.c.bf16 %v1491_v38, %v1490_v29  ;;  %1789 = vmatpush1.bf16.msra.mxu1 %v4304_v19 }
 0xbf7   :  { %v1492_v34 = vpack.c.bf16 %v1489_v31, %v1488_v30  ;;  %1790 = vmatprep.subr.bf16.mxu1 %v4309_v22 }
 0xbf9   :  { %4079 = vmatprep.mubr.bf16.mxu0 %v1492_v34 }
 0xbfa   :  { %4080 = vmatmul.mubr.bf16.vlgmr.msra.gmra.mrb[24].mxu0 %v1493_v32  ;;  %1791 = vmatpush1.bf16.msra.mxu1 %v4307_v20 }
 0xbfb   :  { %1792 = vmatprep.subr.bf16.mxu1 %v4312_v21 }
 0xbfe   :  { %1793 = vmatpush1.bf16.msra.mxu1 %v4310_v25 }
 0xccd   :  { %v4081_v39 = vpop.f32.mrb[24].mxu0 }
 0xcce   :  { %v1582_v40 = vpop.f32.mrb[25].mxu0  ;;  %v1591_v41 = vadd.f32 %v4081_v39, %v3699_v35 }
 0xccf   :  { %v1583_v42 = vadd.f32 %v3699_v35, %v1582_v40  ;;  %v4082_v43 = vpop.f32.mrb[26].mxu0 }
 0xcd0   :  { %v1585_v44 = vpop.f32.mrb[27].mxu0  ;;  %v1594_v45 = vadd.f32 %v4082_v43, %v3699_v35  ;;  %v1599_v56 = vadd.f32 %v1591_v41, %v5105_v59  ;;  %v3708_v41 = vld [vmem:[%s5791_s15] ss:$0 sm:$0xff] }
 0xcd1   :  { %v1586_v46 = vadd.f32 %v3699_v35, %v1585_v44  ;;  %v1597_v52 = vadd.f32 %v1583_v42, %v5096_v47 }
 0xcd2   :  { %v1600_v58 = vadd.f32 %v1594_v45, %v5103_v57  ;;  %v1609_v62 = vsel %vm71_vm0, %v1599_v56, 0.0 }
 0xcd3   :  { %v1603_v53 = vsel %vm71_vm0, %v1597_v52, 0.0  ;;  %v1598_v54 = vadd.f32 %v1586_v46, %v5098_v48 }
 0xcd4   :  { %1604 = vadd.xlane.f32.xlu0 %v1603_v53  ;;  %v1612_v60 = vsel %vm71_vm0, %v1600_v58, 0.0 }
 0xcd5   :  { %v1606_v61 = vsel %vm71_vm0, %v1598_v54, 0.0 }
 0xcd6   :  { %1607 = vadd.xlane.f32.xlu1 %v1606_v61 }
 0xcd8   :  { %1610 = vadd.xlane.f32.xlu0 %v1609_v62 }
 0xcda   :  { %1613 = vadd.xlane.f32.xlu1 %v1612_v60 }
 0xd61   :  { %v1605_v63 = vpop.xlane.xlu0 %1604 }
 0xd62   :  { %v1615_v47 = vmul.f32 0.015625, %v1605_v63 }
 0xd63   :  { %v1608_v2 = vpop.xlane.xlu1 %1607 }
 0xd64   :  { %v1619_v0 = vsub.f32 %v1597_v52, %v1615_v47  ;;  %v1616_v1 = vmul.f32 0.015625, %v1608_v2  ;;  %v3709_v52 = vld [vmem:[%s5792_s16] ss:$0 sm:$0xff] }
 0xd65   :  { %v1611_v48 = vpop.xlane.xlu0 %1610 }
 0xd66   :  { %v1620_v4 = vsub.f32 %v1598_v54, %v1616_v1  ;;  %v1617_v59 = vmul.f32 0.015625, %v1611_v48  ;;  %v1623_v8 = vmul.f32 %v1619_v0, %v1619_v0  ;;  %v3718_v48 = vld [vmem:[%s5782_s6 + $0x2] sm:$0x3]  ;;  %s5813_s6 = smov 16  }
 0xd67   :  { %v1614_v3 = vpop.xlane.xlu1 %1613 }
 0xd68   :  { %v1621_v10 = vsub.f32 %v1599_v56, %v1617_v59  ;;  %v1618_v11 = vmul.f32 0.015625, %v1614_v3  ;;  %v1627_v57 = vsel %vm71_vm0, %v1623_v8, 0.0  ;;  %v1624_v12 = vmul.f32 %v1620_v4, %v1620_v4 }
 0xd69   :  { %1628 = vadd.xlane.f32.xlu0 %v1627_v57  ;;  %v1737_v8 = vrot.slane %v3718_v48, %v202_v9 }
 0xd6a   :  { %v1622_v13 = vsub.f32 %v1600_v58, %v1618_v11  ;;  %v1630_v14 = vsel %vm71_vm0, %v1624_v12, 0.0  ;;  %v1625_v15 = vmul.f32 %v1621_v10, %v1621_v10 }
 0xd6b   :  { %1631 = vadd.xlane.f32.xlu1 %v1630_v14 }
 0xd6c   :  { %v1633_v24 = vsel %vm71_vm0, %v1625_v15, 0.0  ;;  %v1626_v37 = vmul.f32 %v1622_v13, %v1622_v13 }
 0xd6d   :  { %1634 = vadd.xlane.f32.xlu0 %v1633_v24 }
 0xd6e   :  { %v1636_v16 = vsel %vm71_vm0, %v1626_v37, 0.0 }
 0xd6f   :  { %1637 = vadd.xlane.f32.xlu1 %v1636_v16 }
 0xdf6   :  { %v1629_v26 = vpop.xlane.xlu0 %1628 }
 0xdf7   :  { %v1639_v27 = vmul.f32 0.015625, %v1629_v26 }
 0xdf8   :  { %v1632_v36 = vpop.xlane.xlu1 %1631 }
 0xdf9   :  { %v1643_v28 = vadd.f32 1e-12, %v1639_v27  ;;  %v1640_v29 = vmul.f32 0.015625, %v1632_v36 }
 0xdfa   :  { %v1635_v38 = vpop.xlane.xlu0 %1634 }
 0xdfb   :  { %4433 = vrsqrt.f32 %v1643_v28  ;;  %v1644_v30 = vadd.f32 1e-12, %v1640_v29  ;;  %v1641_v31 = vmul.f32 0.015625, %v1635_v38 }
 0xdfc   :  { %v1638_v32 = vpop.xlane.xlu1 %1637 }
 0xdfd   :  { %4435 = vrsqrt.f32 %v1644_v30  ;;  %v1645_v34 = vadd.f32 1e-12, %v1641_v31  ;;  %v1642_v35 = vmul.f32 0.015625, %v1638_v32 }
 0xdff   :  { %4437 = vrsqrt.f32 %v1645_v34  ;;  %v1646_v39 = vadd.f32 1e-12, %v1642_v35 }
 0xe01   :  { %4439 = vrsqrt.f32 %v1646_v39 }
 0xe05   :  { %v4434_v40 = vpop.eup %4433 }
 0xe06   :  { %v1651_v42 = vmul.f32 %v4434_v40, %v1619_v0 }
 0xe07   :  { %v4436_v43 = vpop.eup %4435 }
 0xe08   :  { %v1661_v44 = vmul.f32 %v3708_v41, %v1651_v42  ;;  %v1652_v45 = vmul.f32 %v4436_v43, %v1620_v4  ;;  %v1733_v4 = vrot.slane %v3718_v48, %v198_v7 }
 0xe09   :  { %v4438_v46 = vpop.eup %4437 }
 0xe0a   :  { %v1662_v53 = vmul.f32 %v3708_v41, %v1652_v45  ;;  %v1653_v56 = vmul.f32 %v4438_v46, %v1621_v10  ;;  %v5177_v58 = vadd.f32 %v3709_v52, %v1661_v44 }
 0xe0b   :  { %v4440_v54 = vpop.eup %4439 }
 0xe0c   :  { %v1654_v61 = vmul.f32 %v4440_v54, %v1622_v13  ;;  %v5179_v62 = vadd.f32 %v3709_v52, %v1662_v53  ;;  %v1663_v47 = vmul.f32 %v3708_v41, %v1653_v56 }
 0xe0e   :  { %v1727_v60 = vpack.c.bf16 %v5179_v62, %v5177_v58  ;;  %v1664_v63 = vmul.f32 %v3708_v41, %v1654_v61  ;;  %v5187_v0 = vadd.f32 %v3709_v52, %v1663_v47 }
 0xe10   :  { %3762 = vmatmul.mubr.msk.bf16.vlgmr.msra.gmra.mrb[24].mxu1 %vm71_vm0, %v1727_v60  ;;  %v5185_v2 = vadd.f32 %v3709_v52, %v1664_v63 }
 0xe11   :  { %1828 = vmatprep.mubr.bf16.mxu1 %v4633_v33 }
 0xe12   :  { %v1728_v1 = vpack.c.bf16 %v5185_v2, %v5187_v0 }
 0xe18   :  { %3763 = vmatmul.mubr.msk.bf16.gmra.mrb[28].mxu1 %vm71_vm0, %v1728_v1 }
 0xee3   :  { %v1820_v59 = vpop.f32.mrb[24].mxu1 }
 0xee4   :  { %v1821_v3 = vadd.f32 %v1820_v59, %v1733_v4  ;;  %v1822_v10 = vpop.f32.mrb[25].mxu1 }
 0xee5   :  { %v1824_v11 = vpop.f32.mrb[26].mxu1  ;;  %v1823_v13 = vadd.f32 %v1822_v10, %v1737_v8 }
 0xee6   :  { %v1825_v57 = vadd.f32 %v1824_v11, %v1733_v4  ;;  %v1826_v12 = vpop.f32.mrb[27].mxu1  ;;  %v1839_v15 = vmul.f32 0.25, %v1821_v3 }
 0xee7   :  { %v1827_v14 = vadd.f32 %v1826_v12, %v1737_v8 }
 0xee8   :  { %v1840_v24 = vmul.f32 0.25, %v1825_v57  ;;  %v5199_v37 = vpack.c.bf16 %v1825_v57, %v1821_v3 }
 0xee9   :  { %v5201_v16 = vpack.c.bf16 %v1827_v14, %v1823_v13 }
 0xeea   :  { %v5203_v17 = vpack.c.bf16 %v1840_v24, %v1839_v15  ;;  %1849 = vrot.lane.b32.xlu0 %v5199_v37, %s4634_s24 }
 0xeeb   :  { %v1830_v6 = vpop.f32.mrb[28].mxu1  ;;  %4091 = vmatprep.subr.bf16.mxu0 %v5201_v16 }
 0xeec   :  { %v1831_v7 = vadd.f32 %v1830_v6, %v1733_v4  ;;  %v1832_v9 = vpop.f32.mrb[29].mxu1  ;;  %4087 = vmatprep.mubr.msk.bf16.mxu1 %vm319_vm1, %v5203_v17  ;;  %4092 = vmatpush3.bf16.msra.mxu0 %v5201_v16 }
 0xeed   :  { %v1834_v23 = vpop.f32.mrb[30].mxu1  ;;  %v1833_v22 = vadd.f32 %v1832_v9, %v1737_v8 }
 0xeee   :  { %v1835_v18 = vadd.f32 %v1834_v23, %v1733_v4  ;;  %2025 = vrot.lane.b32.xlu0 %v5203_v17, %s4635_s2  ;;  %v1836_v19 = vpop.f32.mrb[31].mxu1  ;;  %v1841_v21 = vmul.f32 0.25, %v1831_v7 }
 0xeef   :  { %v1837_v20 = vadd.f32 %v1836_v19, %v1737_v8 }
 0xef0   :  { %v1842_v25 = vmul.f32 0.25, %v1835_v18  ;;  %v5213_v26 = vpack.c.bf16 %v1835_v18, %v1831_v7 }
 0xef1   :  { %v5215_v27 = vpack.c.bf16 %v1837_v20, %v1833_v22 }
 0xef2   :  { %v5217_v36 = vpack.c.bf16 %v1842_v25, %v1841_v21  ;;  %2335 = vrot.lane.b32.xlu0 %v5199_v37, %s4640_s3  ;;  %1851 = vrot.lane.b32.xlu1 %v5213_v26, %s4634_s24  ;;  %s5814_s24 = smov 80  }
 0xef3   :  { %4093 = vmatprep.subr.bf16.mxu0 %v5215_v27 }
 0xef4   :  { %4094 = vmatpush3.bf16.msra.mxu0 %v5215_v27 }
 0xef6   :  { %2331 = vrot.lane.b32.xlu0 %v5203_v17, %s4637_s1  ;;  %2029 = vrot.lane.b32.xlu1 %v5199_v37, %s4636_s25 }
 0xefa   :  { %2031 = vrot.lane.b32.xlu1 %v5213_v26, %s4636_s25 }
 0xefe   :  { %2027 = vrot.lane.b32.xlu1 %v5217_v36, %s4635_s2 }
 0xf02   :  { %2337 = vrot.lane.b32.xlu1 %v5213_v26, %s4640_s3 }
 0xf06   :  { %2333 = vrot.lane.b32.xlu1 %v5217_v36, %s4637_s1 }
 0xf5c   :  { %v1850_v28 = vpop.permute.xlu0 %1849 }
 0xf5d   :  { %v1860_v29 = vsel %vm319_vm1, %v1850_v28, 0  ;;  %4247 = vmatprep.subr.msk.bf16.mxu1 %vm319_vm1, %v1850_v28 }
 0xf5e   :  { %4084 = vmatpush3.bf16.xpose.msra.mxu1 %v1860_v29 }
 0xf60   :  { %v2026_v32 = vpop.permute.xlu0 %2025 }
 0xf64   :  { %v1852_v38 = vpop.permute.xlu1 %1851  ;;  %v2336_v40 = vpop.permute.xlu0 %2335 }
 0xf65   :  { %v1863_v30 = vsel %vm319_vm1, %v1852_v38, 0  ;;  %4248 = vmatprep.subr.msk.bf16.mxu1 %vm319_vm1, %v1852_v38  ;;  %v2346_v42 = vsel %vm319_vm1, %v2336_v40, 0 }
 0xf66   :  { %4086 = vmatpush3.bf16.xpose.msra.mxu1 %v1863_v30 }
 0xf68   :  { %v2030_v31 = vpop.permute.xlu1 %2029  ;;  %v2332_v43 = vpop.permute.xlu0 %2331 }
 0xf69   :  { %4249 = vmatprep.subr.msk.bf16.mxu1 %vm319_vm1, %v2030_v31  ;;  %v2040_v34 = vsel %vm319_vm1, %v2030_v31, 0 }
 0xf6c   :  { %v2032_v35 = vpop.permute.xlu1 %2031 }
 0xf6d   :  { %4088 = vmatmul.mubr.msk.bf16.vlgmr.msra.gmra.mrb[32].mxu1 %vm319_vm1, %v5217_v36  ;;  %v2043_v39 = vsel %vm319_vm1, %v2032_v35, 0 }
 0xf6e   :  { %4100 = vmatpush3.bf16.xpose.msra.mxu1 %v2040_v34  ;;  %4103 = vmatprep.mubr.msk.bf16.mxu1 %vm319_vm1, %v2026_v32 }
 0xf6f   :  { %4250 = vmatprep.subr.msk.bf16.mxu1 %vm319_vm1, %v2032_v35 }
 0xf70   :  { %v2028_v41 = vpop.permute.xlu1 %2027 }
 0xf74   :  { %v2338_v44 = vpop.permute.xlu1 %2337 }
 0xf75   :  { %v2349_v45 = vsel %vm319_vm1, %v2338_v44, 0 }
 0xf76   :  { %4102 = vmatpush3.bf16.xpose.msra.mxu1 %v2043_v39 }
 0xf77   :  { %4251 = vmatprep.subr.msk.bf16.mxu1 %vm319_vm1, %v2336_v40 }
 0xf78   :  { %v2334_v46 = vpop.permute.xlu1 %2333 }
 0xf7d   :  { %4104 = vmatmul.mubr.msk.bf16.vlgmr.msra.gmra.mrb[36].mxu1 %vm319_vm1, %v2028_v41 }
 0xf7e   :  { %4128 = vmatpush3.bf16.xpose.msra.mxu1 %v2346_v42  ;;  %4131 = vmatprep.mubr.msk.bf16.mxu1 %vm319_vm1, %v2332_v43 }
 0xf7f   :  { %4252 = vmatprep.subr.msk.bf16.mxu1 %vm319_vm1, %v2338_v44 }
 0xf86   :  { %4130 = vmatpush3.bf16.xpose.msra.mxu1 %v2349_v45 }
 0xf8d   :  { %4132 = vmatmul.mubr.msk.bf16.vlgmr.msra.gmra.mrb[40].mxu1 %vm319_vm1, %v2334_v46 }
0x1040   :  { %v4089_v52 = vpop.f32.mrb[32].mxu1 }
0x1041   :  { %v1899_v53 = vpop.f32.mrb[33].mxu1  ;;  %v1916_v63 = vsel %vm383_vm4, -3.4028235e+38, %v4089_v52 }
0x1042   :  { %v1914_v54 = vsel %vm381_vm2, -3.4028235e+38, %v1899_v53  ;;  %v4090_v56 = vpop.f32.mrb[34].mxu1  ;;  %v1924_v48 = vsel %vm389_vm3, %v1916_v63, -inf }
0x1043   :  { %v1902_v61 = vpop.f32.mrb[35].mxu1  ;;  %v1918_v60 = vsel %vm389_vm3, %v1914_v54, -inf  ;;  %v1917_v4 = vsel %vm384_vm6, -3.4028235e+38, %v4090_v56 }
0x1044   :  { %v1915_v47 = vsel %vm382_vm5, -3.4028235e+38, %v1902_v61  ;;  %1919 = vmax.xlane.f32.xlu0 %v1918_v60  ;;  %v1927_v59 = vsel %vm389_vm3, %v1917_v4, -inf }
0x1045   :  { %v1921_v1 = vsel %vm389_vm3, %v1915_v47, -inf }
0x1046   :  { %1922 = vmax.xlane.f32.xlu1 %v1921_v1 }
0x1048   :  { %1925 = vmax.xlane.f32.xlu0 %v1924_v48 }
0x104c   :  { %1928 = vmax.xlane.f32.xlu0 %v1927_v59 }
0x1050   :  { %v4105_v8 = vpop.f32.mrb[36].mxu1 }
0x1051   :  { %v2079_v3 = vpop.f32.mrb[37].mxu1  ;;  %v2096_v13 = vsel %vm383_vm4, -3.4028235e+38, %v4105_v8 }
0x1052   :  { %v2094_v10 = vsel %vm381_vm2, -3.4028235e+38, %v2079_v3  ;;  %v4106_v11 = vpop.f32.mrb[38].mxu1  ;;  %v2104_v6 = vsel %vm389_vm3, %v2096_v13, -inf }
0x1053   :  { %v2082_v57 = vpop.f32.mrb[39].mxu1  ;;  %v2098_v12 = vsel %vm389_vm3, %v2094_v10, -inf  ;;  %v2097_v24 = vsel %vm384_vm6, -3.4028235e+38, %v4106_v11 }
0x1054   :  { %v2095_v14 = vsel %vm382_vm5, -3.4028235e+38, %v2082_v57  ;;  %2099 = vmax.xlane.f32.xlu0 %v2098_v12  ;;  %v2107_v7 = vsel %vm389_vm3, %v2097_v24, -inf }
0x1055   :  { %v2101_v15 = vsel %vm389_vm3, %v2095_v14, -inf }
0x1056   :  { %2102 = vmax.xlane.f32.xlu1 %v2101_v15 }
0x1058   :  { %2105 = vmax.xlane.f32.xlu0 %v2104_v6 }
0x105a   :  { %2108 = vmax.xlane.f32.xlu1 %v2107_v7 }
0x1060   :  { %v5279_v9 = vpop.f32.mrb[40].mxu1 }
0x1061   :  { %v5281_v23 = vpop.f32.mrb[41].mxu1 }
0x1062   :  { %v5283_v18 = vpop.f32.mrb[42].mxu1  ;;  %v5328_v15 = vsel %vm381_vm2, -3.4028235e+38, %v5281_v23 }
0x1063   :  { %v5285_v19 = vpop.f32.mrb[43].mxu1 }
0x10d1   :  { %v1920_v22 = vpop.xlane.xlu0 %1919 }
0x10d2   :  { %v1930_v20 = vsub.f32 %v1914_v54, %v1920_v22 }
0x10d3   :  { %v1923_v21 = vpop.xlane.xlu1 %1922 }
0x10d4   :  { %v1934_v29 = vmul.f32 1.442695, %v1930_v20  ;;  %v1931_v38 = vsub.f32 %v1915_v47, %v1923_v21 }
0x10d5   :  { %v1926_v25 = vpop.xlane.xlu0 %1925 }
0x10d6   :  { %v1932_v28 = vsub.f32 %v1916_v63, %v1926_v25  ;;  %v1936_v34 = vmul.f32 1.442695, %v1931_v38 }
0x10d8   :  { %v1938_v30 = vmul.f32 1.442695, %v1932_v28 }
0x10d9   :  { %v1929_v31 = vpop.xlane.xlu0 %1928 }
0x10da   :  { %4441 = vpow2.f32 %v1938_v30  ;;  %v1933_v32 = vsub.f32 %v1917_v4, %v1929_v31 }
0x10db   :  { %4443 = vpow2.f32 %v1934_v29 }
0x10dc   :  { %v1940_v35 = vmul.f32 1.442695, %v1933_v32 }
0x10de   :  { %4445 = vpow2.f32 %v1940_v35 }
0x10df   :  { %4447 = vpow2.f32 %v1936_v34 }
0x10e1   :  { %v2100_v39 = vpop.xlane.xlu0 %2099 }
0x10e2   :  { %v2110_v40 = vsub.f32 %v2094_v10, %v2100_v39 }
0x10e3   :  { %v2103_v41 = vpop.xlane.xlu1 %2102 }
0x10e4   :  { %v5287_v42 = vpop.eup %4441  ;;  %v2111_v46 = vsub.f32 %v2095_v14, %v2103_v41  ;;  %v2114_v53 = vmul.f32 1.442695, %v2110_v40 }
0x10e5   :  { %v2106_v43 = vpop.xlane.xlu0 %2105  ;;  %v1948_v44 = vsel %vm389_vm3, %v5287_v42, 0.0  ;;  %v5291_v45 = vpop.eup %4443 }
0x10e6   :  { %v2112_v52 = vsub.f32 %v2096_v13, %v2106_v43  ;;  %1949 = vadd.xlane.f32.xlu0 %v1948_v44  ;;  %v1942_v63 = vsel %vm389_vm3, %v5291_v45, 0.0  ;;  %v2116_v48 = vmul.f32 1.442695, %v2111_v46 }
0x10e7   :  { %v2109_v54 = vpop.xlane.xlu1 %2108 }
0x10e8   :  { %v4446_v56 = vpop.eup %4445  ;;  %v2118_v61 = vmul.f32 1.442695, %v2112_v52  ;;  %v2113_v60 = vsub.f32 %v2097_v24, %v2109_v54  ;;  %v2404_v24 = vsel %vm389_vm3, %v5328_v15, -inf }
0x10e9   :  { %v1951_v47 = vsel %vm389_vm3, %v4446_v56, 0.0  ;;  %v4448_v1 = vpop.eup %4447 }
0x10ea   :  { %4449 = vpow2.f32 %v2118_v61  ;;  %v2120_v4 = vmul.f32 1.442695, %v2113_v60  ;;  %1943 = vadd.xlane.f32.xlu0 %v1942_v63  ;;  %1952 = vadd.xlane.f32.xlu1 %v1951_v47  ;;  %v1945_v59 = vsel %vm389_vm3, %v4448_v1, 0.0 }
0x10eb   :  { %4451 = vpow2.f32 %v2114_v53 }
0x10ec   :  { %4453 = vpow2.f32 %v2120_v4 }
0x10ed   :  { %4455 = vpow2.f32 %v2116_v48 }
0x10ee   :  { %1946 = vadd.xlane.f32.xlu1 %v1945_v59 }
0x10f4   :  { %v5297_v8 = vpop.eup %4449 }
0x10f5   :  { %v5299_v3 = vpop.eup %4451  ;;  %v2128_v10 = vsel %vm389_vm3, %v5297_v8, 0.0 }
0x10f6   :  { %v5303_v11 = vpop.eup %4453  ;;  %2129 = vadd.xlane.f32.xlu0 %v2128_v10  ;;  %v2122_v13 = vsel %vm389_vm3, %v5299_v3, 0.0 }
0x10f7   :  { %v2131_v57 = vsel %vm389_vm3, %v5303_v11, 0.0  ;;  %v5307_v12 = vpop.eup %4455 }
0x10f8   :  { %2132 = vadd.xlane.f32.xlu1 %v2131_v57  ;;  %v2125_v14 = vsel %vm389_vm3, %v5307_v12, 0.0 }
0x10fa   :  { %2123 = vadd.xlane.f32.xlu0 %v2122_v13 }
0x10fc   :  { %2126 = vadd.xlane.f32.xlu1 %v2125_v14 }
0x110d   :  { %2148 = vrot.lane.b32.xlu1 %v5215_v27, %s4635_s2 }
0x1110   :  { %2146 = vrot.lane.b32.xlu0 %v5201_v16, %s4635_s2 }
0x1111   :  { %2582 = vrot.lane.b32.xlu1 %v5199_v37, %s5813_s6  ;;  %v5335_v37 = vsel %vm383_vm4, -3.4028235e+38, %v5279_v9 }
0x1114   :  { %2578 = vrot.lane.b32.xlu0 %v5203_v17, %s5814_s24  ;;  %v2410_v17 = vsel %vm389_vm3, %v5335_v37, -inf }
0x1115   :  { %2584 = vrot.lane.b32.xlu1 %v5213_v26, %s5813_s6  ;;  %v5342_v26 = vsel %vm384_vm6, -3.4028235e+38, %v5283_v18 }
0x1116   :  { %v2413_v6 = vsel %vm389_vm3, %v5342_v26, -inf }
0x1119   :  { %2580 = vrot.lane.b32.xlu1 %v5217_v36, %s5814_s24  ;;  %v5347_v36 = vsel %vm382_vm5, -3.4028235e+38, %v5285_v19 }
0x111a   :  { %v2407_v7 = vsel %vm389_vm3, %v5347_v36, -inf }
0x1133   :  { %2405 = vmax.xlane.f32.xlu0 %v2404_v24 }
0x1137   :  { %2411 = vmax.xlane.f32.xlu0 %v2410_v17 }
0x113b   :  { %2414 = vmax.xlane.f32.xlu0 %v2413_v6 }
0x113d   :  { %2408 = vmax.xlane.f32.xlu1 %v2407_v7 }
0x1173   :  { %v1950_v9 = vpop.xlane.xlu0 %1949 }
0x1177   :  { %v1953_v23 = vpop.xlane.xlu1 %1952  ;;  %v1944_v22 = vpop.xlane.xlu0 %1943 }
0x1178   :  { %4457 = vrcp.f32 %v1953_v23 }
0x1179   :  { %4459 = vrcp.f32 %v1944_v22 }
0x117a   :  { %4461 = vrcp.f32 %v1950_v9 }
0x117b   :  { %v1947_v18 = vpop.xlane.xlu1 %1946 }
0x117c   :  { %4463 = vrcp.f32 %v1947_v18 }
0x1182   :  { %v4458_v20 = vpop.eup %4457 }
0x1183   :  { %v2130_v21 = vpop.xlane.xlu0 %2129  ;;  %v4460_v19 = vpop.eup %4459  ;;  %v1961_v38 = vmul.f32 %v4458_v20, %v4446_v56  ;;  %v4313_v20 = vld [vmem:[%s5783_s7 + $0x28] sm:$0xff]  }
0x1184   :  { %v4462_v25 = vpop.eup %4461  ;;  %v1958_v31 = vmul.f32 %v4460_v19, %v5291_v45 }
0x1185   :  { %v2133_v28 = vpop.xlane.xlu1 %2132  ;;  %v1960_v34 = vmul.f32 %v4462_v25, %v5287_v42 }
0x1186   :  { %v4464_v29 = vpop.eup %4463  ;;  %4465 = vrcp.f32 %v2133_v28 }
0x1187   :  { %v2124_v30 = vpop.xlane.xlu0 %2123  ;;  %v1959_v32 = vmul.f32 %v4464_v29, %v4448_v1  ;;  %v1963_v40 = vpack.c.bf16 %v1961_v38, %v1960_v34 }
0x1188   :  { %4467 = vrcp.f32 %v2124_v30 }
0x1189   :  { %4469 = vrcp.f32 %v2130_v21  ;;  %v2127_v35 = vpop.xlane.xlu1 %2126  ;;  %v1962_v39 = vpack.c.bf16 %v1959_v32, %v1958_v31  ;;  %v4314_v21 = vld [vmem:[%s5783_s7 + $0x20] sm:$0xff]  }
0x118a   :  { %4471 = vrcp.f32 %v2127_v35 }
0x118b   :  { %4095 = vmatprep.mubr.msk.bf16.mxu0 %vm389_vm3, %v1962_v39  ;;  %v2147_v41 = vpop.permute.xlu0 %2146 }
0x118c   :  { %4096 = vmatmul.mubr.msk.bf16.vlgmr.msra.gmra.mrb[28].mxu0 %vm389_vm3, %v1963_v40  ;;  %4107 = vmatprep.subr.bf16.mxu0 %v2147_v41 }
0x118d   :  { %v2149_v43 = vpop.permute.xlu1 %2148  ;;  %4108 = vmatpush3.bf16.msra.mxu0 %v2147_v41 }
0x118e   :  { %4109 = vmatprep.subr.bf16.mxu0 %v2149_v43 }
0x118f   :  { %v2579_v44 = vpop.permute.xlu0 %2578 }
0x1190   :  { %4153 = vmatprep.mubr.msk.bf16.mxu1 %vm319_vm1, %v2579_v44  ;;  %v4466_v45 = vpop.eup %4465 }
0x1191   :  { %v2583_v42 = vpop.permute.xlu1 %2582  ;;  %4110 = vmatpush3.bf16.msra.mxu0 %v2149_v43  ;;  %v2141_v56 = vmul.f32 %v4466_v45, %v5303_v11 }
0x1192   :  { %v4468_v46 = vpop.eup %4467  ;;  %v2593_v52 = vsel %vm319_vm1, %v2583_v42, 0  ;;  %4253 = vmatprep.subr.msk.bf16.mxu1 %vm319_vm1, %v2583_v42  ;;  %4115 = vmatprep.subr.bf16.mxu0 %v4313_v20 }
0x1193   :  { %v4470_v53 = vpop.eup %4469  ;;  %4150 = vmatpush3.bf16.xpose.msra.mxu1 %v2593_v52  ;;  %v2138_v60 = vmul.f32 %v4468_v46, %v5299_v3 }
0x1194   :  { %v4472_v54 = vpop.eup %4471  ;;  %v2140_v47 = vmul.f32 %v4470_v53, %v5297_v8 }
0x1195   :  { %v2585_v61 = vpop.permute.xlu1 %2584  ;;  %v2139_v63 = vmul.f32 %v4472_v54, %v5307_v12 }
0x1196   :  { %4254 = vmatprep.subr.msk.bf16.mxu1 %vm319_vm1, %v2585_v61  ;;  %v2143_v48 = vpack.c.bf16 %v2141_v56, %v2140_v47  ;;  %v2596_v4 = vsel %vm319_vm1, %v2585_v61, 0 }
0x1197   :  { %v2142_v1 = vpack.c.bf16 %v2139_v63, %v2138_v60 }
0x1199   :  { %4111 = vmatprep.mubr.msk.bf16.mxu0 %vm389_vm3, %v2142_v1  ;;  %v2581_v59 = vpop.permute.xlu1 %2580 }
0x119a   :  { %4112 = vmatmul.mubr.msk.bf16.vlgmr.msra.gmra.mrb[32].mxu0 %vm389_vm3, %v2143_v48 }
0x119b   :  { %4152 = vmatpush3.bf16.xpose.msra.mxu1 %v2596_v4  ;;  %4116 = vmatpush3.bf16.msra.mxu0 %v4313_v20 }
0x119c   :  { %4121 = vmatprep.subr.bf16.mxu0 %v4314_v21 }
0x11a2   :  { %4154 = vmatmul.mubr.msk.bf16.vlgmr.msra.gmra.mrb[44].mxu1 %vm319_vm1, %v2581_v59 }
0x11c0   :  { %v2406_v10 = vpop.xlane.xlu0 %2405 }
0x11c1   :  { %v2416_v3 = vsub.f32 %v5328_v15, %v2406_v10 }
0x11c3   :  { %v2420_v57 = vmul.f32 1.442695, %v2416_v3 }
0x11c4   :  { %v2412_v11 = vpop.xlane.xlu0 %2411 }
0x11c5   :  { %v2418_v8 = vsub.f32 %v5335_v37, %v2412_v11 }
0x11c7   :  { %v2424_v12 = vmul.f32 1.442695, %v2418_v8 }
0x11c8   :  { %v2415_v13 = vpop.xlane.xlu0 %2414 }
0x11c9   :  { %4473 = vpow2.f32 %v2424_v12  ;;  %v2419_v14 = vsub.f32 %v5342_v26, %v2415_v13  ;;  %v4315_v13 = vld [vmem:[%s5783_s7 + $0x30] sm:$0xff]  }
0x11ca   :  { %v2409_v24 = vpop.xlane.xlu1 %2408  ;;  %4475 = vpow2.f32 %v2420_v57 }
0x11cb   :  { %v2426_v17 = vmul.f32 1.442695, %v2419_v14  ;;  %v2417_v6 = vsub.f32 %v5347_v36, %v2409_v24 }
0x11cd   :  { %4477 = vpow2.f32 %v2426_v17  ;;  %v2422_v7 = vmul.f32 1.442695, %v2417_v6 }
0x11cf   :  { %4479 = vpow2.f32 %v2422_v7 }
0x11d3   :  { %v5373_v9 = vpop.eup %4473 }
0x11d4   :  { %v2434_v15 = vsel %vm389_vm3, %v5373_v9, 0.0  ;;  %v4476_v37 = vpop.eup %4475 }
0x11d5   :  { %2435 = vadd.xlane.f32.xlu0 %v2434_v15  ;;  %v2428_v22 = vsel %vm389_vm3, %v4476_v37, 0.0 }
0x11d7   :  { %v5377_v23 = vpop.eup %4477 }
0x11d8   :  { %v2437_v26 = vsel %vm389_vm3, %v5377_v23, 0.0 }
0x11d9   :  { %v4480_v18 = vpop.eup %4479  ;;  %2429 = vadd.xlane.f32.xlu0 %v2428_v22  ;;  %2438 = vadd.xlane.f32.xlu1 %v2437_v26 }
0x11da   :  { %v2431_v36 = vsel %vm389_vm3, %v4480_v18, 0.0 }
0x11dd   :  { %2432 = vadd.xlane.f32.xlu1 %v2431_v36 }
0x11ee   :  { %2452 = vrot.lane.b32.xlu1 %v5215_v27, %s4637_s1 }
0x11ef   :  { %2450 = vrot.lane.b32.xlu0 %v5201_v16, %s4637_s1 }
0x125f   :  { %v4097_v19 = vpop.f32.mrb[28].mxu0 }
0x1260   :  { %v2006_v25 = vpop.f32.mrb[29].mxu0 }
0x1261   :  { %v4098_v28 = vpop.f32.mrb[30].mxu0 }
0x1262   :  { %v2022_v29 = vpack.c.bf16 %v4098_v28, %v4097_v19  ;;  %v2009_v38 = vpop.f32.mrb[31].mxu0  ;;  %v2436_v32 = vpop.xlane.xlu0 %2435 }
0x1263   :  { %v2021_v30 = vpack.c.bf16 %v2009_v38, %v2006_v25 }
0x1266   :  { %v2439_v31 = vpop.xlane.xlu1 %2438  ;;  %v2430_v35 = vpop.xlane.xlu0 %2429 }
0x126a   :  { %v2433_v34 = vpop.xlane.xlu1 %2432  ;;  %v2451_v42 = vpop.permute.xlu0 %2450 }
0x126b   :  { %4481 = vrcp.f32 %v2433_v34 }
0x126c   :  { %4483 = vrcp.f32 %v2430_v35 }
0x126d   :  { %v4113_v39 = vpop.f32.mrb[32].mxu0  ;;  %4485 = vrcp.f32 %v2439_v31 }
0x126e   :  { %v2192_v40 = vpop.f32.mrb[33].mxu0  ;;  %4487 = vrcp.f32 %v2436_v32  ;;  %v2453_v8 = vpop.permute.xlu1 %2452 }
0x126f   :  { %v4114_v41 = vpop.f32.mrb[34].mxu0 }
0x1270   :  { %v2208_v43 = vpack.c.bf16 %v4114_v41, %v4113_v39  ;;  %v2195_v44 = vpop.f32.mrb[35].mxu0 }
0x1271   :  { %v2207_v45 = vpack.c.bf16 %v2195_v44, %v2192_v40 }
0x1273   :  { %4117 = vmatprep.mubr.msk.bf16.mxu0 %vm319_vm1, %v2207_v45  ;;  %v4316_v45 = vld [vmem:[%s5783_s7 + $0x38] sm:$0xff]  }
0x1274   :  { %4118 = vmatmul.mubr.msk.bf16.vlgmr.msra.gmra.mrb[36].mxu0 %vm319_vm1, %v2208_v43 }
0x1275   :  { %4122 = vmatpush3.bf16.msra.mxu0 %v4314_v21  ;;  %4123 = vmatprep.mubr.msk.bf16.mxu0 %vm319_vm1, %v2021_v30  ;;  %v4155_v46 = vpop.f32.mrb[44].mxu1  ;;  %v4482_v56 = vpop.eup %4481 }
0x1276   :  { %4135 = vmatprep.subr.bf16.mxu0 %v2451_v42  ;;  %v2632_v52 = vpop.f32.mrb[45].mxu1  ;;  %v4484_v1 = vpop.eup %4483  ;;  %v2649_v4 = vsel %vm383_vm4, -3.4028235e+38, %v4155_v46  ;;  %v2445_v49 = vmul.f32 %v4482_v56, %v4480_v18 }
0x1277   :  { %v2647_v53 = vsel %vm381_vm2, -3.4028235e+38, %v2632_v52  ;;  %v4156_v54 = vpop.f32.mrb[46].mxu1  ;;  %v2444_v10 = vmul.f32 %v4484_v1, %v4476_v37  ;;  %v2657_v3 = vsel %vm389_vm3, %v2649_v4, -inf  ;;  %v4486_v55 = vpop.eup %4485 }
0x1278   :  { %v2651_v61 = vsel %vm389_vm3, %v2647_v53, -inf  ;;  %v2635_v60 = vpop.f32.mrb[47].mxu1  ;;  %v2650_v63 = vsel %vm384_vm6, -3.4028235e+38, %v4156_v54  ;;  %v4488_v51 = vpop.eup %4487  ;;  %v2447_v50 = vmul.f32 %v4486_v55, %v5377_v23 }
0x1279   :  { %v2648_v47 = vsel %vm382_vm5, -3.4028235e+38, %v2635_v60  ;;  %2652 = vmax.xlane.f32.xlu1 %v2651_v61  ;;  %v2660_v59 = vsel %vm389_vm3, %v2650_v63, -inf  ;;  %v2448_v11 = vpack.c.bf16 %v2445_v49, %v2444_v10  ;;  %v2446_v57 = vmul.f32 %v4488_v51, %v5373_v9 }
0x127a   :  { %v2654_v48 = vsel %vm389_vm3, %v2648_v47, -inf }
0x127b   :  { %2655 = vmax.xlane.f32.xlu0 %v2654_v48  ;;  %v2449_v12 = vpack.c.bf16 %v2447_v50, %v2446_v57 }
0x127d   :  { %2661 = vmax.xlane.f32.xlu1 %v2660_v59 }
0x127f   :  { %2658 = vmax.xlane.f32.xlu0 %v2657_v3  ;;  %v3792_v3 = vld [vmem:[%s5784_s8 + $0x1] ss:$0 sm:$0xff] }
0x1280   :  { %4124 = vmatmul.mubr.msk.bf16.vlgmr.msra.gmra.mrb[36].mxu0 %vm319_vm1, %v2022_v29 }
0x1281   :  { %4136 = vmatpush3.bf16.msra.mxu0 %v2451_v42  ;;  %4139 = vmatprep.mubr.msk.bf16.mxu0 %vm389_vm3, %v2448_v11 }
0x1282   :  { %4137 = vmatprep.subr.bf16.mxu0 %v2453_v8 }
0x1285   :  { %4138 = vmatpush3.bf16.msra.mxu0 %v2453_v8 }
0x1286   :  { %4143 = vmatprep.subr.bf16.mxu0 %v4315_v13 }
0x1288   :  { %4140 = vmatmul.mubr.msk.bf16.vlgmr.msra.gmra.mrb[40].mxu0 %vm389_vm3, %v2449_v12 }
0x1289   :  { %4144 = vmatpush3.bf16.msra.mxu0 %v4315_v13 }
0x1306   :  { %v2653_v14 = vpop.xlane.xlu1 %2652 }
0x1307   :  { %v2663_v7 = vsub.f32 %v2647_v53, %v2653_v14 }
0x1308   :  { %v2656_v24 = vpop.xlane.xlu0 %2655 }
0x1309   :  { %v2664_v17 = vsub.f32 %v2648_v47, %v2656_v24  ;;  %v2667_v26 = vmul.f32 1.442695, %v2663_v7 }
0x130a   :  { %v2662_v6 = vpop.xlane.xlu1 %2661 }
0x130b   :  { %v2666_v15 = vsub.f32 %v2650_v63, %v2662_v6  ;;  %v2669_v37 = vmul.f32 1.442695, %v2664_v17 }
0x130c   :  { %v2659_v23 = vpop.xlane.xlu0 %2658 }
0x130d   :  { %v2673_v22 = vmul.f32 1.442695, %v2666_v15  ;;  %v2665_v9 = vsub.f32 %v2649_v4, %v2659_v23 }
0x130f   :  { %4489 = vpow2.f32 %v2673_v22  ;;  %v2671_v18 = vmul.f32 1.442695, %v2665_v9 }
0x1310   :  { %4491 = vpow2.f32 %v2669_v37 }
0x1311   :  { %4493 = vpow2.f32 %v2671_v18 }
0x1312   :  { %4495 = vpow2.f32 %v2667_v26 }
0x1319   :  { %v4490_v36 = vpop.eup %4489 }
0x131a   :  { %v4492_v20 = vpop.eup %4491  ;;  %v2684_v21 = vsel %vm389_vm3, %v4490_v36, 0.0 }
0x131b   :  { %v4494_v19 = vpop.eup %4493  ;;  %2685 = vadd.xlane.f32.xlu1 %v2684_v21  ;;  %v2678_v29 = vsel %vm389_vm3, %v4492_v20, 0.0 }
0x131c   :  { %v2681_v25 = vsel %vm389_vm3, %v4494_v19, 0.0  ;;  %v4496_v28 = vpop.eup %4495 }
0x131d   :  { %2682 = vadd.xlane.f32.xlu0 %v2681_v25  ;;  %v2675_v38 = vsel %vm389_vm3, %v4496_v28, 0.0 }
0x131f   :  { %2679 = vadd.xlane.f32.xlu1 %v2678_v29 }
0x1321   :  { %2676 = vadd.xlane.f32.xlu0 %v2675_v38 }
0x1330   :  { %2699 = vrot.lane.b32.xlu1 %v5215_v27, %s5814_s24 }
0x1337   :  { %2697 = vrot.lane.b32.xlu0 %v5201_v16, %s5814_s24 }
0x135b   :  { %v4141_v30 = vpop.f32.mrb[40].mxu0 }
0x135c   :  { %v2496_v31 = vpop.f32.mrb[41].mxu0 }
0x135d   :  { %v4142_v32 = vpop.f32.mrb[42].mxu0 }
0x135e   :  { %v2512_v34 = vpack.c.bf16 %v4142_v32, %v4141_v30  ;;  %v2499_v35 = vpop.f32.mrb[43].mxu0 }
0x135f   :  { %v2511_v39 = vpack.c.bf16 %v2499_v35, %v2496_v31  ;;  %v4317_v35 = vld [vmem:[%s5787_s11 + $0x20] sm:$0xff]  }
0x1360   :  { %4171 = vmatprep.subr.bf16.mxu1 %v4317_v35 }
0x1361   :  { %4145 = vmatprep.mubr.msk.bf16.mxu0 %vm319_vm1, %v2511_v39  ;;  %4172 = vmatpush3.bf16.msra.mxu1 %v4317_v35  ;;  %v4318_v39 = vld [vmem:[%s5787_s11 + $0x28] sm:$0xff]  }
0x1362   :  { %4146 = vmatmul.mubr.msk.bf16.vlgmr.msra.gmra.mrb[36].mxu0 %vm319_vm1, %v2512_v34  ;;  %4173 = vmatprep.subr.bf16.mxu1 %v4318_v39 }
0x1365   :  { %4174 = vmatpush3.bf16.msra.mxu1 %v4318_v39 }
0x13a8   :  { %v2686_v40 = vpop.xlane.xlu1 %2685 }
0x13aa   :  { %v2683_v41 = vpop.xlane.xlu0 %2682 }
0x13ab   :  { %4497 = vrcp.f32 %v2683_v41  ;;  %v4320_v41 = vld [vmem:[%s5787_s11 + $0x38] sm:$0xff]  }
0x13ac   :  { %v2680_v43 = vpop.xlane.xlu1 %2679 }
0x13ad   :  { %4499 = vrcp.f32 %v2680_v43  ;;  %v4321_v43 = vld [vmem:[%s5789_s13 + $0x40] sm:$0xff]  }
0x13ae   :  { %4501 = vrcp.f32 %v2686_v40  ;;  %v2677_v27 = vpop.xlane.xlu0 %2676  ;;  %v4319_v40 = vld [vmem:[%s5787_s11 + $0x30] sm:$0xff]  }
0x13af   :  { %4503 = vrcp.f32 %v2677_v27  ;;  %4175 = vmatprep.subr.bf16.mxu1 %v4319_v40  ;;  %v4322_v27 = vld [vmem:[%s5789_s13 + $0x48] sm:$0xff]  }
0x13b0   :  { %v2700_v16 = vpop.permute.xlu1 %2699  ;;  %4176 = vmatpush3.bf16.msra.mxu1 %v4319_v40 }
0x13b1   :  { %4177 = vmatprep.subr.bf16.mxu1 %v4320_v41 }
0x13b2   :  { %v2698_v44 = vpop.permute.xlu0 %2697 }
0x13b3   :  { %4157 = vmatprep.subr.bf16.mxu0 %v2698_v44 }
0x13b4   :  { %4158 = vmatpush3.bf16.msra.mxu0 %v2698_v44  ;;  %4178 = vmatpush3.bf16.msra.mxu1 %v4320_v41 }
0x13b5   :  { %4159 = vmatprep.subr.bf16.mxu0 %v2700_v16  ;;  %v4498_v42 = vpop.eup %4497 }
0x13b6   :  { %v2693_v54 = vmul.f32 %v4498_v42, %v4494_v19 }
0x13b7   :  { %v4500_v46 = vpop.eup %4499 }
0x13b8   :  { %v4502_v52 = vpop.eup %4501  ;;  %4160 = vmatpush3.bf16.msra.mxu0 %v2700_v16  ;;  %v2692_v61 = vmul.f32 %v4500_v46, %v4492_v20 }
0x13b9   :  { %v4504_v53 = vpop.eup %4503  ;;  %4165 = vmatprep.subr.bf16.mxu0 %v4316_v45  ;;  %v2694_v60 = vmul.f32 %v4502_v52, %v4490_v36 }
0x13ba   :  { %v2691_v56 = vmul.f32 %v4504_v53, %v4496_v28 }
0x13bb   :  { %v2696_v47 = vpack.c.bf16 %v2694_v60, %v2693_v54 }
0x13bc   :  { %v2695_v63 = vpack.c.bf16 %v2692_v61, %v2691_v56 }
0x13be   :  { %4161 = vmatprep.mubr.msk.bf16.mxu0 %vm389_vm3, %v2695_v63 }
0x13bf   :  { %4162 = vmatmul.mubr.msk.bf16.vlgmr.msra.gmra.mrb[44].mxu0 %vm389_vm3, %v2696_v47 }
0x13c0   :  { %4166 = vmatpush3.bf16.msra.mxu0 %v4316_v45 }
0x13c1   :  { %4183 = vmatprep.subr.bf16.mxu0 %v4321_v43 }
0x1492   :  { %v4163_v1 = vpop.f32.mrb[44].mxu0 }
0x1493   :  { %v2743_v48 = vpop.f32.mrb[45].mxu0 }
0x1494   :  { %v4164_v4 = vpop.f32.mrb[46].mxu0 }
0x1495   :  { %v2759_v49 = vpack.c.bf16 %v4164_v4, %v4163_v1  ;;  %v2746_v59 = vpop.f32.mrb[47].mxu0  ;;  %v3795_v1 = vld [vmem:[%s5785_s9 + $0x1] ss:$0 sm:$0xff]  ;;  %s4641_s9 = smov [#allocation4]  }
0x1496   :  { %v2758_v10 = vpack.c.bf16 %v2746_v59, %v2743_v48 }
0x1498   :  { %4167 = vmatprep.mubr.msk.bf16.mxu0 %vm319_vm1, %v2758_v10  ;;  %v3796_v10 = vld [vmem:[%s5786_s10 + $0x1] ss:$0 sm:$0xff]  ;;  %s3621_s10 = sshll.u32 %s4641_s9, 4  ;;  %s3622_s10 = int_to_ptr.vmem [resolvable:$true] %s3621_s10 }
0x1499   :  { %4168 = vmatmul.mubr.msk.bf16.vlgmr.msra.gmra.mrb[36].mxu0 %vm319_vm1, %v2759_v49  ;;  %s4563_s30 = scalar_lea.vmem %s3622_s10, 1536  ;;  %p4568_p1 = scmp.lt.s32.totalorder %s3622_s10, %s3622_s10 }
0x149a   :  { %4184 = vmatpush3.bf16.msra.mxu0 %v4321_v43  ;;  %p4564_p0 = scmp.ne.s32.totalorder %s3622_s10, %s4563_s30  ;;  %p4569_p2 = scmp.lt.s32.totalorder %s4563_s30, %s4563_s30 }
0x149b   :  { %4185 = vmatprep.subr.bf16.mxu0 %v4322_v27 }
0x149c   :  { %p4570_p3 = por %p4569_p2, %p4568_p1 }
0x149e   :  { %4186 = vmatpush3.bf16.msra.mxu0 %v4322_v27  ;;  %p4571_p4 = pnand %p4570_p3, %p4564_p0 }
0x156c   :  { %v4169_v55 = vpop.f32.mrb[36].mxu0 }
0x156d   :  { %v2806_v11 = vpop.f32.mrb[37].mxu0  ;;  %v2833_v12 = vadd.f32 %v4169_v55, %v3792_v3 }
0x156e   :  { %v2831_v51 = vadd.f32 %v3792_v3, %v2806_v11  ;;  %v4170_v8 = vpop.f32.mrb[38].mxu0 }
0x156f   :  { %v2834_v50 = vadd.f32 %v4170_v8, %v3792_v3  ;;  %v2809_v57 = vpop.f32.mrb[39].mxu0  ;;  %v2837_v7 = vadd.f32 %v2833_v12, %v5187_v0 }
0x1570   :  { %v2835_v13 = vadd.f32 %v2831_v51, %v5177_v58  ;;  %v2832_v14 = vadd.f32 %v3792_v3, %v2809_v57 }
0x1571   :  { %v2838_v24 = vadd.f32 %v2834_v50, %v5185_v2  ;;  %v2849_v23 = vsel %vm71_vm0, %v2837_v7, 0.0 }
0x1572   :  { %v2836_v17 = vadd.f32 %v2832_v14, %v5179_v62  ;;  %v2843_v6 = vsel %vm71_vm0, %v2835_v13, 0.0 }
0x1573   :  { %2844 = vadd.xlane.f32.xlu1 %v2843_v6  ;;  %v2852_v37 = vsel %vm71_vm0, %v2838_v24, 0.0 }
0x1574   :  { %v2846_v15 = vsel %vm71_vm0, %v2836_v17, 0.0 }
0x1575   :  { %2847 = vadd.xlane.f32.xlu0 %v2846_v15  ;;  %v4324_v15 = vld [vmem:[%s5789_s13 + $0x58] sm:$0xff]  }
0x1577   :  { %2853 = vadd.xlane.f32.xlu1 %v2852_v37  ;;  %v4325_v37 = vld [vmem:[%s5789_s13 + $0x60] sm:$0xff]  }
0x1579   :  { %2850 = vadd.xlane.f32.xlu0 %v2849_v23  ;;  %v4326_v23 = vld [vmem:[%s5789_s13 + $0x68] sm:$0xff]  }
0x1600   :  { %v2845_v58 = vpop.xlane.xlu1 %2844 }
0x1601   :  { %v2855_v22 = vmul.f32 0.015625, %v2845_v58  ;;  %v4327_v58 = vld [vmem:[%s5789_s13 + $0x70] sm:$0xff]  }
0x1602   :  { %v2848_v9 = vpop.xlane.xlu0 %2847 }
0x1603   :  { %v2859_v2 = vsub.f32 %v2835_v13, %v2855_v22  ;;  %v2856_v26 = vmul.f32 0.015625, %v2848_v9  ;;  %v4328_v22 = vld [vmem:[%s5789_s13 + $0x78] sm:$0xff]   ;;  %v3797_v9 = vld [vmem:[%s5788_s12 + $0x1] ss:$0 sm:$0xff] }
0x1604   :  { %v2854_v62 = vpop.xlane.xlu1 %2853 }
0x1605   :  { %v2860_v18 = vsub.f32 %v2836_v17, %v2856_v26  ;;  %v2858_v36 = vmul.f32 0.015625, %v2854_v62  ;;  %v2863_v20 = vmul.f32 %v2859_v2, %v2859_v2 }
0x1606   :  { %v2851_v21 = vpop.xlane.xlu0 %2850 }
0x1607   :  { %v2862_v0 = vsub.f32 %v2838_v24, %v2858_v36  ;;  %v2857_v19 = vmul.f32 0.015625, %v2851_v21  ;;  %v2867_v25 = vsel %vm71_vm0, %v2863_v20, 0.0  ;;  %v2864_v28 = vmul.f32 %v2860_v18, %v2860_v18 }
0x1608   :  { %2868 = vadd.xlane.f32.xlu0 %v2867_v25 }
0x1609   :  { %v2861_v29 = vsub.f32 %v2837_v7, %v2857_v19  ;;  %v2870_v38 = vsel %vm71_vm0, %v2864_v28, 0.0  ;;  %v2866_v30 = vmul.f32 %v2862_v0, %v2862_v0  ;;  %v4323_v7 = vld [vmem:[%s5789_s13 + $0x50] sm:$0xff]  }
0x160a   :  { %2871 = vadd.xlane.f32.xlu1 %v2870_v38  ;;  %4187 = vmatprep.subr.bf16.mxu0 %v4323_v7 }
0x160b   :  { %v2865_v31 = vmul.f32 %v2861_v29, %v2861_v29  ;;  %v2876_v32 = vsel %vm71_vm0, %v2866_v30, 0.0  ;;  %4188 = vmatpush3.bf16.msra.mxu0 %v4323_v7 }
0x160c   :  { %4189 = vmatprep.subr.bf16.mxu0 %v4324_v15 }
0x160d   :  { %v2873_v34 = vsel %vm71_vm0, %v2865_v31, 0.0 }
0x160e   :  { %2877 = vadd.xlane.f32.xlu1 %v2876_v32  ;;  %2874 = vadd.xlane.f32.xlu0 %v2873_v34 }
0x160f   :  { %4190 = vmatpush3.bf16.msra.mxu0 %v4324_v15 }
0x1610   :  { %4191 = vmatprep.subr.bf16.mxu0 %v4325_v37 }
0x1613   :  { %4192 = vmatpush3.bf16.msra.mxu0 %v4325_v37 }
0x1614   :  { %4193 = vmatprep.subr.bf16.mxu0 %v4326_v23 }
0x1617   :  { %4194 = vmatpush3.bf16.msra.mxu0 %v4326_v23 }
0x1618   :  { %4195 = vmatprep.subr.bf16.mxu0 %v4327_v58 }
0x161b   :  { %4196 = vmatpush3.bf16.msra.mxu0 %v4327_v58 }
0x161c   :  { %4197 = vmatprep.subr.bf16.mxu0 %v4328_v22 }
0x161f   :  { %4198 = vmatpush3.bf16.msra.mxu0 %v4328_v22 }
0x1695   :  { %v2869_v44 = vpop.xlane.xlu0 %2868 }
0x1696   :  { %v2879_v16 = vmul.f32 0.015625, %v2869_v44 }
0x1697   :  { %v2872_v45 = vpop.xlane.xlu1 %2871 }
0x1698   :  { %v2883_v42 = vadd.f32 1e-12, %v2879_v16  ;;  %v2880_v46 = vmul.f32 0.015625, %v2872_v45 }
0x169a   :  { %4505 = vrsqrt.f32 %v2883_v42  ;;  %v2884_v52 = vadd.f32 1e-12, %v2880_v46 }
0x169b   :  { %v2878_v53 = vpop.xlane.xlu1 %2877  ;;  %v2875_v54 = vpop.xlane.xlu0 %2874 }
0x169c   :  { %4507 = vrsqrt.f32 %v2884_v52  ;;  %v2882_v56 = vmul.f32 0.015625, %v2878_v53  ;;  %v2881_v61 = vmul.f32 0.015625, %v2875_v54  ;;  %v3804_v54 = vld [vmem:[%s5790_s14 + $0x1] ss:$0 sm:$0xff] }
0x169e   :  { %v2886_v60 = vadd.f32 1e-12, %v2882_v56  ;;  %v2885_v63 = vadd.f32 1e-12, %v2881_v61 }
0x16a0   :  { %4509 = vrsqrt.f32 %v2886_v60 }
0x16a1   :  { %4511 = vrsqrt.f32 %v2885_v63 }
0x16a4   :  { %v4506_v47 = vpop.eup %4505 }
0x16a5   :  { %v2891_v48 = vmul.f32 %v4506_v47, %v2859_v2 }
0x16a6   :  { %v4508_v4 = vpop.eup %4507 }
0x16a7   :  { %v2892_v49 = vmul.f32 %v4508_v4, %v2860_v18  ;;  %v2901_v59 = vmul.f32 %v3795_v1, %v2891_v48 }
0x16a9   :  { %v2902_v3 = vmul.f32 %v3795_v1, %v2892_v49  ;;  %v5472_v8 = vadd.f32 %v3796_v10, %v2901_v59 }
0x16aa   :  { %v4510_v55 = vpop.eup %4509 }
0x16ab   :  { %v4512_v11 = vpop.eup %4511  ;;  %v2894_v51 = vmul.f32 %v4510_v55, %v2862_v0  ;;  %v5474_v50 = vadd.f32 %v3796_v10, %v2902_v3 }
0x16ac   :  { %v2893_v57 = vmul.f32 %v4512_v11, %v2861_v29 }
0x16ad   :  { %v2904_v12 = vmul.f32 %v3795_v1, %v2894_v51  ;;  %v2915_v13 = vpack.c.bf16 %v5474_v50, %v5472_v8 }
0x16ae   :  { %v2903_v14 = vmul.f32 %v3795_v1, %v2893_v57 }
0x16af   :  { %4179 = vmatprep.mubr.msk.bf16.mxu1 %vm71_vm0, %v2915_v13  ;;  %v5479_v24 = vadd.f32 %v3796_v10, %v2904_v12 }
0x16b0   :  { %v5481_v17 = vadd.f32 %v3796_v10, %v2903_v14 }
0x16b2   :  { %v2916_v6 = vpack.c.bf16 %v5479_v24, %v5481_v17 }
0x16b4   :  { %4180 = vmatmul.mubr.msk.bf16.vlgmr.msra.gmra.mrb[48].mxu1 %vm71_vm0, %v2916_v6 }
0x16b5   :  { %3331 = vmatprep.mubr.bf16.mxu1 %v4633_v33 }
0x1787   :  { %v4181_v2 = vpop.f32.mrb[48].mxu1 }
0x1788   :  { %v2996_v26 = vadd.f32 %v4181_v2, %v3797_v9  ;;  %v2987_v62 = vpop.f32.mrb[49].mxu1 }
0x1789   :  { %v2988_v18 = vadd.f32 %v3797_v9, %v2987_v62  ;;  %v4182_v36 = vpop.f32.mrb[50].mxu1 }
0x178a   :  { %v3008_v20 = vmul.f32 0.70710677, %v2996_v26  ;;  %v2999_v21 = vadd.f32 %v4182_v36, %v3797_v9  ;;  %v2990_v0 = vpop.f32.mrb[51].mxu1  ;;  %v3004_v39 = vmul.f32 0.5, %v2996_v26 }
0x178b   :  { %v3006_v19 = vmul.f32 0.70710677, %v2988_v18  ;;  %v2991_v25 = vadd.f32 %v3797_v9, %v2990_v0  ;;  %v3002_v43 = vmul.f32 0.5, %v2988_v18  ;;  %v4334_v0 = vld [vmem:[%s5793_s17 + $0x1c] ss:$12 sps:$4 sm:$0xff]  }
0x178c   :  { %4513 = verf.f32 %v3008_v20  ;;  %v3009_v28 = vmul.f32 0.70710677, %v2999_v21  ;;  %v3005_v40 = vmul.f32 0.5, %v2999_v21  ;;  %v4331_v20 = vld [vmem:[%s5793_s17 + $0x4] ss:$12 sps:$4 sm:$0xff]  }
0x178d   :  { %4515 = verf.f32 %v3006_v19  ;;  %v3007_v29 = vmul.f32 0.70710677, %v2991_v25  ;;  %v3003_v27 = vmul.f32 0.5, %v2991_v25  ;;  %v4329_v21 = vld [vmem:[%s5793_s17] ss:$12 sps:$4 sm:$0xff]   ;;  %3299 = vmatprep.subr.bf16.mxu1 %v4331_v20 }
0x178e   :  { %4517 = verf.f32 %v3009_v28  ;;  %3300 = vmatpush1.bf16.msra.mxu1 %v4329_v21  ;;  %v4332_v19 = vld [vmem:[%s5793_s17 + $0x18] ss:$12 sps:$4 sm:$0xff]   ;;  %v4337_v25 = vld [vmem:[%s5793_s17 + $0x34] ss:$12 sps:$4 sm:$0xff]   ;;  %v4335_v28 = vld [vmem:[%s5793_s17 + $0x30] ss:$12 sps:$4 sm:$0xff]  }
0x178f   :  { %4519 = verf.f32 %v3007_v29  ;;  %3301 = vmatprep.subr.bf16.mxu1 %v4334_v0  ;;  %v4340_v29 = vld [vmem:[%s5793_s17 + $0x4c] ss:$12 sps:$4 sm:$0xff]  }
0x1792   :  { %3302 = vmatpush1.bf16.msra.mxu1 %v4332_v19 }
0x1793   :  { %3303 = vmatprep.subr.bf16.mxu1 %v4337_v25 }
0x1796   :  { %v4514_v38 = vpop.eup %4513  ;;  %3304 = vmatpush1.bf16.msra.mxu1 %v4335_v28 }
0x1797   :  { %v4516_v30 = vpop.eup %4515  ;;  %v3016_v31 = vadd.f32 1.0, %v4514_v38  ;;  %v4338_v38 = vld [vmem:[%s5793_s17 + $0x48] ss:$12 sps:$4 sm:$0xff]   ;;  %3305 = vmatprep.subr.bf16.mxu1 %v4340_v29 }
0x1798   :  { %v4518_v32 = vpop.eup %4517  ;;  %v3014_v34 = vadd.f32 1.0, %v4516_v30  ;;  %v4341_v30 = vld [vmem:[%s5793_s17 + $0x8] ss:$12 sps:$4 sm:$0xff]  }
0x1799   :  { %v4520_v35 = vpop.eup %4519  ;;  %v3017_v41 = vadd.f32 1.0, %v4518_v32  ;;  %v3020_v16 = vmul.f32 %v3016_v31, %v3004_v39  ;;  %v5553_v31 = vld [vmem:[%s5815_s27 + $0x8] sm:$0xff] }
0x179a   :  { %v3015_v44 = vadd.f32 1.0, %v4520_v35  ;;  %v3018_v42 = vmul.f32 %v3014_v34, %v3002_v43  ;;  %3306 = vmatpush1.bf16.msra.mxu1 %v4338_v38 }
0x179b   :  { %v3021_v45 = vmul.f32 %v3017_v41, %v3005_v40  ;;  %4203 = vmatprep.subr.bf16.mxu1 %v4341_v30 }
0x179c   :  { %v3019_v46 = vmul.f32 %v3015_v44, %v3003_v27 }
0x179d   :  { %v3023_v52 = vpack.c.bf16 %v3021_v45, %v3020_v16 }
0x179e   :  { %v3022_v53 = vpack.c.bf16 %v3019_v46, %v3018_v42 }
0x17a0   :  { %4199 = vmatprep.mubr.bf16.mxu0 %v3022_v53 }
0x17a1   :  { %4200 = vmatmul.mubr.bf16.vlgmr.msra.gmra.mrb[48].mxu0 %v3023_v52  ;;  %v3815_v52 = vld [vmem:[%s5791_s15 + $0x1] ss:$0 sm:$0xff] }
0x1874   :  { %v4201_v56 = vpop.f32.mrb[48].mxu0 }
0x1875   :  { %v3112_v61 = vpop.f32.mrb[49].mxu0  ;;  %v3121_v60 = vadd.f32 %v4201_v56, %v3804_v54  ;;  %v3816_v56 = vld [vmem:[%s5792_s16 + $0x1] ss:$0 sm:$0xff] }
0x1876   :  { %v3113_v63 = vadd.f32 %v3804_v54, %v3112_v61  ;;  %v4202_v47 = vpop.f32.mrb[50].mxu0 }
0x1877   :  { %v3115_v1 = vpop.f32.mrb[51].mxu0  ;;  %v3124_v4 = vadd.f32 %v4202_v47, %v3804_v54  ;;  %v3129_v59 = vadd.f32 %v3121_v60, %v5481_v17 }
0x1878   :  { %v3127_v48 = vadd.f32 %v3113_v63, %v5472_v8  ;;  %v3116_v49 = vadd.f32 %v3804_v54, %v3115_v1 }
0x1879   :  { %v3130_v55 = vadd.f32 %v3124_v4, %v5479_v24  ;;  %v3141_v51 = vsel %vm71_vm0, %v3129_v59, 0.0 }
0x187a   :  { %v3128_v10 = vadd.f32 %v3116_v49, %v5474_v50  ;;  %v3135_v3 = vsel %vm71_vm0, %v3127_v48, 0.0 }
0x187b   :  { %3136 = vadd.xlane.f32.xlu0 %v3135_v3  ;;  %v3144_v57 = vsel %vm71_vm0, %v3130_v55, 0.0 }
0x187c   :  { %v3138_v11 = vsel %vm71_vm0, %v3128_v10, 0.0 }
0x187d   :  { %3139 = vadd.xlane.f32.xlu1 %v3138_v11 }
0x187f   :  { %3142 = vadd.xlane.f32.xlu0 %v3141_v51 }
0x1881   :  { %3145 = vadd.xlane.f32.xlu1 %v3144_v57 }
0x1908   :  { %v3137_v8 = vpop.xlane.xlu0 %3136 }
0x1909   :  { %v3147_v12 = vmul.f32 0.015625, %v3137_v8  ;;  %v4343_v8 = vld [vmem:[%s5793_s17 + $0x38] ss:$12 sps:$4 sm:$0xff]  }
0x190a   :  { %v3140_v13 = vpop.xlane.xlu1 %3139 }
0x190b   :  { %v3151_v14 = vsub.f32 %v3127_v48, %v3147_v12  ;;  %v3148_v17 = vmul.f32 0.015625, %v3140_v13  ;;  %v4344_v13 = vld [vmem:[%s5793_s17 + $0x50] ss:$12 sps:$4 sm:$0xff]  }
0x190c   :  { %v3143_v50 = vpop.xlane.xlu0 %3142 }
0x190d   :  { %v3152_v6 = vsub.f32 %v3128_v10, %v3148_v17  ;;  %v3149_v7 = vmul.f32 0.015625, %v3143_v50  ;;  %v3155_v15 = vmul.f32 %v3151_v14, %v3151_v14 }
0x190e   :  { %v3146_v37 = vpop.xlane.xlu1 %3145 }
0x190f   :  { %v3153_v24 = vsub.f32 %v3129_v59, %v3149_v7  ;;  %v3150_v23 = vmul.f32 0.015625, %v3146_v37  ;;  %v3159_v58 = vsel %vm71_vm0, %v3155_v15, 0.0  ;;  %v3156_v22 = vmul.f32 %v3152_v6, %v3152_v6 }
0x1910   :  { %3160 = vadd.xlane.f32.xlu0 %v3159_v58 }
0x1911   :  { %v3154_v9 = vsub.f32 %v3130_v55, %v3150_v23  ;;  %v3162_v2 = vsel %vm71_vm0, %v3156_v22, 0.0  ;;  %v3157_v26 = vmul.f32 %v3153_v24, %v3153_v24  ;;  %v4342_v55 = vld [vmem:[%s5793_s17 + $0x20] ss:$12 sps:$4 sm:$0xff]  }
0x1912   :  { %3163 = vadd.xlane.f32.xlu1 %v3162_v2 }
0x1913   :  { %v3165_v62 = vsel %vm71_vm0, %v3157_v26, 0.0  ;;  %v3158_v18 = vmul.f32 %v3154_v9, %v3154_v9 }
0x1914   :  { %3166 = vadd.xlane.f32.xlu0 %v3165_v62 }
0x1915   :  { %v3168_v36 = vsel %vm71_vm0, %v3158_v18, 0.0 }
0x1916   :  { %3169 = vadd.xlane.f32.xlu1 %v3168_v36 }
0x1927   :  { %3505 = vperm.xlu1 %4272, %v5553_v31  }
0x199d   :  { %v3161_v32 = vpop.xlane.xlu0 %3160 }
0x199e   :  { %v3171_v34 = vmul.f32 0.015625, %v3161_v32 }
0x199f   :  { %v3164_v35 = vpop.xlane.xlu1 %3163 }
0x19a0   :  { %v3175_v39 = vadd.f32 1e-12, %v3171_v34  ;;  %v3172_v40 = vmul.f32 0.015625, %v3164_v35  ;;  %v5643_v34 = vld [vmem:[%s5815_s27 + $0x10] sm:$0xff]  ;;  %v5649_v35 = vld [vmem:[%s5815_s27] sm:$0xff] }
0x19a1   :  { %v3167_v41 = vpop.xlane.xlu0 %3166 }
0x19a2   :  { %4521 = vrsqrt.f32 %v3175_v39  ;;  %v3176_v43 = vadd.f32 1e-12, %v3172_v40  ;;  %v3173_v27 = vmul.f32 0.015625, %v3167_v41  ;;  %v5654_v39 = vld [vmem:[%s5815_s27 + $0x18] sm:$0xff] }
0x19a3   :  { %v3170_v44 = vpop.xlane.xlu1 %3169 }
0x19a4   :  { %4523 = vrsqrt.f32 %v3176_v43  ;;  %v3177_v16 = vadd.f32 1e-12, %v3173_v27  ;;  %v3174_v45 = vmul.f32 0.015625, %v3170_v44 }
0x19a6   :  { %4525 = vrsqrt.f32 %v3177_v16  ;;  %v3178_v42 = vadd.f32 1e-12, %v3174_v45 }
0x19a7   :  { %v3506_v17 = vpop.permute.xlu1 %3505 }
0x19a8   :  { %4527 = vrsqrt.f32 %v3178_v42 }
0x19ac   :  { %v4522_v46 = vpop.eup %4521 }
0x19ad   :  { %v3183_v53 = vmul.f32 %v4522_v46, %v3151_v14 }
0x19ae   :  { %v4524_v54 = vpop.eup %4523 }
0x19af   :  { %v3193_v61 = vmul.f32 %v3815_v52, %v3183_v53  ;;  %v3184_v60 = vmul.f32 %v4524_v54, %v3152_v6 }
0x19b0   :  { %v4526_v63 = vpop.eup %4525 }
0x19b1   :  { %v3194_v47 = vmul.f32 %v3815_v52, %v3184_v60  ;;  %v3185_v1 = vmul.f32 %v4526_v63, %v3153_v24  ;;  %v3203_v48 = vadd.f32 %v3816_v56, %v3193_v61 }
0x19b2   :  { %v4528_v4 = vpop.eup %4527 }
0x19b3   :  { %v3186_v49 = vmul.f32 %v4528_v4, %v3154_v9  ;;  %v3204_v59 = vadd.f32 %v3816_v56, %v3194_v47  ;;  %3207 = vst.msk [vmem:[#allocation2] sm:$0xff] %vm71_vm0, %v3203_v48  ;;  %v3195_v10 = vmul.f32 %v3815_v52, %v3185_v1 }
0x19b5   :  { %v3227_v3 = vpack.c.bf16 %v3204_v59, %v3203_v48  ;;  %3208 = vst.msk [vmem:[#allocation2 + $0x8] sm:$0xff] %vm71_vm0, %v3204_v59  ;;  %v3196_v11 = vmul.f32 %v3815_v52, %v3186_v49  ;;  %v3205_v51 = vadd.f32 %v3816_v56, %v3195_v10 }
0x19b7   :  { %3829 = vmatmul.mubr.msk.bf16.vlgmr.msra.gmra.mrb[52].mxu1 %vm71_vm0, %v3227_v3  ;;  %v3206_v57 = vadd.f32 %v3816_v56, %v3196_v11  ;;  %3209 = vst.msk [vmem:[#allocation2 + $0x10] sm:$0xff] %vm71_vm0, %v3205_v51 }
0x19b8   :  { %4204 = vmatpush3.bf16.msra.mxu1 %v4341_v30  ;;  %3341 = vmatprep.mubr.bf16.mxu1 %v4633_v33  ;;  %v5581_v33 = vand.u32 127, %v196_v5 }
0x19b9   :  { %4205 = vmatprep.subr.bf16.mxu1 %v4342_v55  ;;  %3210 = vst.msk [vmem:[#allocation2 + $0x18] sm:$0xff] %vm71_vm0, %v3206_v57  ;;  %v3228_v12 = vpack.c.bf16 %v3206_v57, %v3205_v51 }
0x19ba   :  { %v5584_v14 = vadd.s32 128, %v5581_v33  ;;  %vm3516_vm7 = vcmp.eq.s32.totalorder %v5581_v33, %v3506_v17  ;;  %v5623_v36 = vadd.s32 256, %v5581_v33 }
0x19bc   :  { %4206 = vmatpush3.bf16.msra.mxu1 %v4342_v55  ;;  %vm3517_vm8 = vcmp.eq.s32.totalorder %v5584_v14, %v3506_v17  ;;  %vm3518_vm9 = vcmp.eq.s32.totalorder %v5623_v36, %v3506_v17 }
0x19bd   :  { %4207 = vmatprep.subr.bf16.mxu1 %v4343_v8 }
0x19bf   :  { %3830 = vmatmul.mubr.msk.bf16.gmra.mrb[56].mxu1 %vm71_vm0, %v3228_v12 }
0x19c0   :  { %4208 = vmatpush3.bf16.msra.mxu1 %v4343_v8  ;;  %4211 = vmatprep.mubr.msk.bf16.mxu1 %vm71_vm0, %v3227_v3 }
0x19c1   :  { %4209 = vmatprep.subr.bf16.mxu1 %v4344_v13 }
0x19c4   :  { %4210 = vmatpush3.bf16.msra.mxu1 %v4344_v13 }
0x19c7   :  { %4212 = vmatmul.mubr.msk.bf16.vlgmr.msra.gmra.mrb[60].mxu1 %vm71_vm0, %v3228_v12 }
0x1a8a   :  { %v5586_v50 = vpop.f32.mrb[52].mxu1 }
0x1a8b   :  { %3401 = vst [vmem:[#allocation4] sm:$0xff] %v5586_v50  ;;  %v5591_v6 = vpop.f32.mrb[53].mxu1 }
0x1a8c   :  { %3402 = vst [vmem:[#allocation4 + $0x8] sm:$0xff] %v5591_v6  ;;  %v3417_v5 = vmax.f32 %v5586_v50, %v5591_v6  ;;  %v5596_v7 = vpop.f32.mrb[54].mxu1 }
0x1a8d   :  { %3404 = vst [vmem:[#allocation4 + $0x18] sm:$0xff] %v5596_v7  ;;  %v3528_v15 = vsel %vm3516_vm7, %v5596_v7, 0.0  ;;  %v5600_v37 = vpop.f32.mrb[55].mxu1 }
0x1a8e   :  { %3405 = vst [vmem:[#allocation4 + $0x20] sm:$0xff] %v5600_v37  ;;  %v3529_v24 = vsel %vm3517_vm8, %v5600_v37, 0.0  ;;  %v3421_v23 = vmax.f32 %v5596_v7, %v5600_v37 }
0x1a8f   :  { %v3541_v58 = vadd.f32 %v3529_v24, %v3528_v15 }
0x1a92   :  { %v5606_v22 = vpop.f32.mrb[56].mxu1 }
0x1a93   :  { %3407 = vst [vmem:[#allocation4 + $0x30] sm:$0xff] %v5606_v22  ;;  %v5609_v9 = vpop.f32.mrb[57].mxu1 }
0x1a94   :  { %3408 = vst [vmem:[#allocation4 + $0x38] sm:$0xff] %v5609_v9  ;;  %v3425_v2 = vmax.f32 %v5606_v22, %v5609_v9  ;;  %v5614_v26 = vpop.f32.mrb[58].mxu1 }
0x1a95   :  { %3410 = vst [vmem:[#allocation4 + $0x48] sm:$0xff] %v5614_v26  ;;  %v5617_v62 = vpop.f32.mrb[59].mxu1 }
0x1a96   :  { %3411 = vst [vmem:[#allocation4 + $0x50] sm:$0xff] %v5617_v62  ;;  %v3429_v18 = vmax.f32 %v5614_v26, %v5617_v62 }
0x1a9a   :  { %v5625_v20 = vpop.f32.mrb[60].mxu1 }
0x1a9b   :  { %3409 = vst [vmem:[#allocation4 + $0x40] sm:$0xff] %v5625_v20  ;;  %v5629_v21 = vpop.f32.mrb[61].mxu1  ;;  %v3426_v0 = vmax.f32 %v3425_v2, %v5625_v20 }
0x1a9c   :  { %3403 = vst [vmem:[#allocation4 + $0x10] sm:$0xff] %v5629_v21  ;;  %v5633_v19 = vpop.f32.mrb[62].mxu1  ;;  %v3418_v25 = vmax.f32 %v3417_v5, %v5629_v21 }
0x1a9d   :  { %3412 = vst [vmem:[#allocation4 + $0x58] sm:$0xff] %v5633_v19  ;;  %v3389_v28 = vpop.f32.mrb[63].mxu1  ;;  %v3430_v29 = vmax.f32 %v3429_v18, %v5633_v19 }
0x1a9e   :  { %3406 = vst [vmem:[#allocation4 + $0x28] sm:$0xff] %v3389_v28  ;;  %v3422_v38 = vmax.f32 %v3421_v23, %v3389_v28  ;;  %v3530_v30 = vsel %vm3518_vm9, %v3389_v28, 0.0  ;;  %3419 = vmax.xlane.f32.xlu0 %v3418_v25 }
0x1a9f   :  { %3431 = vmax.xlane.f32.xlu1 %v3430_v29  ;;  %v5638_v32 = vadd.f32 %v3541_v58, %v3530_v30 }
0x1aa2   :  { %3427 = vmax.xlane.f32.xlu0 %v3426_v0 }
0x1aa3   :  { %3423 = vmax.xlane.f32.xlu1 %v3422_v38 }
0x1ab4   :  { %3508 = vperm.xlu1 %4272, %v5643_v34  }
0x1ab8   :  { %3502 = vperm.xlu0 %4271, %v5649_v35   ;;  %3511 = vperm.xlu1 %4272, %v5654_v39  }
0x1b2b   :  { %v5658_v40 = vpop.xlane.xlu0 %3419 }
0x1b2c   :  { %v3433_v41 = vsub.f32 %v5586_v50, %v5658_v40  ;;  %v3434_v43 = vsub.f32 %v5591_v6, %v5658_v40  ;;  %v3435_v27 = vsub.f32 %v5629_v21, %v5658_v40  ;;  %v5666_v44 = vpop.xlane.xlu1 %3431 }
0x1b2d   :  { %v3442_v16 = vsub.f32 %v5614_v26, %v5666_v44  ;;  %v3443_v45 = vsub.f32 %v5617_v62, %v5666_v44  ;;  %v3444_v42 = vsub.f32 %v5633_v19, %v5666_v44 }
0x1b2e   :  { %v3445_v46 = vmul.f32 1.442695, %v3433_v41  ;;  %v3447_v52 = vmul.f32 1.442695, %v3434_v43  ;;  %v3449_v53 = vmul.f32 1.442695, %v3435_v27 }
0x1b2f   :  { %v3463_v54 = vmul.f32 1.442695, %v3442_v16  ;;  %v3465_v56 = vmul.f32 1.442695, %v3443_v45  ;;  %v5674_v61 = vpop.xlane.xlu0 %3427  ;;  %v3467_v48 = vmul.f32 1.442695, %v3444_v42 }
0x1b30   :  { %4529 = vpow2.f32 %v3445_v46  ;;  %v3439_v60 = vsub.f32 %v5606_v22, %v5674_v61  ;;  %v3440_v63 = vsub.f32 %v5609_v9, %v5674_v61  ;;  %v3441_v47 = vsub.f32 %v5625_v20, %v5674_v61  ;;  %v5682_v1 = vpop.xlane.xlu1 %3423 }
0x1b31   :  { %4531 = vpow2.f32 %v3447_v52  ;;  %v3436_v4 = vsub.f32 %v5596_v7, %v5682_v1  ;;  %v3437_v49 = vsub.f32 %v5600_v37, %v5682_v1  ;;  %v3438_v3 = vsub.f32 %v3389_v28, %v5682_v1 }
0x1b32   :  { %4533 = vpow2.f32 %v3449_v53  ;;  %v3457_v59 = vmul.f32 1.442695, %v3439_v60  ;;  %v3459_v10 = vmul.f32 1.442695, %v3440_v63  ;;  %v3461_v55 = vmul.f32 1.442695, %v3441_v47 }
0x1b33   :  { %4535 = vpow2.f32 %v3463_v54  ;;  %v3451_v11 = vmul.f32 1.442695, %v3436_v4  ;;  %v3453_v57 = vmul.f32 1.442695, %v3437_v49  ;;  %v3455_v13 = vmul.f32 1.442695, %v3438_v3 }
0x1b34   :  { %4537 = vpow2.f32 %v3465_v56  ;;  %v3509_v51 = vpop.permute.xlu1 %3508 }
0x1b35   :  { %4539 = vpow2.f32 %v3467_v48  ;;  %vm3519_vm10 = vcmp.eq.s32.totalorder %v5581_v33, %v3509_v51  ;;  %vm3520_vm11 = vcmp.eq.s32.totalorder %v5584_v14, %v3509_v51  ;;  %vm3521_vm12 = vcmp.eq.s32.totalorder %v5623_v36, %v3509_v51 }
0x1b36   :  { %4541 = vpow2.f32 %v3457_v59  ;;  %v3531_v8 = vsel %vm3519_vm10, %v5606_v22, 0.0  ;;  %v3532_v12 = vsel %vm3520_vm11, %v5609_v9, 0.0  ;;  %v3533_v15 = vsel %vm3521_vm12, %v5625_v20, 0.0 }
0x1b37   :  { %4543 = vpow2.f32 %v3459_v10  ;;  %v3545_v17 = vadd.f32 %v3532_v12, %v3531_v8  ;;  %v3503_v5 = vpop.permute.xlu0 %3502 }
0x1b38   :  { %4545 = vpow2.f32 %v3461_v55  ;;  %vm3513_vm13 = vcmp.eq.s32.totalorder %v5581_v33, %v3503_v5  ;;  %vm3514_vm14 = vcmp.eq.s32.totalorder %v5584_v14, %v3503_v5  ;;  %vm3515_vm15 = vcmp.eq.s32.totalorder %v5623_v36, %v3503_v5  ;;  %v3512_v7 = vpop.permute.xlu1 %3511 }
0x1b39   :  { %4547 = vpow2.f32 %v3451_v11  ;;  %v3525_v37 = vsel %vm3513_vm13, %v5586_v50, 0.0  ;;  %v3526_v24 = vsel %vm3514_vm14, %v5591_v6, 0.0  ;;  %vm3522_vm0 = vcmp.eq.s32.totalorder %v5581_v33, %v3512_v7 }
0x1b3a   :  { %v4530_v23 = vpop.eup %4529  ;;  %4549 = vpow2.f32 %v3453_v57  ;;  %v3537_v58 = vadd.f32 %v3526_v24, %v3525_v37  ;;  %vm3523_vm1 = vcmp.eq.s32.totalorder %v5584_v14, %v3512_v7  ;;  %v3527_v9 = vsel %vm3515_vm15, %v5629_v21, 0.0 }
0x1b3b   :  { %v4532_v22 = vpop.eup %4531  ;;  %vm3524_vm2 = vcmp.eq.s32.totalorder %v5623_v36, %v3512_v7  ;;  %v3534_v2 = vsel %vm3522_vm0, %v5614_v26, 0.0  ;;  %v3535_v18 = vsel %vm3523_vm1, %v5617_v62, 0.0  ;;  %4551 = vpow2.f32 %v3455_v13 }
0x1b3c   :  { %v4534_v20 = vpop.eup %4533  ;;  %v3549_v50 = vadd.f32 %v3535_v18, %v3534_v2  ;;  %v3469_v6 = vadd.f32 %v4532_v22, %v4530_v23  ;;  %v3546_v0 = vadd.f32 %v3545_v17, %v3533_v15  ;;  %v3536_v28 = vsel %vm3524_vm2, %v5633_v19, 0.0 }
0x1b3d   :  { %v4536_v25 = vpop.eup %4535  ;;  %v3538_v33 = vadd.f32 %v3537_v58, %v3527_v9 }
0x1b3e   :  { %v4538_v29 = vpop.eup %4537  ;;  %v3470_v14 = vadd.f32 %v4534_v20, %v3469_v6  ;;  %v3550_v38 = vadd.f32 %v3549_v50, %v3536_v28 }
0x1b3f   :  { %v4540_v30 = vpop.eup %4539  ;;  %v3481_v21 = vadd.f32 %v4538_v29, %v4536_v25 }
0x1b40   :  { %v4542_v41 = vpop.eup %4541  ;;  %3471 = vadd.xlane.f32.xlu1 %v3470_v14 }
0x1b41   :  { %v4544_v36 = vpop.eup %4543  ;;  %v3482_v26 = vadd.f32 %v4540_v30, %v3481_v21 }
0x1b42   :  { %v4546_v43 = vpop.eup %4545  ;;  %v3477_v62 = vadd.f32 %v4544_v36, %v4542_v41 }
0x1b43   :  { %v4548_v27 = vpop.eup %4547 }
0x1b44   :  { %v4550_v16 = vpop.eup %4549  ;;  %v3478_v45 = vadd.f32 %v4546_v43, %v3477_v62 }
0x1b45   :  { %v3473_v42 = vadd.f32 %v4550_v16, %v4548_v27  ;;  %v4552_v46 = vpop.eup %4551 }
0x1b46   :  { %3479 = vadd.xlane.f32.xlu1 %v3478_v45 }
0x1b47   :  { %v3474_v52 = vadd.f32 %v4552_v46, %v3473_v42 }
0x1b49   :  { %3475 = vadd.xlane.f32.xlu0 %v3474_v52 }
0x1b4a   :  { %3483 = vadd.xlane.f32.xlu1 %v3482_v26 }
0x1b4d   :  { %3547 = vadd.xlane.f32.xlu0 %v3546_v0 }
0x1b4e   :  { %3539 = vadd.xlane.f32.xlu1 %v3538_v33 }
0x1b52   :  { %3543 = vadd.xlane.f32.xlu1 %v5638_v32 }
0x1b56   :  { %3551 = vadd.xlane.f32.xlu1 %v3550_v38 }
0x1b57   :  { %4574 = shalt.err (!%p4571_p4)
}
0x1b58   :  { %s4575_s21 = scalar_lea.hbm %s5795_s19, 1536 }
0x1b59   :  { %p4576_p5 = scmp.ne.s32.totalorder %s5795_s19, %s4575_s21  ;;  %p4579_p6 = scmp.lt.u32.totalorder %s4575_s21, %s5795_s19 }
0x1b5b   :  { %p4581_p7 = pnand %p4579_p6, %p4576_p5 }
0x1b5d   :  { %4584 = shalt.err (!%p4581_p7)
}
0x1b5e   :  { %s4642_s26 = smov 384   ;;  %s4643_s27 = smov 24  }
0x1b5f   :  { %3627 = dma.vmem_to_hbm [thread:$0]  %s3622_s10, 1536, %s5795_s19, [#allocation5], %s4642_s26, %s4642_s26, %s4643_s27  }
0x1b60   :  { %s4644_s12 = smov [#allocation2]  }
0x1b61   :  { %s3609_s13 = sshll.u32 %s4644_s12, 4  ;;  %s3610_s13 = int_to_ptr.vmem [resolvable:$true] %s3609_s13 }
0x1b62   :  { %s4585_s15 = scalar_lea.vmem %s3610_s13, 512  ;;  %p4590_p9 = scmp.lt.s32.totalorder %s3610_s13, %s3610_s13 }
0x1b63   :  { %p4586_p8 = scmp.ne.s32.totalorder %s3610_s13, %s4585_s15  ;;  %p4591_p10 = scmp.lt.s32.totalorder %s4585_s15, %s4585_s15 }
0x1b65   :  { %p4592_p11 = por %p4591_p10, %p4590_p9 }
0x1b67   :  { %p4593_p12 = pnand %p4592_p11, %p4586_p8 }
0x1b69   :  { %4596 = shalt.err (!%p4593_p12)
}
0x1b6a   :  { %s4597_s24 = scalar_lea.hbm %s5794_s18, 512 }
0x1b6b   :  { %p4598_p13 = scmp.ne.s32.totalorder %s5794_s18, %s4597_s24  ;;  %p4601_p0 = scmp.lt.u32.totalorder %s4597_s24, %s5794_s18 }
0x1b6d   :  { %p4603_p1 = pnand %p4601_p0, %p4598_p13 }
0x1b6f   :  { %4606 = shalt.err (!%p4603_p1)
}
0x1b70   :  { %s4645_s3 = smov 128   ;;  %s4646_s11 = smov 8   ;;  %vm3553_vm3 = vcmp.ne.s32.totalorder %v5649_v35, 4294967196  ;;  %vm3554_vm4 = vcmp.ne.s32.totalorder %v5553_v31, 4294967196  ;;  %vm3565_vm5 = vcmask 7168   ;;  %v4647_v19 = vmov 0.0  }
0x1b71   :  { %3615 = dma.vmem_to_hbm [thread:$0]  %s3610_s13, 512, %s5794_s18, [#allocation3], %s4645_s3, %s4645_s3, %s4646_s11   ;;  %v3833_v32 = vsel %vm3553_vm3, 1.0, %v4647_v19  ;;  %v3834_v53 = vsel %vm3554_vm4, 1.0, %v4647_v19  ;;  %vm3555_vm6 = vcmp.ne.s32.totalorder %v5643_v34, 4294967196  ;;  %vm3556_vm7 = vcmp.ne.s32.totalorder %v5654_v39, 4294967196 }
0x1b72   :  { %v3587_v54 = vsel %vm3565_vm5, %v3833_v32, 0.0  ;;  %v3588_v56 = vsel %vm3565_vm5, %v3834_v53, 0.0  ;;  %v3835_v60 = vsel %vm3555_vm6, 1.0, %v4647_v19  ;;  %v3836_v4 = vsel %vm3556_vm7, 1.0, %v4647_v19  ;;  %s4648_s18 = smov [#allocation6]  }
0x1b73   :  { %v3589_v63 = vadd.f32 %v3588_v56, %v3587_v54  ;;  %v3590_v47 = vsel %vm3565_vm5, %v3835_v60, 0.0  ;;  %v3592_v59 = vsel %vm3565_vm5, %v3836_v4, 0.0  ;;  %s3634_s29 = sshll.u32 %s4648_s18, 4  ;;  %vm3602_vm8 = vcmask 0   ;;  %s3635_s29 = int_to_ptr.vmem [resolvable:$true] %s3634_s29 }
0x1b74   :  { %s4607_s9 = scalar_lea.vmem %s3635_s29, 16  ;;  %s4611_s10 = scalar_lea.vmem %s3635_s29, 32 }
0x1b75   :  { %v3591_v49 = vadd.f32 %v3590_v47, %v3589_v63  ;;  %p4608_p2 = scmp.ne.s32.totalorder %s3635_s29, %s4607_s9  ;;  %p4612_p3 = scmp.lt.s32.totalorder %s3635_s29, %s3635_s29 }
0x1b76   :  { %p4613_p4 = scmp.lt.s32.totalorder %s4611_s10, %s4607_s9 }
0x1b77   :  { %v3593_v3 = vadd.f32 %v3592_v59, %v3591_v49 }
0x1b78   :  { %p4614_p5 = por %p4613_p4, %p4612_p3 }
0x1b79   :  { %v3594_v51 = vrot.slane %v3593_v3, 4 }
0x1b7a   :  { %p4615_p6 = pnand %p4614_p5, %p4608_p2 }
0x1b7b   :  { %v3595_v13 = vadd.f32 %v3594_v51, %v3593_v3 }
0x1b7d   :  { %v3596_v15 = vrot.slane %v3595_v13, 2 }
0x1b7f   :  { %v3597_v20 = vadd.f32 %v3596_v15, %v3595_v13 }
0x1b81   :  { %v3598_v33 = vrot.slane %v3597_v20, 1 }
0x1b83   :  { %v3599_v21 = vadd.f32 %v3598_v33, %v3597_v20 }
0x1bcd   :  { %v3472_v48 = vpop.xlane.xlu1 %3471 }
0x1bce   :  { %4553 = vlog2.f32 %v3472_v48 }
0x1bd3   :  { %v3480_v10 = vpop.xlane.xlu1 %3479 }
0x1bd4   :  { %4555 = vlog2.f32 %v3480_v10 }
0x1bd6   :  { %v3476_v55 = vpop.xlane.xlu0 %3475 }
0x1bd7   :  { %4557 = vlog2.f32 %v3476_v55  ;;  %v3484_v11 = vpop.xlane.xlu1 %3483 }
0x1bd8   :  { %v4554_v57 = vpop.eup %4553  ;;  %4559 = vlog2.f32 %v3484_v11 }
0x1bd9   :  { %v3486_v8 = vmul.f32 0.6931472, %v4554_v57  ;;  %4561 = vrcp.f32 %v3599_v21 }
0x1bda   :  { %v3548_v18 = vpop.xlane.xlu0 %3547 }
0x1bdb   :  { %v3540_v12 = vpop.xlane.xlu1 %3539  ;;  %v3493_v5 = vadd.f32 %v3486_v8, %v5658_v40 }
0x1bdd   :  { %v3557_v9 = vsub.f32 %v3493_v5, %v3540_v12 }
0x1bde   :  { %v4556_v17 = vpop.eup %4555 }
0x1bdf   :  { %v3490_v7 = vmul.f32 0.6931472, %v4556_v17  ;;  %v3544_v37 = vpop.xlane.xlu1 %3543  ;;  %v3561_v40 = vsel %vm3553_vm3, %v3557_v9, 0.0 }
0x1be0   :  { %v3566_v38 = vsel %vm3565_vm5, %v3561_v40, 0.0 }
0x1be1   :  { %v4558_v24 = vpop.eup %4557  ;;  %v3495_v23 = vadd.f32 %v3490_v7, %v5674_v61 }
0x1be2   :  { %v4560_v58 = vpop.eup %4559  ;;  %v3488_v22 = vmul.f32 0.6931472, %v4558_v24 }
0x1be3   :  { %v3492_v2 = vmul.f32 0.6931472, %v4560_v58  ;;  %v3559_v50 = vsub.f32 %v3495_v23, %v3548_v18  ;;  %v3552_v28 = vpop.xlane.xlu1 %3551  ;;  %v4562_v16 = vpop.eup %4561 }
0x1be4   :  { %v3494_v6 = vadd.f32 %v3488_v22, %v5682_v1 }
0x1be5   :  { %v3496_v0 = vadd.f32 %v3492_v2, %v5666_v44  ;;  %v3563_v61 = vsel %vm3555_vm6, %v3559_v50, 0.0 }
0x1be6   :  { %v3558_v25 = vsub.f32 %v3494_v6, %v3544_v37  ;;  %v3569_v35 = vsel %vm3565_vm5, %v3563_v61, 0.0 }
0x1be7   :  { %v3560_v29 = vsub.f32 %v3496_v0, %v3552_v28 }
0x1be8   :  { %v3562_v14 = vsel %vm3554_vm4, %v3558_v25, 0.0 }
0x1be9   :  { %v3567_v30 = vsel %vm3565_vm5, %v3562_v14, 0.0  ;;  %v3564_v44 = vsel %vm3556_vm7, %v3560_v29, 0.0 }
0x1bea   :  { %v3568_v1 = vadd.f32 %v3567_v30, %v3566_v38  ;;  %v3571_v41 = vsel %vm3565_vm5, %v3564_v44, 0.0 }
0x1bec   :  { %v3570_v36 = vadd.f32 %v3569_v35, %v3568_v1 }
0x1bee   :  { %v3572_v26 = vadd.f32 %v3571_v41, %v3570_v36 }
0x1bf0   :  { %v3573_v34 = vrot.slane %v3572_v26, 4 }
0x1bf2   :  { %v3574_v43 = vadd.f32 %v3573_v34, %v3572_v26 }
0x1bf4   :  { %v3575_v31 = vrot.slane %v3574_v43, 2 }
0x1bf6   :  { %v3576_v62 = vadd.f32 %v3575_v31, %v3574_v43 }
0x1bf8   :  { %v3577_v27 = vrot.slane %v3576_v62, 1 }
0x1bfa   :  { %v3578_v45 = vadd.f32 %v3577_v27, %v3576_v62 }
0x1bfc   :  { %v3601_v39 = vmul.f32 %v4562_v16, %v3578_v45 }
0x1bfe   :  { %3603 = vst.msk [vmem:[#allocation6] sm:$0x1] %vm3602_vm8, %v3601_v39 }
0x1bff   :  { %4618 = shalt.err (!%p4615_p6)
}
0x1c00   :  { %s4619_s7 = scalar_lea.hbm %s5796_s20, 16 }
0x1c01   :  { %p4620_p7 = scmp.ne.s32.totalorder %s5796_s20, %s4619_s7  ;;  %p4623_p8 = scmp.lt.u32.totalorder %s4619_s7, %s5796_s20 }
0x1c03   :  { %p4625_p9 = pnand %p4623_p8, %p4620_p7 }
0x1c05   :  { %4628 = shalt.err (!%p4625_p9)
}
0x1c06   :  { %3637 = dma.vmem_to_hbm [thread:$0]  %s3635_s29, 16, %s5796_s20, [#allocation5]  }
0x1c07   :  { %4629 = dma.done.wait [#allocation3], 512  }
0x1c08   :  { %4630 = vsyncadd [#allocation3], 4294966784 }
0x1c09   :  { %4631 = dma.done.wait [#allocation5], 1552  }
0x1c0a   :  { %4632 = vsyncadd [#allocation5], 4294965744 }
0x1c0b   :  { %3647 = vsyncpa [#allocation3], 1 }
0x1c0c   :  { %3648 = vsyncpa [#allocation5], 1 }

</bundles_post_ra>
